<compile_context>
chip_gen: v6e
topology: v6e:2x2x1
jax: 0.10.0
libtpu: 0.0.40
codegen_flags: <defaults>
</compile_context>

<pallas_src>
import functools

import jax
import jax.numpy as jnp
from jax import lax
from jax.experimental import pallas as pl
from jax.experimental.pallas import tpu as pltpu


def _round_up(x, m):
    return (x + m - 1) // m * m


def _sparse_arch_kernel(idx_ref, tab_ref, o_ref):
    """Fused F-feature embedding gather + hstack for one batch tile.

    idx_ref: (TB, F) int32  -- per-feature indices, already offset into the
                               block-diagonal row space.
    tab_ref: (N_total, D_pad) f32 block-diagonal table (resident in VMEM).
    o_ref:   (TB, D_pad) f32 output tile (lane-dense store).
    """
    idx = idx_ref[...]                                   # (TB, F) int32
    tb, num_feat = idx.shape
    n_total = tab_ref.shape[0]

    # Single shared iota, hoisted out of the feature loop (no CSE for broadcasts).
    iota = lax.broadcasted_iota(jnp.int32, (tb, n_total), 1)

    # Build ONE selector with F ones per row (feature blocks are disjoint, so the
    # sum of comparisons is an exact 0/1 selector per block).
    onehot = jnp.zeros((tb, n_total), jnp.float32)
    for f in range(num_feat):                            # static unroll over features
        onehot = onehot + (iota == idx[:, f:f + 1]).astype(jnp.float32)

    # One block-diagonal matmul realizes all F gathers AND the hstack at once.
    # precision=HIGHEST keeps the f32 table operand exact through the MXU.
    o_ref[...] = jnp.dot(
        onehot,
        tab_ref[...],
        preferred_element_type=jnp.float32,
        precision=lax.Precision.HIGHEST,
    ).astype(o_ref.dtype)


def sparse_arch_forward(sparse_features, table, *, feature_names, row_offsets,
                        d_total, tile_b=128):
    """SparseArch forward: fused embedding lookups + hstack in one pallas_call.

    table:        (N_total, D_pad) block-diagonal packed table (see pack_tables).
    row_offsets:  static per-feature start rows inside `table`.
    d_total:      unpadded sum of embedding dims (output is sliced to this width).
    """
    n_total, d_pad = table.shape

    # Stack per-feature indices and bake in the (static) block-diagonal row offsets.
    idx = jnp.stack(
        [sparse_features[k].astype(jnp.int32) + off
         for k, off in zip(feature_names, row_offsets)],
        axis=1,
    )                                                     # (B, F)
    B, F = idx.shape

    tb = min(tile_b, _round_up(B, 8))
    b_pad = _round_up(B, tb)
    if b_pad != B:
        # Padding rows use index -1 -> no one-hot match -> zero rows, sliced off below.
        idx = jnp.pad(idx, ((0, b_pad - B), (0, 0)), constant_values=-1)

    out = pl.pallas_call(
        _sparse_arch_kernel,
        out_shape=jax.ShapeDtypeStruct((b_pad, d_pad), jnp.float32),
        grid=(b_pad // tb,),
        in_specs=[
            pl.BlockSpec((tb, F), lambda i: (i, 0)),            # batch-tiled indices
            pl.BlockSpec((n_total, d_pad), lambda i: (0, 0)),   # table resident in VMEM
        ],
        out_specs=pl.BlockSpec((tb, d_pad), lambda i: (i, 0)),
        compiler_params=pltpu.CompilerParams(
            dimension_semantics=("parallel",),                  # megacore sharding on v7x
        ),
    )(idx, table)

    if b_pad != B or d_pad != d_total:
        out = out[:B, :d_total]
    return out


def init_sparse_arch_params(key, sparse_config):
    """Per-feature tables matching torch.nn.Embedding(num+1, dim, padding_idx=0)."""
    tables = {}
    for name in sparse_config:
        key, sub = jax.random.split(key)
        n_rows = sparse_config[name]["num_embeddings"] + 1
        dim = sparse_config[name]["embedding_dim"]
        w = jax.random.normal(sub, (n_rows, dim), jnp.float32)   # torch default: N(0, 1)
        w = w.at[0].set(0.0)                                     # padding_idx=0 row
        tables[name] = w
    return tables


def pack_tables(tables, feature_names, *, lane=128, sublane=8):
    """One-time packing into a block-diagonal (N_total, D_pad) f32 table.

    Each feature's rows are padded to a multiple of 8 (sublane alignment) and the total
    column count to a multiple of 128 (lane-dense output store).  Padding rows/cols are
    zero and never selected, so forward semantics are unchanged.
    """
    rows = [int(tables[k].shape[0]) for k in feature_names]
    dims = [int(tables[k].shape[1]) for k in feature_names]
    rows_pad = [_round_up(r, sublane) for r in rows]
    n_total = sum(rows_pad)
    d_total = sum(dims)
    d_pad = _round_up(d_total, lane)

    packed = jnp.zeros((n_total, d_pad), jnp.float32)
    offsets = []
    r = c = 0
    for k, rp in zip(feature_names, rows_pad):
        w = tables[k].astype(jnp.float32)
        nr, dd = w.shape
        packed = packed.at[r:r + nr, c:c + dd].set(w)
        offsets.append(r)
        r += rp
        c += dd
    return {
        "table": packed,
        "row_offsets": tuple(offsets),   # static Python ints
        "d_total": d_total,
        "d_pad": d_pad,
    }


def sparse_arch_reference(sparse_features, tables, feature_names):
    """Pure-JAX reference (exact gather + hstack) against the ORIGINAL tables."""
    outs = []
    for k in feature_names:
        outs.append(tables[k][sparse_features[k].astype(jnp.int32), :])
    return jnp.concatenate(outs, axis=1)


if __name__ == "__main__":
    key = jax.random.PRNGKey(0)

    sparse_config = {
        "user_id":  {"num_embeddings": 100, "embedding_dim": 32},
        "item_id":  {"num_embeddings": 75,  "embedding_dim": 32},
        "category": {"num_embeddings": 50,  "embedding_dim": 32},
        "geo":      {"num_embeddings": 63,  "embedding_dim": 32},
    }
    feature_names = list(sparse_config.keys())
    batch = 256   # 2 grid steps with the default 128-row batch tile

    kp, kidx = jax.random.split(key)
    tables = init_sparse_arch_params(kp, sparse_config)
    packed = pack_tables(tables, feature_names)

    sparse_features = {}
    for name in feature_names:
        kidx, sub = jax.random.split(kidx)
        # Valid ids: 0 .. num_embeddings (0 is the padding id -> zero embedding).
        sparse_features[name] = jax.random.randint(
            sub, (batch,), 0, sparse_config[name]["num_embeddings"] + 1, jnp.int32
        )

    fwd = jax.jit(functools.partial(
        sparse_arch_forward,
        feature_names=feature_names,
        row_offsets=packed["row_offsets"],
        d_total=packed["d_total"],
        tile_b=128,
    ))
    out = fwd(sparse_features, packed["table"])
    out = jax.block_until_ready(out)

    ref = sparse_arch_reference(sparse_features, tables, feature_names)
    d_total = sum(c["embedding_dim"] for c in sparse_config.values())
    assert out.shape == (batch, d_total), out.shape
    assert jnp.allclose(out, ref, atol=1e-5, rtol=1e-5), "mismatch vs reference"

    print("KERNEL_OK")
</pallas_src>

<mosaic_0001>
module attributes {stable_mosaic.version = 11 : i64} {
  func.func @_sparse_arch_kernel(%arg0: i32, %arg1: memref<128x4xi32, #tpu.memory_space<vmem>>, %arg2: memref<304x128xf32, #tpu.memory_space<vmem>>, %arg3: memref<128x128xf32, #tpu.memory_space<vmem>>) attributes {dimension_semantics = [#tpu.dimension_semantics<parallel>], iteration_bounds = array<i64: 2>, scalar_prefetch = 0 : i64, scratch_operands = 0 : i64, tpu.core_type = #tpu.core_type<tc>, window_params = [{transform_indices = @transform_0, window_bounds = array<i64: 128, 4>}, {pipeline_mode = #tpu.pipeline_mode<synchronous>, transform_indices = @transform_1, window_bounds = array<i64: 304, 128>}, {transform_indices = @transform_2, window_bounds = array<i64: 128, 128>}]} {
    %c0 = arith.constant 0 : index
    %c0_0 = arith.constant 0 : index
    %0 = vector.load %arg1[%c0, %c0_0] : memref<128x4xi32, #tpu.memory_space<vmem>>, vector<128x4xi32>
    %1 = tpu.iota {dimensions = array<i32: 1>} : vector<128x304xi32>
    %cst = arith.constant 0.000000e+00 : f32
    %2 = vector.broadcast %cst : f32 to vector<128x304xf32>
    %3 = vector.extract_strided_slice %0 {offsets = [0, 0], sizes = [128, 1], strides = [1, 1]} : vector<128x4xi32> to vector<128x1xi32>
    %4 = vector.broadcast %3 : vector<128x1xi32> to vector<128x304xi32>
    %5 = arith.cmpi eq, %1, %4 : vector<128x304xi32>
    %6 = arith.extui %5 : vector<128x304xi1> to vector<128x304xi32>
    %7 = arith.sitofp %6 : vector<128x304xi32> to vector<128x304xf32>
    %8 = arith.addf %2, %7 : vector<128x304xf32>
    %9 = vector.extract_strided_slice %0 {offsets = [0, 1], sizes = [128, 1], strides = [1, 1]} : vector<128x4xi32> to vector<128x1xi32>
    %10 = vector.broadcast %9 : vector<128x1xi32> to vector<128x304xi32>
    %11 = arith.cmpi eq, %1, %10 : vector<128x304xi32>
    %12 = arith.extui %11 : vector<128x304xi1> to vector<128x304xi32>
    %13 = arith.sitofp %12 : vector<128x304xi32> to vector<128x304xf32>
    %14 = arith.addf %8, %13 : vector<128x304xf32>
    %15 = vector.extract_strided_slice %0 {offsets = [0, 2], sizes = [128, 1], strides = [1, 1]} : vector<128x4xi32> to vector<128x1xi32>
    %16 = vector.broadcast %15 : vector<128x1xi32> to vector<128x304xi32>
    %17 = arith.cmpi eq, %1, %16 : vector<128x304xi32>
    %18 = arith.extui %17 : vector<128x304xi1> to vector<128x304xi32>
    %19 = arith.sitofp %18 : vector<128x304xi32> to vector<128x304xf32>
    %20 = arith.addf %14, %19 : vector<128x304xf32>
    %21 = vector.extract_strided_slice %0 {offsets = [0, 3], sizes = [128, 1], strides = [1, 1]} : vector<128x4xi32> to vector<128x1xi32>
    %22 = vector.broadcast %21 : vector<128x1xi32> to vector<128x304xi32>
    %23 = arith.cmpi eq, %1, %22 : vector<128x304xi32>
    %24 = arith.extui %23 : vector<128x304xi1> to vector<128x304xi32>
    %25 = arith.sitofp %24 : vector<128x304xi32> to vector<128x304xf32>
    %26 = arith.addf %20, %25 : vector<128x304xf32>
    %c0_1 = arith.constant 0 : index
    %c0_2 = arith.constant 0 : index
    %27 = vector.load %arg2[%c0_1, %c0_2] : memref<304x128xf32, #tpu.memory_space<vmem>>, vector<304x128xf32>
    %cst_3 = arith.constant dense<0.000000e+00> : vector<128x128xf32>
    %28 = tpu.matmul %26, %27, %cst_3 {dimension_numbers = #tpu.dot_dimension_numbers<[1], [0], [0], [1], [0, 0, 1, 1], [], []>, precision = #tpu.contract_precision<fp32>} : vector<128x304xf32>, vector<304x128xf32>, vector<128x128xf32> -> vector<128x128xf32>
    %c0_4 = arith.constant 0 : index
    %c0_5 = arith.constant 0 : index
    %29 = vector.load %arg3[%c0_4, %c0_5] : memref<128x128xf32, #tpu.memory_space<vmem>>, vector<128x128xf32>
    tpu.vector_store %arg3[%c0_4, %c0_5], %28 {strides = array<i32>} : memref<128x128xf32, #tpu.memory_space<vmem>>, vector<128x128xf32>,
    return
  }
  func.func @transform_0(%arg0: i32) -> (i32, i32) {
    %c0_i32 = arith.constant 0 : i32
    %c0_i32_0 = arith.constant 0 : i32
    return %arg0, %c0_i32 : i32, i32
  }
  func.func @transform_1(%arg0: i32) -> (i32, i32) {
    %c0_i32 = arith.constant 0 : i32
    %c0_i32_0 = arith.constant 0 : i32
    %c0_i32_1 = arith.constant 0 : i32
    return %c0_i32, %c0_i32_0 : i32, i32
  }
  func.func @transform_2(%arg0: i32) -> (i32, i32) {
    %c0_i32 = arith.constant 0 : i32
    %c0_i32_0 = arith.constant 0 : i32
    return %arg0, %c0_i32 : i32, i32
  }
}

</mosaic_0001>

<bundles_post_ra>
// kernel: sparse_arch_forward.1
= control target key start
LH: loop header
LB: loop body
LE: loop exit
PB: predicated region body
PF: predicated region fallthrough
CT: control target
= control target key end

     0   :  { %7 = vsyncpa [#allocation3], 0  ;;  %s8130_s0 = inlined_call_operand.vmem [shape: s32[256,4], index: 0, kind: input, shape index: {}]   ;;  %s8131_s1 = inlined_call_operand.vmem [shape: f32[304,128], index: 1, kind: input, shape index: {}]   ;;  %s8132_s2 = inlined_call_operand.hbm [shape: f32[256,128], index: 2, kind: output, shape index: {}]  }
   0x1   :  { %9 = vsyncpa [#allocation3 + $0x1], 0  ;;  %s5376_s9 = smov 0   ;;  %s5378_s10 = smov 0  }
   0x2   :  { %s5380_s11 = smov 0   ;;  %s5382_s12 = smov 0  }
   0x3 LB: > { %s5397_s13 = sadd.s32 4294967295, %s5351_s12   ;;  %s4162_s14 = sadd.s32 4294967294, %s5351_s12   ;;  %s5351_s12 = sphi %s5382_s12, %s8766_s12   ;;  %s5347_s11 = sphi %s5380_s11, %s8765_s11   ;;  %s5343_s10 = sphi %s5378_s10, %s8764_s10   ;;  %s5339_s9 = sphi %s5376_s9, %s8763_s9  }
   0x4   : > { %s5401_s15 = sadd.s32 1, %s5351_s12   ;;  %s69_s16 = sadd.s32 1, %s5347_s11 }
   0x5   : > { %s66_s17 = ssub.s32 %s5351_s12, %s5401_s15  ;;  %p79_p0 = scmp.ne.s32.totalorder %s5347_s11, %s5343_s10 }
   0x6   : > { %p67_p1 = scmp.eq.s32.totalorder %s66_s17, 0  ;;  %p80_p2 = scmp.eq.s32.totalorder %s5397_s13, 1 }
   0x7   : > { %p85_p3 = scmp.ne.s32.totalorder %s5343_s10, %s5339_s9  ;;  %p86_p4 = scmp.eq.s32.totalorder %s4162_s14, 1 }
   0x8   : > { %s5412_s18 = scalar_select %p67_p1, %s5347_s11, %s69_s16  }
   0x9   : > { %p5414_p5 = por %p80_p2, %p79_p0  ;;  %p5418_p6 = por %p86_p4, %p85_p3 }
   0xa   : > { %p4165_p7 = scmp.ge.s32.totalorder %s5351_s12, 1  ;;  %p116_p8 = scmp.lt.s32.totalorder %s5351_s12, 3 }
   0xc   : > { %p117_p9 = pnand %p4165_p7, %p116_p8 }
   0xe   : > { %120 = sbr.rel (%p117_p9) target bundleno = 808 (0x328), region = 28 }
  0x13   : > { %s4167_s21 = sshll.u32 %s5397_s13, 4  ;;  %v1156_v0 = vld [vmem:[%s8131_s1 + $0xf8] sm:$0xff]  ;;  %v8153_v1 = vmov 3   ;;  %v8151_v2 = vmov 2   ;;  %v1155_v5 = vld [vmem:[%s8131_s1 + $0xf0] sm:$0xff]  ;;  %v1154_v10 = vld [vmem:[%s8131_s1 + $0xe8] sm:$0xff] }
  0x14   : > { %5244 = vset.pattern.permute.xlu0 %v8153_v1  ;;  %5241 = vset.pattern.permute.xlu1 %v8151_v2  ;;  %p139_p10 = scmp.lt.s32.totalorder %s4167_s21, 31  ;;  %v5430_v3 = vand.u32 4294901760, %v1156_v0  ;;  %v1140_v4 = vld [vmem:[%s8131_s1 + $0x78] sm:$0xff]  ;;  %v1139_v6 = vld [vmem:[%s8131_s1 + $0x70] sm:$0xff]  ;;  %v5443_v8 = vand.u32 4294901760, %v1155_v5  ;;  %v5453_v12 = vand.u32 4294901760, %v1154_v10 }
  0x15   : > { %v5441_v7 = vand.u32 4294901760, %v1140_v4  ;;  %v5445_v9 = vand.u32 4294901760, %v1139_v6  ;;  %v1138_v16 = vld [vmem:[%s8131_s1 + $0x68] sm:$0xff]  ;;  %v1153_v19 = vld [vmem:[%s8131_s1 + $0xe0] sm:$0xff]  ;;  %v1152_v46 = vld [vmem:[%s8131_s1 + $0xd8] sm:$0xff]  ;;  %v8155_v49 = vmov 0  }
  0x16   : > { %8366 = vst [vmem:[#allocation5_spill] sm:$0xff] %v5430_v3  ;;  %s8768_s21 = smov (!%p139_p10, %s4167_s21), 31  ;;  %v5451_v11 = vsub.f32 %v1156_v0, %v5430_v3  ;;  %4367 = vmatprep.subr.mxu0 %v5430_v3  ;;  %v5460_v14 = vsub.f32 %v1155_v5, %v5443_v8  ;;  %v5471_v18 = vsub.f32 %v1154_v10, %v5453_v12  ;;  %v5485_v23 = vand.u32 4294901760, %v1138_v16  ;;  %v1137_v24 = vld [vmem:[%s8131_s1 + $0x60] sm:$0xff]  ;;  %v1136_v47 = vld [vmem:[%s8131_s1 + $0x58] sm:$0xff]  ;;  %v1151_v48 = vld [vmem:[%s8131_s1 + $0xd0] sm:$0xff] }
  0x17   : > { %v5457_v13 = vsub.f32 %v1140_v4, %v5441_v7  ;;  %v5463_v15 = vsub.f32 %v1139_v6, %v5445_v9  ;;  %4368 = vmatpush3.msra.mxu0 %v5441_v7  ;;  %s4168_s6 = sshll.u32 %s8768_s21, 3  ;;  %v5498_v28 = vand.u32 4294901760, %v1153_v19  ;;  %v5500_v29 = vand.u32 4294901760, %v1137_v24  ;;  %v1135_v54 = vld [vmem:[%s8131_s1 + $0x50] sm:$0xff]  ;;  %v1150_v55 = vld [vmem:[%s8131_s1 + $0xc8] sm:$0xff]  ;;  %v1149_v4 = vld [vmem:[%s8131_s1 + $0xc0] sm:$0xff] }
  0x18   : > { %8367 = vst [vmem:[#allocation6_spill] sm:$0xff] %v5451_v11  ;;  %v8148_v17 = vand.u32 4294901760, %v5451_v11  ;;  %4369 = vmatprep.subr.mxu0 %v5443_v8  ;;  %s5480_s17 = scalar_lea.vmem %s8130_s0, %s4168_s6  ;;  %v8143_v21 = vand.u32 4294901760, %v5460_v14  ;;  %v8141_v27 = vand.u32 4294901760, %v5471_v18  ;;  %v5521_v36 = vsub.f32 %v1138_v16, %v5485_v23  ;;  %v1134_v0 = vld [vmem:[%s8131_s1 + $0x48] sm:$0xff]  ;;  %s135_s28 = sand.u32 1, %s5343_s10  }
  0x19   : > { %v8147_v20 = vand.u32 4294901760, %v5457_v13  ;;  %v8142_v22 = vand.u32 4294901760, %v5463_v15  ;;  %4370 = vmatpush3.msra.mxu0 %v5445_v9  ;;  %v5492_v25 = vld [vmem:[%s5480_s17] sm:$0xff]  ;;  %v5515_v33 = vld [vmem:[%s5480_s17 + $0x18] sm:$0xff]  ;;  %v5524_v37 = vsub.f32 %v1153_v19, %v5498_v28  ;;  %v5528_v38 = vld [vmem:[%s5480_s17 + $0x8] sm:$0xff]  ;;  %v5531_v42 = vsub.f32 %v1137_v24, %v5500_v29  ;;  %s4166_s29 = sshll.u32 %s135_s28, 7 }
  0x1a   : > { %v1665_v26 = vsub.f32 %v5451_v11, %v8148_v17  ;;  %4371 = vmatprep.subr.mxu0 %v5453_v12  ;;  %886 = vperm.xlu0 %5244, %v5492_v25   ;;  %v1672_v31 = vsub.f32 %v5460_v14, %v8143_v21  ;;  %v1679_v35 = vsub.f32 %v5471_v18, %v8141_v27  ;;  %v8140_v44 = vand.u32 4294901760, %v5521_v36  ;;  %v1133_v19 = vld [vmem:[%s8131_s1 + $0x40] sm:$0xff]  ;;  %s8015_s30 = scalar_lea.vmem [#allocation2], %s4166_s29  ;;  %s4366_s3 = sshll.u32 %s5397_s13, 11 }
  0x1b   : > { %646 = vperm.xlu1 %5241, %v5492_v25   ;;  %v1553_v30 = vsub.f32 %v5457_v13, %v8147_v20  ;;  %v1560_v32 = vsub.f32 %v5463_v15, %v8142_v22  ;;  %4372 = vmatpush3.msra.mxu0 %v5485_v23  ;;  %8368 = vst [vmem:[#allocation7_spill] sm:$0xff] %v5531_v42  ;;  %v8139_v45 = vand.u32 4294901760, %v5524_v37  ;;  %v8138_v50 = vand.u32 4294901760, %v5531_v42  ;;  %s4100_s4 = sshll.u32 %s8015_s30, 4  ;;  %s8090_s13 = scalar_lea.sflag [#allocation3], %s135_s28  ;;  %s8084_s4 = int_to_ptr.vmem [resolvable:$true] %s4100_s4 }
  0x1c   : > { %v1666_v34 = vand.u32 4294901760, %v1665_v26  ;;  %v1673_v40 = vand.u32 4294901760, %v1672_v31  ;;  %4373 = vmatprep.subr.mxu0 %v5498_v28  ;;  %v1680_v43 = vand.u32 4294901760, %v1679_v35  ;;  %v5549_v51 = vand.u32 4294901760, %v1152_v46  ;;  %s5291_s7 = scalar_lea.vmem %s8084_s4, 2048  ;;  %s5358_s8 = smov [#allocation2]  }
  0x1d   : > { %v1554_v39 = vand.u32 4294901760, %v1553_v30  ;;  %v1561_v41 = vand.u32 4294901760, %v1560_v32  ;;  %4374 = vmatpush3.msra.mxu0 %v5500_v29  ;;  %v5551_v52 = vand.u32 4294901760, %v1136_v47  ;;  %v5553_v53 = vand.u32 4294901760, %v1151_v48  ;;  %p5292_p11 = scmp.ne.s32.totalorder %s8084_s4, %s5291_s7  ;;  %s5295_s14 = sshll.u32 %s5358_s8, 4  ;;  %s5296_s14 = int_to_ptr.vmem [resolvable:$false] %s5295_s14 }
  0x1e   : > { %4447 = vmatprep.subr.mxu1 %v1666_v34  ;;  %895 = vperm.xlu0 %5244, %v5515_v33   ;;  %v1567_v56 = vsub.f32 %v5521_v36, %v8140_v44  ;;  %v1686_v57 = vsub.f32 %v5524_v37, %v8139_v45  ;;  %v5568_v58 = vand.u32 4294901760, %v1135_v54  ;;  %v5570_v59 = vand.u32 4294901760, %v1150_v55  ;;  %s5297_s16 = scalar_lea.vmem %s5296_s14, 4096  ;;  %p5298_p0 = scmp.lt.s32.totalorder %s8084_s4, %s5296_s14 }
  0x1f   : > { %5242 = vset.pattern.permute.xlu1 %v8155_v49  ;;  %8369 = vst [vmem:[#allocation8_spill] sm:$0xff] %v5551_v52  ;;  %8370 = vst [vmem:[#allocation9_spill] sm:$0xff] %v5553_v53  ;;  %4448 = vmatpush3.msra.mxu1 %v1554_v39  ;;  %v1574_v60 = vsub.f32 %v5531_v42, %v8138_v50  ;;  %v5576_v61 = vsub.f32 %v1152_v46, %v5549_v51  ;;  %v8149_v24 = vmov 1   ;;  %v5608_v39 = vand.u32 4294901760, %v1134_v0  ;;  %p5293_p12 = pnand %p5292_p11, %p5414_p5  ;;  %p5299_p1 = scmp.lt.s32.totalorder %s5297_s16, %s5291_s7 }
  0x20   : > { %169 = vperm.xlu1 %5242, %v5528_v38   ;;  %8371 = vst [vmem:[#allocation10_spill] sm:$0xff] %v5568_v58  ;;  %8372 = vst [vmem:[#allocation11_spill] sm:$0xff] %v5570_v59  ;;  %4449 = vmatprep.subr.mxu1 %v1673_v40  ;;  %v5579_v62 = vsub.f32 %v1136_v47, %v5551_v52  ;;  %v5582_v63 = vsub.f32 %v1151_v48, %v5553_v53  ;;  %v1568_v5 = vand.u32 4294901760, %v1567_v56 }
  0x21   : > { %8373 = vst [vmem:[#allocation12_spill] sm:$0xff] %v5576_v61  ;;  %4450 = vmatpush3.msra.mxu1 %v1561_v41  ;;  %v1687_v6 = vand.u32 4294901760, %v1686_v57  ;;  %v5591_v10 = vsub.f32 %v1135_v54, %v5568_v58  ;;  %v5594_v16 = vsub.f32 %v1150_v55, %v5570_v59  ;;  %4375 = vmatprep.subr.mxu0 %v5549_v51  ;;  %v1575_v26 = vand.u32 4294901760, %v1574_v60  ;;  %v5614_v41 = vld [vmem:[%s5480_s17 + $0x10] sm:$0xff]  ;;  %v1148_v60 = vld [vmem:[%s8131_s1 + $0xb8] sm:$0xff]  ;;  %p5294_p13 = pneg %p5293_p12  ;;  %p5300_p2 = por %p5299_p1, %p5298_p0 }
  0x22   : > { %8374 = vst [vmem:[#allocation13_spill] sm:$0xff] %v5579_v62  ;;  %8375 = vst [vmem:[#allocation14_spill] sm:$0xff] %v5582_v63  ;;  %5253 = vset.pattern.permute.xlu0 %v8149_v24  ;;  %4451 = vmatprep.subr.mxu1 %v1680_v43  ;;  %v8137_v30 = vand.u32 4294901760, %v5576_v61  ;;  %v8136_v31 = vand.u32 4294901760, %v5579_v62  ;;  %v8135_v32 = vand.u32 4294901760, %v5582_v63  ;;  %v5610_v40 = vand.u32 4294901760, %v1149_v4 }
  0x23   : > { %8376 = vst [vmem:[#allocation15_spill] sm:$0xff] %v5591_v10  ;;  %8377 = vst [vmem:[#allocation16_spill] sm:$0xff] %v5594_v16  ;;  %406 = vperm.xlu0 %5253, %v5492_v25   ;;  %v8134_v34 = vand.u32 4294901760, %v5591_v10  ;;  %v8133_v35 = vand.u32 4294901760, %v5594_v16  ;;  %4452 = vmatpush3.msra.mxu1 %v1568_v5  ;;  %v5625_v48 = vand.u32 4294901760, %v1133_v19  ;;  %v5634_v56 = vsub.f32 %v1134_v0, %v5608_v39  ;;  %v1132_v5 = vld [vmem:[%s8131_s1 + $0x38] sm:$0xff]  ;;  %p5301_p3 = pnand %p5300_p2, %p5294_p13 }
  0x24   : > { %5243 = vset.pattern.permute.xlu1 %v8149_v24  ;;  %8378 = vst [vmem:[#allocation17_spill] sm:$0xff] %v5608_v39  ;;  %8379 = vst [vmem:[#allocation18_spill] sm:$0xff] %v5610_v40  ;;  %v1693_v43 = vsub.f32 %v5576_v61, %v8137_v30  ;;  %v1581_v46 = vsub.f32 %v5579_v62, %v8136_v31  ;;  %v1700_v47 = vsub.f32 %v5582_v63, %v8135_v32  ;;  %v1131_v32 = vld [vmem:[%s8131_s1 + $0x30] sm:$0xff]  ;;  %v1146_v31 = vld [vmem:[%s8131_s1 + $0xa8] sm:$0xff] }
  0x25   : > { %409 = vperm.xlu1 %5243, %v5528_v38   ;;  %8380 = vst [vmem:[#allocation19_spill] sm:$0xff] %v5625_v48  ;;  %4453 = vmatprep.subr.mxu1 %v1687_v6  ;;  %v1588_v54 = vsub.f32 %v5591_v10, %v8134_v34  ;;  %v1707_v55 = vsub.f32 %v5594_v16, %v8133_v35  ;;  %8381 = vst [vmem:[#allocation20_spill] sm:$0xff] %v5634_v56  ;;  %v1147_v6 = vld [vmem:[%s8131_s1 + $0xb0] sm:$0xff]  ;;  %v5667_v50 = vand.u32 4294901760, %v1148_v60  ;;  %v8404_v16 = vmov 0  }
  0x26   : > { %v5637_v57 = vsub.f32 %v1149_v4, %v5610_v40  ;;  %4454 = vmatpush3.msra.mxu1 %v1575_v26  ;;  %v1694_v35 = vand.u32 4294901760, %v1693_v43  ;;  %v1582_v0 = vand.u32 4294901760, %v1581_v46  ;;  %v1701_v34 = vand.u32 4294901760, %v1700_v47  ;;  %4376 = vmatpush3.msra.mxu0 %v5551_v52 }
  0x27   : > { %v5649_v4 = vsub.f32 %v1133_v19, %v5625_v48  ;;  %412 = vperm.xlu0 %5253, %v5614_v41   ;;  %v1589_v30 = vand.u32 4294901760, %v1588_v54  ;;  %v1708_v26 = vand.u32 4294901760, %v1707_v55  ;;  %v8144_v43 = vand.u32 4294901760, %v5634_v56  ;;  %4377 = vmatprep.subr.mxu0 %v5553_v53  ;;  %v5664_v19 = vld [vmem:[%s5480_s17 + $0x28] sm:$0xff]  ;;  %8384 = vst [vmem:[#allocation23_spill] sm:$0xff] %v5667_v50 }
  0x28   : > { %8382 = vst [vmem:[#allocation21_spill] sm:$0xff] %v5637_v57  ;;  %v8145_v46 = vand.u32 4294901760, %v5637_v57  ;;  %4455 = vmatprep.subr.mxu1 %v1694_v35  ;;  %v5669_v45 = vand.u32 4294901760, %v1132_v5  ;;  %v5671_v44 = vand.u32 4294901760, %v1147_v6  ;;  %v5680_v35 = vand.u32 4294901760, %v1131_v32  ;;  %4378 = vmatpush3.msra.mxu0 %v5568_v58 }
  0x29   : > { %8383 = vst [vmem:[#allocation22_spill] sm:$0xff] %v5649_v4  ;;  %5245 = vset.pattern.permute.xlu1 %v8151_v2  ;;  %v8146_v47 = vand.u32 4294901760, %v5649_v4  ;;  %4456 = vmatpush3.msra.mxu1 %v1582_v0  ;;  %v1595_v54 = vsub.f32 %v5634_v56, %v8144_v43  ;;  %v5682_v27 = vand.u32 4294901760, %v1146_v31  ;;  %v5688_v0 = vsub.f32 %v1148_v60, %v5667_v50 }
  0x2a   : > { %8385 = vst [vmem:[#allocation24_spill] sm:$0xff] %v5669_v45  ;;  %8386 = vst [vmem:[#allocation25_spill] sm:$0xff] %v5671_v44  ;;  %649 = vperm.xlu1 %5245, %v5528_v38   ;;  %v1714_v55 = vsub.f32 %v5637_v57, %v8145_v46  ;;  %4457 = vmatprep.subr.mxu1 %v1701_v34  ;;  %v5691_v21 = vsub.f32 %v1132_v5, %v5669_v45  ;;  %v1130_v46 = vld [vmem:[%s8131_s1 + $0x28] sm:$0xff]  ;;  %v1145_v34 = vld [vmem:[%s8131_s1 + $0xa0] sm:$0xff] }
  0x2b   : > { %8387 = vst [vmem:[#allocation26_spill] sm:$0xff] %v5680_v35  ;;  %8388 = vst [vmem:[#allocation27_spill] sm:$0xff] %v5682_v27  ;;  %v1602_v22 = vsub.f32 %v5649_v4, %v8146_v47  ;;  %v5694_v43 = vsub.f32 %v1147_v6, %v5671_v44  ;;  %421 = vperm.xlu0 %5253, %v5664_v19   ;;  %4458 = vmatpush3.msra.mxu1 %v1589_v30  ;;  %v1596_v47 = vand.u32 4294901760, %v1595_v54  ;;  %v5710_v6 = vld [vmem:[%s5480_s17 + $0x40] sm:$0xff] }
  0x2c   : > { %8389 = vst [vmem:[#allocation28_spill] sm:$0xff] %v5688_v0  ;;  %8390 = vst [vmem:[#allocation29_spill] sm:$0xff] %v5691_v21  ;;  %v1715_v60 = vand.u32 4294901760, %v1714_v55  ;;  %v5704_v20 = vsub.f32 %v1131_v32, %v5680_v35  ;;  %v5707_v5 = vsub.f32 %v1146_v31, %v5682_v27  ;;  %4459 = vmatprep.subr.mxu1 %v1708_v26  ;;  %v8157_v24 = vand.u32 4294901760, %v5688_v0  ;;  %v1129_v30 = vld [vmem:[%s8131_s1 + $0x20] sm:$0xff] }
  0x2d   : > { %8391 = vst [vmem:[#allocation30_spill] sm:$0xff] %v5694_v43  ;;  %v1603_v17 = vand.u32 4294901760, %v1602_v22  ;;  %v8162_v2 = vand.u32 4294901760, %v5691_v21  ;;  %v8160_v1 = vand.u32 4294901760, %v5694_v43  ;;  %4460 = vmatpush3.msra.mxu1 %v1596_v47  ;;  %v5722_v22 = vand.u32 4294901760, %v1130_v46  ;;  %4379 = vmatprep.subr.mxu0 %v5570_v59 }
  0x2e   : > { %8392 = vst [vmem:[#allocation31_spill] sm:$0xff] %v5704_v20  ;;  %8393 = vst [vmem:[#allocation32_spill] sm:$0xff] %v5707_v5  ;;  %5246 = vset.pattern.permute.xlu1 %v8155_v49  ;;  %v8161_v31 = vand.u32 4294901760, %v5704_v20  ;;  %v8165_v32 = vand.u32 4294901760, %v5707_v5  ;;  %v5724_v26 = vand.u32 4294901760, %v1145_v34  ;;  %4461 = vmatprep.subr.mxu1 %v1715_v60  ;;  %v1721_v54 = vsub.f32 %v5688_v0, %v8157_v24 }
  0x2f   : > { %8394 = vst [vmem:[#allocation33_spill] sm:$0xff] %v5722_v22  ;;  %172 = vperm.xlu1 %5246, %v5614_v41   ;;  %v1609_v55 = vsub.f32 %v5691_v21, %v8162_v2  ;;  %v1728_v47 = vsub.f32 %v5694_v43, %v8160_v1  ;;  %430 = vperm.xlu0 %5253, %v5710_v6   ;;  %v5746_v0 = vand.u32 4294901760, %v1129_v30  ;;  %v1144_v1 = vld [vmem:[%s8131_s1 + $0x98] sm:$0xff]  ;;  %v1142_v43 = vld [vmem:[%s8131_s1 + $0x88] sm:$0xff] }
  0x30   : > { %8395 = vst [vmem:[#allocation34_spill] sm:$0xff] %v5724_v26  ;;  %4462 = vmatpush3.msra.mxu1 %v1603_v17  ;;  %v1616_v49 = vsub.f32 %v5704_v20, %v8161_v31  ;;  %v1735_v60 = vsub.f32 %v5707_v5, %v8165_v32  ;;  %v5744_v24 = vsub.f32 %v1130_v46, %v5722_v22  ;;  %v1128_v17 = vld [vmem:[%s8131_s1 + $0x18] sm:$0xff]  ;;  %v1143_v31 = vld [vmem:[%s8131_s1 + $0x90] sm:$0xff]  ;;  %v1722_v2 = vand.u32 4294901760, %v1721_v54 }
  0x31   : > { %8397 = vst [vmem:[#allocation36_spill] sm:$0xff] %v5746_v0  ;;  %v1610_v20 = vand.u32 4294901760, %v1609_v55  ;;  %v1729_v32 = vand.u32 4294901760, %v1728_v47  ;;  %v5759_v46 = vsub.f32 %v1145_v34, %v5724_v26  ;;  %v1127_v5 = vld [vmem:[%s8131_s1 + $0x10] sm:$0xff]  ;;  %4380 = vmatpush3.msra.mxu0 %v5608_v39  ;;  %v5770_v55 = vsub.f32 %v1129_v30, %v5746_v0  ;;  %v1126_v34 = vld [vmem:[%s8131_s1 + $0x8] sm:$0xff] }
  0x32   : > { %8396 = vst [vmem:[#allocation35_spill] sm:$0xff] %v5744_v24  ;;  %v1617_v21 = vand.u32 4294901760, %v1616_v49  ;;  %v1736_v4 = vand.u32 4294901760, %v1735_v60  ;;  %v8188_v54 = vand.u32 4294901760, %v5744_v24  ;;  %v8400_v47 = vmov 3   ;;  %4463 = vmatprep.subr.mxu1 %v1722_v2  ;;  %4381 = vmatprep.subr.mxu0 %v5610_v40 }
  0x33   : > { %8398 = vst [vmem:[#allocation37_spill] sm:$0xff] %v5759_v46  ;;  %8399 = vst [vmem:[#allocation38_spill] sm:$0xff] %v5770_v55  ;;  %5247 = vset.pattern.permute.xlu1 %v8400_v47  ;;  %v8191_v57 = vand.u32 4294901760, %v5759_v46  ;;  %v5777_v56 = vand.u32 4294901760, %v1144_v1  ;;  %v5779_v49 = vand.u32 4294901760, %v1128_v17  ;;  %v5781_v60 = vand.u32 4294901760, %v1143_v31  ;;  %5264 = vset.pattern.permute.xlu0 %v8404_v16 }
  0x34   : > { %889 = vperm.xlu1 %5247, %v5528_v38   ;;  %v1623_v30 = vsub.f32 %v5744_v24, %v8188_v54  ;;  %v5789_v63 = vand.u32 4294901760, %v1127_v5  ;;  %v5791_v2 = vand.u32 4294901760, %v1142_v43  ;;  %166 = vperm.xlu0 %5264, %v5492_v25   ;;  %v5803_v54 = vand.u32 4294901760, %v1126_v34 }
  0x35   : > { %8401 = vst [vmem:[#allocation39_spill] sm:$0xff] %v5777_v56  ;;  %8402 = vst [vmem:[#allocation40_spill] sm:$0xff] %v5779_v49  ;;  %4464 = vmatpush3.msra.mxu1 %v1610_v20  ;;  %v1742_v39 = vsub.f32 %v5759_v46, %v8191_v57  ;;  %v5798_v62 = vsub.f32 %v1144_v1, %v5777_v56  ;;  %v5801_v38 = vsub.f32 %v1128_v17, %v5779_v49  ;;  %v1141_v1 = vld [vmem:[%s8131_s1 + $0x80] sm:$0xff] }
  0x36   : > { %8403 = vst [vmem:[#allocation41_spill] sm:$0xff] %v5781_v60  ;;  %8405 = vst [vmem:[#allocation42_spill] sm:$0xff] %v5789_v63  ;;  %4465 = vmatprep.subr.mxu1 %v1729_v32  ;;  %v1624_v10 = vand.u32 4294901760, %v1623_v30  ;;  %v8410_v24 = vand.u32 4294901760, %v5770_v55  ;;  %v5810_v25 = vsub.f32 %v1143_v31, %v5781_v60  ;;  %v5813_v57 = vsub.f32 %v1127_v5, %v5789_v63  ;;  %v1125_v5 = vld [vmem:[%s8131_s1] sm:$0xff] }
  0x37   : > { %8406 = vst [vmem:[#allocation43_spill] sm:$0xff] %v5791_v2  ;;  %8407 = vst [vmem:[#allocation44_spill] sm:$0xff] %v5798_v62  ;;  %4466 = vmatpush3.msra.mxu1 %v1617_v21  ;;  %v1743_v17 = vand.u32 4294901760, %v1742_v39  ;;  %4382 = vmatpush3.msra.mxu0 %v5625_v48  ;;  %v8414_v31 = vmov 2   ;;  %v5831_v32 = vsub.f32 %v1126_v34, %v5803_v54  ;;  %v8417_v46 = vand.u32 4294901760, %v5801_v38  ;;  %v5845_v39 = vld [vmem:[%s5480_s17 + $0x30] sm:$0xff] }
  0x38   : > { %8408 = vst [vmem:[#allocation45_spill] sm:$0xff] %v5801_v38  ;;  %8409 = vst [vmem:[#allocation46_spill] sm:$0xff] %v5803_v54  ;;  %v1630_v20 = vsub.f32 %v5770_v55, %v8410_v24  ;;  %v5822_v24 = vsub.f32 %v1142_v43, %v5791_v2  ;;  %5248 = vset.pattern.permute.xlu1 %v8414_v31  ;;  %4467 = vmatprep.subr.mxu1 %v1736_v4  ;;  %v8416_v43 = vand.u32 4294901760, %v5798_v62 }
  0x39   : > { %8411 = vst [vmem:[#allocation47_spill] sm:$0xff] %v5810_v25  ;;  %8412 = vst [vmem:[#allocation48_spill] sm:$0xff] %v5813_v57  ;;  %175 = vperm.xlu0 %5264, %v5515_v33   ;;  %652 = vperm.xlu1 %5248, %v5614_v41   ;;  %v1637_v4 = vsub.f32 %v5801_v38, %v8417_v46  ;;  %v5842_v21 = vand.u32 4294901760, %v1141_v1  ;;  %v8419_v34 = vand.u32 4294901760, %v5810_v25  ;;  %v8420_v40 = vand.u32 4294901760, %v5813_v57 }
  0x3a   : > { %8413 = vst [vmem:[#allocation49_spill] sm:$0xff] %v5822_v24  ;;  %v1631_v55 = vand.u32 4294901760, %v1630_v20  ;;  %8415 = vst [vmem:[#allocation50_spill] sm:$0xff] %v5831_v32  ;;  %v1749_v30 = vsub.f32 %v5798_v62, %v8416_v43  ;;  %4468 = vmatpush3.msra.mxu1 %v1624_v10  ;;  %4383 = vmatprep.subr.mxu0 %v5667_v50  ;;  %v8208_v62 = vand.u32 4294901760, %v5831_v32  ;;  %v5855_v46 = vand.u32 4294901760, %v1125_v5 }
  0x3b   : > { %8418 = vst [vmem:[#allocation51_spill] sm:$0xff] %v5842_v21  ;;  %v1756_v48 = vsub.f32 %v5810_v25, %v8419_v34  ;;  %v1644_v43 = vsub.f32 %v5813_v57, %v8420_v40  ;;  %4469 = vmatprep.subr.mxu1 %v1743_v17  ;;  %4384 = vmatpush3.msra.mxu0 %v5669_v45  ;;  %v1638_v10 = vand.u32 4294901760, %v1637_v4  ;;  %v8422_v38 = vand.u32 4294901760, %v5822_v24 }
  0x3c   : > { %8421 = vst [vmem:[#allocation52_spill] sm:$0xff] %v5855_v46  ;;  %v1750_v20 = vand.u32 4294901760, %v1749_v30  ;;  %v5862_v34 = vsub.f32 %v1141_v1, %v5842_v21  ;;  %4470 = vmatpush3.msra.mxu1 %v1631_v55  ;;  %4385 = vmatprep.subr.mxu0 %v5671_v44  ;;  %v1651_v17 = vsub.f32 %v5831_v32, %v8208_v62  ;;  %v8425_v4 = vmov 1   ;;  %v5876_v55 = vld [vmem:[%s5480_s17 + $0x48] sm:$0xff] }
  0x3d   : > { %v1763_v50 = vsub.f32 %v5822_v24, %v8422_v38  ;;  %v1757_v40 = vand.u32 4294901760, %v1756_v48  ;;  %v5869_v30 = vsub.f32 %v1125_v5, %v5855_v46  ;;  %184 = vperm.xlu0 %5264, %v5845_v39   ;;  %5249 = vset.pattern.permute.xlu1 %v8425_v4  ;;  %v1645_v57 = vand.u32 4294901760, %v1644_v43 }
  0x3e   : > { %8423 = vst [vmem:[#allocation53_spill] sm:$0xff] %v5862_v34  ;;  %v8210_v38 = vand.u32 4294901760, %v5862_v34  ;;  %415 = vperm.xlu1 %5249, %v5515_v33   ;;  %4471 = vmatprep.subr.mxu1 %v1750_v20  ;;  %v1652_v43 = vand.u32 4294901760, %v1651_v17  ;;  %v5890_v20 = vld [vmem:[%s5480_s17 + $0x60] sm:$0xff] }
  0x3f   : > { %8424 = vst [vmem:[#allocation54_spill] sm:$0xff] %v5869_v30  ;;  %v1764_v48 = vand.u32 4294901760, %v1763_v50  ;;  %v8209_v1 = vand.u32 4294901760, %v5869_v30  ;;  %4472 = vmatpush3.msra.mxu1 %v1638_v10  ;;  %4386 = vmatpush3.msra.mxu0 %v5680_v35 }
  0x40   : > { %v1770_v5 = vsub.f32 %v5862_v34, %v8210_v38  ;;  %4473 = vmatprep.subr.mxu1 %v1757_v40  ;;  %4387 = vmatprep.subr.mxu0 %v5682_v27  ;;  %v149_v40 = vld [vmem:[%s5480_s17 + $0x20] sm:$0xff] }
  0x41   : > { %v1658_v62 = vsub.f32 %v5869_v30, %v8209_v1  ;;  %193 = vperm.xlu0 %5264, %v5876_v55   ;;  %4474 = vmatpush3.msra.mxu1 %v1645_v57  ;;  %v5940_v57 = vld [vmem:[%s5480_s17 + $0x78] sm:$0xff] }
  0x42   : > { %v1771_v50 = vand.u32 4294901760, %v1770_v5  ;;  %5250 = vset.pattern.permute.xlu1 %v8400_v47  ;;  %4475 = vmatprep.subr.mxu1 %v1764_v48 }
  0x43   : > { %v1659_v10 = vand.u32 4294901760, %v1658_v62  ;;  %892 = vperm.xlu1 %5250, %v5614_v41   ;;  %4388 = vmatpush3.msra.mxu0 %v5722_v22  ;;  %v5933_v62 = vld [vmem:[%s5480_s17 + $0x70] sm:$0xff]  ;;  %v152_v41 = vld [vmem:[%s5480_s17 + $0x38] sm:$0xff] }
  0x44   : > { %4476 = vmatpush3.msra.mxu1 %v1652_v43  ;;  %4389 = vmatprep.subr.mxu0 %v5724_v26 }
  0x45   : > { %202 = vperm.xlu0 %5264, %v5890_v20   ;;  %4477 = vmatprep.subr.mxu1 %v1771_v50 }
  0x46   : > { %4390 = vmatpush3.msra.mxu0 %v5746_v0  ;;  %4478 = vmatpush3.msra.mxu1 %v1659_v10 }
  0x47   : > { %5251 = vset.pattern.permute.xlu1 %v8404_v16  ;;  %4391 = vmatprep.subr.mxu0 %v5777_v56 }
  0x48   : > { %178 = vperm.xlu1 %5251, %v149_v40   ;;  %4392 = vmatpush3.msra.mxu0 %v5779_v49 }
  0x49   : > { %5275 = vset.pattern.permute.xlu0 %v8414_v31  ;;  %4393 = vmatprep.subr.mxu0 %v5781_v60 }
  0x4a   : > { %655 = vperm.xlu0 %5275, %v5515_v33   ;;  %4394 = vmatpush3.msra.mxu0 %v5789_v63  ;;  %v5927_v33 = vld [vmem:[%s5480_s17 + $0x58] sm:$0xff] }
  0x4b   : > { %4395 = vmatprep.subr.mxu0 %v5791_v2  ;;  %4607 = vmatprep.subr.mxu1 %v5430_v3 }
  0x4c   : > { %5252 = vset.pattern.permute.xlu1 %v8425_v4  ;;  %4396 = vmatpush3.msra.mxu0 %v5803_v54 }
  0x4d   : > { %418 = vperm.xlu1 %5252, %v149_v40   ;;  %4397 = vmatprep.subr.mxu0 %v5842_v21 }
  0x4e   : > { %664 = vperm.xlu0 %5275, %v5845_v39   ;;  %4398 = vmatpush3.msra.mxu0 %v5855_v46 }
  0x4f   : > { %4527 = vmatprep.subr.mxu0 %v5451_v11 }
  0x51   : > { %5254 = vset.pattern.permute.xlu1 %v8414_v31 }
  0x52   : > { %658 = vperm.xlu1 %5254, %v149_v40   ;;  %673 = vperm.xlu0 %5275, %v5876_v55  }
  0x56   : > { %5255 = vset.pattern.permute.xlu1 %v8404_v16  ;;  %682 = vperm.xlu0 %5275, %v5890_v20  }
  0x57   : > { %181 = vperm.xlu1 %5255, %v5664_v19  }
  0x5a   : > { %5278 = vset.pattern.permute.xlu0 %v8400_v47 }
  0x5b   : > { %5256 = vset.pattern.permute.xlu1 %v8400_v47  ;;  %904 = vperm.xlu0 %5278, %v5845_v39  }
  0x5c   : > { %898 = vperm.xlu1 %5256, %v149_v40   ;;  %v8264_v40 = vmov 0.0  }
  0x5f   : > { %913 = vperm.xlu0 %5278, %v5876_v55  }
  0x60   : > { %5257 = vset.pattern.permute.xlu1 %v8414_v31 }
  0x61   : > { %661 = vperm.xlu1 %5257, %v5664_v19  }
  0x63   : > { %922 = vperm.xlu0 %5278, %v5890_v20  }
  0x65   : > { %5258 = vset.pattern.permute.xlu1 %v8425_v4 }
  0x66   : > { %424 = vperm.xlu1 %5258, %v5845_v39   ;;  %v161_v39 = vlaneseq }
  0x67   : > { %5281 = vset.pattern.permute.xlu0 %v8425_v4 }
  0x68   : > { %439 = vperm.xlu0 %5281, %v5927_v33   ;;  %v5961_v5 = vand.u32 127, %v161_v39 }
  0x6a   : > { %5259 = vset.pattern.permute.xlu1 %v8400_v47  ;;  %v5984_v11 = vadd.s32 128, %v5961_v5 }
  0x6b   : > { %901 = vperm.xlu1 %5259, %v5664_v19   ;;  %v155_v19 = vld [vmem:[%s5480_s17 + $0x50] sm:$0xff] }
  0x6c   : > { %448 = vperm.xlu0 %5281, %v5933_v62  }
  0x6f   : > { %5260 = vset.pattern.permute.xlu1 %v8404_v16 }
  0x70   : > { %187 = vperm.xlu1 %5260, %v152_v41   ;;  %5286 = vset.pattern.permute.xlu0 %v8404_v16 }
  0x71   : > { %211 = vperm.xlu0 %5286, %v5940_v57  }
  0x74   : > { %5261 = vset.pattern.permute.xlu1 %v8425_v4 }
  0x75   : > { %427 = vperm.xlu1 %5261, %v152_v41   ;;  %5289 = vset.pattern.permute.xlu0 %v8414_v31 }
  0x76   : > { %691 = vperm.xlu0 %5289, %v5940_v57  }
  0x79   : > { %5262 = vset.pattern.permute.xlu1 %v8414_v31 }
  0x7a   : > { %667 = vperm.xlu1 %5262, %v152_v41   ;;  %5290 = vset.pattern.permute.xlu0 %v8400_v47 }
  0x7e   : > { %5263 = vset.pattern.permute.xlu1 %v8404_v16 }
  0x7f   : > { %190 = vperm.xlu1 %5263, %v5710_v6  }
  0x83   : > { %5265 = vset.pattern.permute.xlu1 %v8400_v47 }
  0x84   : > { %907 = vperm.xlu1 %5265, %v152_v41  }
  0x88   : > { %5266 = vset.pattern.permute.xlu1 %v8414_v31 }
  0x89   : > { %670 = vperm.xlu1 %5266, %v5710_v6  }
  0x8d   : > { %5267 = vset.pattern.permute.xlu1 %v8425_v4 }
  0x8e   : > { %433 = vperm.xlu1 %5267, %v5876_v55   ;;  %v5967_v55 = vadd.s32 256, %v5961_v5 }
  0x92   : > { %5268 = vset.pattern.permute.xlu1 %v8400_v47 }
  0x93   : > { %910 = vperm.xlu1 %5268, %v5710_v6  }
  0x95   : > { %v887_v48 = vpop.permute.xlu0 %886 }
  0x96   : > { %v647_v17 = vpop.permute.xlu1 %646  ;;  %vm933_vm7 = vcmp.eq.s32.totalorder %v5961_v5, %v887_v48  ;;  %vm934_vm8 = vcmp.eq.s32.totalorder %v5984_v11, %v887_v48  ;;  %vm935_vm10 = vcmp.eq.s32.totalorder %v5967_v55, %v887_v48 }
  0x97   : > { %5269 = vset.pattern.permute.xlu1 %v8404_v16  ;;  %vm693_vm4 = vcmp.eq.s32.totalorder %v5961_v5, %v647_v17  ;;  %vm694_vm5 = vcmp.eq.s32.totalorder %v5984_v11, %v647_v17  ;;  %vm695_vm6 = vcmp.eq.s32.totalorder %v5967_v55, %v647_v17  ;;  %v6020_v48 = vsel %vm933_vm7, 1.0, %v8264_v40 }
  0x98   : > { %196 = vperm.xlu1 %5269, %v155_v19   ;;  %v6013_v17 = vsel %vm693_vm4, 1.0, %v8264_v40  ;;  %v4266_v32 = vsel %vm694_vm5, 1.0, %v8264_v40  ;;  %v4267_v54 = vsel %vm695_vm6, 1.0, %v8264_v40  ;;  %v6023_v24 = vsel %vm934_vm8, 1.0, %v8264_v40 }
  0x99   : > { %v5963_v43 = vpop.permute.xlu0 %895 }
  0x9a   : > { %vm942_vm5 = vcmp.eq.s32.totalorder %v5961_v5, %v5963_v43 }
  0x9b   : > { %v170_v50 = vpop.permute.xlu1 %169 }
  0x9c   : > { %5270 = vset.pattern.permute.xlu1 %v8425_v4  ;;  %vm218_vm0 = vcmp.eq.s32.totalorder %v5967_v55, %v170_v50  ;;  %vm216_vm11 = vcmp.eq.s32.totalorder %v5961_v5, %v170_v50  ;;  %vm217_vm12 = vcmp.eq.s32.totalorder %v5984_v11, %v170_v50 }
  0x9d   : > { %436 = vperm.xlu1 %5270, %v155_v19   ;;  %v4174_v41 = vsel %vm218_vm0, 1.0, %v8264_v40  ;;  %v4172_v50 = vsel %vm216_vm11, 1.0, %v8264_v40  ;;  %v4173_v2 = vsel %vm217_vm12, 1.0, %v8264_v40 }
  0x9e   : > { %v5969_v10 = vpop.permute.xlu0 %406 }
  0x9f   : > { %vm453_vm13 = vcmp.eq.s32.totalorder %v5961_v5, %v5969_v10  ;;  %vm455_vm14 = vcmp.eq.s32.totalorder %v5967_v55, %v5969_v10  ;;  %vm454_vm0 = vcmp.eq.s32.totalorder %v5984_v11, %v5969_v10 }
  0xa0   : > { %v5972_v6 = vpop.permute.xlu1 %409  ;;  %v4218_v49 = vsel %vm454_vm0, 1.0, %v8264_v40 }
  0xa1   : > { %5271 = vset.pattern.permute.xlu1 %v8414_v31  ;;  %vm458_vm1 = vcmp.eq.s32.totalorder %v5967_v55, %v5972_v6  ;;  %vm456_vm15 = vcmp.eq.s32.totalorder %v5961_v5, %v5972_v6 }
  0xa2   : > { %676 = vperm.xlu1 %5271, %v155_v19   ;;  %v4222_v39 = vsel %vm458_vm1, 1.0, %v8264_v40  ;;  %v5979_v1 = vpop.permute.xlu0 %412  ;;  %vm457_vm1 = vcmp.eq.s32.totalorder %v5984_v11, %v5972_v6  ;;  %v4220_v6 = vsel %vm456_vm15, 1.0, %v8264_v40 }
  0xa3   : > { %v602_v38 = vadd.f32 %v4222_v39, %v4174_v41  ;;  %vm461_vm3 = vcmp.eq.s32.totalorder %v5967_v55, %v5979_v1  ;;  %v4221_v56 = vsel %vm457_vm1, 1.0, %v8264_v40  ;;  %v600_v10 = vadd.f32 %v4220_v6, %v4172_v50 }
  0xa4   : > { %v4225_v39 = vsel %vm461_vm3, 1.0, %v8264_v40  ;;  %v601_v27 = vadd.f32 %v4221_v56, %v4173_v2  ;;  %vm460_vm11 = vcmp.eq.s32.totalorder %v5984_v11, %v5979_v1 }
  0xa5   : > { %v5981_v3 = vpop.permute.xlu1 %649 }
  0xa6   : > { %vm698_vm2 = vcmp.eq.s32.totalorder %v5967_v55, %v5981_v3  ;;  %5272 = vset.pattern.permute.xlu1 %v8404_v16  ;;  %v5993_v34 = vpop.permute.xlu0 %421  ;;  %vm696_vm3 = vcmp.eq.s32.totalorder %v5961_v5, %v5981_v3  ;;  %vm697_vm6 = vcmp.eq.s32.totalorder %v5984_v11, %v5981_v3 }
  0xa7   : > { %v4270_v30 = vsel %vm698_vm2, 1.0, %v8264_v40  ;;  %199 = vperm.xlu1 %5272, %v5927_v33   ;;  %v4268_v3 = vsel %vm696_vm3, 1.0, %v8264_v40  ;;  %v4269_v22 = vsel %vm697_vm6, 1.0, %v8264_v40 }
  0xa8   : > { %v842_v41 = vadd.f32 %v4270_v30, %v602_v38  ;;  %v840_v6 = vadd.f32 %v4268_v3, %v600_v10 }
  0xaa   : > { %v5998_v46 = vpop.permute.xlu1 %172  ;;  %v6006_v30 = vpop.permute.xlu0 %430 }
  0xab   : > { %vm221_vm9 = vcmp.eq.s32.totalorder %v5967_v55, %v5998_v46  ;;  %5273 = vset.pattern.permute.xlu1 %v8400_v47  ;;  %8426 = vst [vmem:[#allocation55_spill] sm:$0xff] %v6006_v30  ;;  %v4219_v30 = vsel %vm455_vm14, 1.0, %v8264_v40  ;;  %vm220_vm15 = vcmp.eq.s32.totalorder %v5984_v11, %v5998_v46 }
  0xac   : > { %v4177_v38 = vsel %vm221_vm9, 1.0, %v8264_v40  ;;  %916 = vperm.xlu1 %5273, %v155_v19   ;;  %v4315_v19 = vsel %vm935_vm10, 1.0, %v8264_v40  ;;  %vm459_vm9 = vcmp.eq.s32.totalorder %v5961_v5, %v5979_v1 }
  0xad   : > { %v605_v21 = vadd.f32 %v4225_v39, %v4177_v38  ;;  %v4217_v38 = vsel %vm453_vm13, 1.0, %v8264_v40  ;;  %v4223_v50 = vsel %vm459_vm9, 1.0, %v8264_v40  ;;  %vm219_vm13 = vcmp.eq.s32.totalorder %v5961_v5, %v5998_v46  ;;  %v6124_v46 = vld [vmem:[%s5480_s17 + $0x68] sm:$0xff]  ;;  %s8082_s17 = scalar_lea.hbm %s8132_s2, %s4366_s3 }
  0xaf   : > { %v890_v39 = vpop.permute.xlu1 %889  ;;  %v167_v63 = vpop.permute.xlu0 %166 }
  0xb0   : > { %vm938_vm2 = vcmp.eq.s32.totalorder %v5967_v55, %v890_v39  ;;  %5274 = vset.pattern.permute.xlu1 %v8414_v31  ;;  %vm213_vm4 = vcmp.eq.s32.totalorder %v5961_v5, %v167_v63  ;;  %vm214_vm7 = vcmp.eq.s32.totalorder %v5984_v11, %v167_v63  ;;  %vm215_vm8 = vcmp.eq.s32.totalorder %v5967_v55, %v167_v63 }
  0xb1   : > { %v4318_v60 = vsel %vm938_vm2, 1.0, %v8264_v40  ;;  %679 = vperm.xlu1 %5274, %v5927_v33   ;;  %v4170_v0 = vsel %vm214_vm7, 1.0, %v8264_v40  ;;  %vm937_vm10 = vcmp.eq.s32.totalorder %v5984_v11, %v890_v39  ;;  %vm936_vm12 = vcmp.eq.s32.totalorder %v5961_v5, %v890_v39 }
  0xb2   : > { %v6050_v25 = vadd.f32 %v4318_v60, %v842_v41  ;;  %v4169_v60 = vsel %vm213_vm4, 1.0, %v8264_v40  ;;  %v4171_v41 = vsel %vm215_vm8, 1.0, %v8264_v40  ;;  %v598_v35 = vadd.f32 %v4218_v49, %v4170_v0 }
  0xb3   : > { %v599_v63 = vadd.f32 %v4219_v30, %v4171_v41  ;;  %v597_v44 = vadd.f32 %v4217_v38, %v4169_v60  ;;  %v841_v30 = vadd.f32 %v4269_v22, %v601_v27  ;;  %v4317_v56 = vsel %vm937_vm10, 1.0, %v8264_v40 }
  0xb4   : > { %8427 = vst [vmem:[#allocation56_spill] sm:$0xff] %v6050_v25  ;;  %v653_v25 = vpop.permute.xlu1 %652  ;;  %v6065_v26 = vpop.permute.xlu0 %175  ;;  %v4316_v0 = vsel %vm936_vm12, 1.0, %v8264_v40  ;;  %v838_v27 = vadd.f32 %v4266_v32, %v598_v35  ;;  %vm943_vm2 = vcmp.eq.s32.totalorder %v5984_v11, %v5963_v43  ;;  %v4175_v39 = vsel %vm219_vm13, 1.0, %v8264_v40 }
  0xb5   : > { %5276 = vset.pattern.permute.xlu1 %v8425_v4  ;;  %v839_v45 = vadd.f32 %v4267_v54, %v599_v63  ;;  %vm701_vm14 = vcmp.eq.s32.totalorder %v5967_v55, %v653_v25  ;;  %vm699_vm0 = vcmp.eq.s32.totalorder %v5961_v5, %v653_v25  ;;  %vm224_vm1 = vcmp.eq.s32.totalorder %v5967_v55, %v6065_v26 }
  0xb6   : > { %442 = vperm.xlu1 %5276, %v5890_v20   ;;  %v4273_v20 = vsel %vm701_vm14, 1.0, %v8264_v40  ;;  %vm700_vm3 = vcmp.eq.s32.totalorder %v5984_v11, %v653_v25  ;;  %v4224_v35 = vsel %vm460_vm11, 1.0, %v8264_v40  ;;  %v4176_v32 = vsel %vm220_vm15, 1.0, %v8264_v40 }
  0xb7   : > { %v6087_v49 = vadd.f32 %v4315_v19, %v839_v45  ;;  %v845_v22 = vadd.f32 %v4273_v20, %v605_v21  ;;  %v1081_v45 = vadd.f32 %v4317_v56, %v841_v30  ;;  %v837_v19 = vadd.f32 %v6013_v17, %v597_v44 }
  0xb8   : > { %v6082_v2 = vpop.permute.xlu0 %184  ;;  %v1080_v21 = vadd.f32 %v4316_v0, %v840_v6  ;;  %v4180_v38 = vsel %vm224_vm1, 1.0, %v8264_v40  ;;  %vm944_vm4 = vcmp.eq.s32.totalorder %v5967_v55, %v5963_v43  ;;  %v6117_v44 = vsel %vm942_vm5, 1.0, %v8264_v40 }
  0xb9   : > { %8428 = vst [vmem:[#allocation57_spill] sm:$0xff] %v6087_v49  ;;  %v416_v54 = vpop.permute.xlu1 %415  ;;  %v4271_v1 = vsel %vm699_vm0, 1.0, %v8264_v40  ;;  %v4272_v17 = vsel %vm700_vm3, 1.0, %v8264_v40  ;;  %v1078_v41 = vadd.f32 %v6023_v24, %v838_v27  ;;  %v604_v63 = vadd.f32 %v4224_v35, %v4176_v32 }
  0xba   : > { %5277 = vset.pattern.permute.xlu1 %v8400_v47  ;;  %vm464_vm6 = vcmp.eq.s32.totalorder %v5967_v55, %v416_v54  ;;  %v6129_v6 = vand.u32 4294901760, %v1081_v45  ;;  %v1077_v25 = vadd.f32 %v6020_v48, %v837_v19  ;;  %v6135_v56 = vand.u32 4294901760, %v1080_v21 }
  0xbb   : > { %919 = vperm.xlu1 %5277, %v5927_v33   ;;  %v603_v33 = vadd.f32 %v4223_v50, %v4175_v39  ;;  %v4228_v60 = vsel %vm464_vm6, 1.0, %v8264_v40  ;;  %vm222_vm5 = vcmp.eq.s32.totalorder %v5961_v5, %v6065_v26  ;;  %v6139_v50 = vand.u32 4294901760, %v1078_v41 }
  0xbc   : > { %v6109_v3 = vpop.permute.xlu0 %193  ;;  %8429 = vst [vmem:[#allocation58_spill] sm:$0xff] %v6129_v6  ;;  %v6131_v30 = vadd.f32 %v4228_v60, %v4180_v38  ;;  %8430 = vst [vmem:[#allocation59_spill] sm:$0xff] %v6135_v56  ;;  %v844_v20 = vadd.f32 %v4272_v17, %v604_v63  ;;  %vm223_vm7 = vcmp.eq.s32.totalorder %v5984_v11, %v6065_v26  ;;  %v6147_v48 = vand.u32 4294901760, %v1077_v25 }
  0xbd   : > { %v843_v0 = vadd.f32 %v4271_v1, %v603_v33  ;;  %8431 = vst [vmem:[#allocation60_spill] sm:$0xff] %v6139_v50  ;;  %vm462_vm8 = vcmp.eq.s32.totalorder %v5961_v5, %v416_v54  ;;  %vm463_vm9 = vcmp.eq.s32.totalorder %v5984_v11, %v416_v54  ;;  %1774 = vmatprep.mubr.f32.mxu1 %v6139_v50  ;;  %v4178_v27 = vsel %vm222_vm5, 1.0, %v8264_v40 }
  0xbe   : > { %v893_v10 = vpop.permute.xlu1 %892  ;;  %8432 = vst [vmem:[#allocation61_spill] sm:$0xff] %v6147_v48  ;;  %1776 = vmatmul.mubr.f32.vlgmr.msra.gmra.mxu1 %v6147_v48  ;;  %v4226_v38 = vsel %vm462_vm8, 1.0, %v8264_v40  ;;  %vm470_vm13 = vcmp.eq.s32.totalorder %v5967_v55, %v5993_v34  ;;  %v4179_v60 = vsel %vm223_vm7, 1.0, %v8264_v40  ;;  %v6175_v63 = vsub.f32 %v1078_v41, %v6139_v50 }
  0xbf   : > { %5279 = vset.pattern.permute.xlu1 %v8404_v16  ;;  %vm939_vm10 = vcmp.eq.s32.totalorder %v5961_v5, %v893_v10  ;;  %vm940_vm11 = vcmp.eq.s32.totalorder %v5984_v11, %v893_v10  ;;  %vm941_vm12 = vcmp.eq.s32.totalorder %v5967_v55, %v893_v10  ;;  %1781 = vmatprep.mubr.f32.mxu1 %v6129_v6  ;;  %v4227_v10 = vsel %vm463_vm9, 1.0, %v8264_v40 }
  0xc0   : > { %205 = vperm.xlu1 %5279, %v6124_v46   ;;  %v6142_v24 = vpop.permute.xlu0 %202  ;;  %v4319_v39 = vsel %vm939_vm10, 1.0, %v8264_v40  ;;  %v4320_v19 = vsel %vm940_vm11, 1.0, %v8264_v40  ;;  %v4321_v35 = vsel %vm941_vm12, 1.0, %v8264_v40  ;;  %4608 = vmatpush3.msra.mxu1 %v5441_v7  ;;  %v4324_v26 = vsel %vm944_vm4, 1.0, %v8264_v40 }
  0xc1   : > { %v1083_v1 = vadd.f32 %v4319_v39, %v843_v0  ;;  %v1084_v33 = vadd.f32 %v4320_v19, %v844_v20  ;;  %v6163_v17 = vadd.f32 %v4321_v35, %v845_v22  ;;  %v4323_v22 = vsel %vm943_vm2, 1.0, %v8264_v40  ;;  %4609 = vmatprep.subr.mxu1 %v5443_v8 }
  0xc2   : > { %v6188_v54 = vsub.f32 %v1081_v45, %v6129_v6  ;;  %v6195_v20 = vsub.f32 %v1080_v21, %v6135_v56  ;;  %v606_v39 = vadd.f32 %v4226_v38, %v4178_v27  ;;  %1783 = vmatmul.mubr.f32.gmra.mxu1 %v6135_v56  ;;  %v8254_v43 = vand.u32 4294901760, %v6175_v63 }
  0xc3   : > { %v6159_v32 = vpop.permute.xlu1 %178  ;;  %8433 = vst [vmem:[#allocation62_spill] sm:$0xff] %v6163_v17  ;;  %v6190_v0 = vand.u32 4294901760, %v1084_v33  ;;  %v6197_v19 = vand.u32 4294901760, %v1083_v1  ;;  %v6205_v45 = vsel %vm470_vm13, 1.0, %v8264_v40  ;;  %v607_v35 = vadd.f32 %v4227_v10, %v4179_v60  ;;  %4610 = vmatpush3.msra.mxu1 %v5445_v9 }
  0xc4   : > { %5280 = vset.pattern.permute.xlu1 %v8425_v4  ;;  %vm225_vm14 = vcmp.eq.s32.totalorder %v5961_v5, %v6159_v32  ;;  %vm227_vm15 = vcmp.eq.s32.totalorder %v5967_v55, %v6159_v32  ;;  %v1311_v27 = vsub.f32 %v6175_v63, %v8254_v43  ;;  %v6217_v38 = vsub.f32 %v1077_v25, %v6147_v48 }
  0xc5   : > { %8434 = vst [vmem:[#allocation63_spill] sm:$0xff] %v6190_v0  ;;  %v656_v41 = vpop.permute.xlu0 %655  ;;  %445 = vperm.xlu1 %5280, %v6124_v46   ;;  %8435 = vst [vmem:[#allocation64_spill] sm:$0xff] %v6197_v19  ;;  %1788 = vmatprep.mubr.f32.mxu1 %v6190_v0  ;;  %vm468_vm3 = vcmp.eq.s32.totalorder %v5961_v5, %v5993_v34  ;;  %v8436_v6 = vand.u32 4294901760, %v6188_v54  ;;  %vm226_vm4 = vcmp.eq.s32.totalorder %v5984_v11, %v6159_v32 }
  0xc6   : > { %vm702_vm0 = vcmp.eq.s32.totalorder %v5961_v5, %v656_v41  ;;  %vm703_vm1 = vcmp.eq.s32.totalorder %v5984_v11, %v656_v41  ;;  %4611 = vmatprep.subr.mxu1 %v5453_v12  ;;  %vm704_vm2 = vcmp.eq.s32.totalorder %v5967_v55, %v656_v41  ;;  %v1312_v25 = vand.u32 4294901760, %v1311_v27  ;;  %1790 = vmatmul.mubr.f32.gmra.mxu1 %v6197_v19 }
  0xc7   : > { %v4274_v60 = vsel %vm702_vm0, 1.0, %v8264_v40  ;;  %v4275_v10 = vsel %vm703_vm1, 1.0, %v8264_v40  ;;  %4612 = vmatpush3.msra.mxu1 %v5485_v23  ;;  %v8262_v43 = vand.u32 4294901760, %v6217_v38  ;;  %v4276_v49 = vsel %vm704_vm2, 1.0, %v8264_v40 }
  0xc8   : > { %v419_v21 = vpop.permute.xlu1 %418  ;;  %v846_v56 = vadd.f32 %v4274_v60, %v606_v39  ;;  %v847_v41 = vadd.f32 %v4275_v10, %v607_v35  ;;  %v848_v17 = vadd.f32 %v4276_v49, %v6131_v30  ;;  %v1326_v48 = vsub.f32 %v6188_v54, %v8436_v6  ;;  %4613 = vmatprep.subr.mxu1 %v5498_v28 }
  0xc9   : > { %5282 = vset.pattern.permute.xlu1 %v8414_v31  ;;  %v8261_v27 = vand.u32 4294901760, %v6195_v20  ;;  %v6241_v39 = vsub.f32 %v1084_v33, %v6190_v0  ;;  %1313 = vmatprep.mubr.f32.mxu0 %v1312_v25  ;;  %v4181_v49 = vsel %vm225_vm14, 1.0, %v8264_v40  ;;  %v1317_v6 = vsub.f32 %v6217_v38, %v8262_v43 }
  0xca   : > { %685 = vperm.xlu1 %5282, %v6124_v46   ;;  %v6253_v35 = vsub.f32 %v1083_v1, %v6197_v19  ;;  %v6255_v60 = vadd.f32 %v4324_v26, %v848_v17  ;;  %vm465_vm6 = vcmp.eq.s32.totalorder %v5961_v5, %v419_v21  ;;  %4614 = vmatpush3.msra.mxu1 %v5500_v29  ;;  %v4183_v10 = vsel %vm227_vm15, 1.0, %v8264_v40 }
  0xcb   : > { %v1332_v33 = vsub.f32 %v6195_v20, %v8261_v27  ;;  %v1318_v25 = vand.u32 4294901760, %v1317_v6  ;;  %vm466_vm5 = vcmp.eq.s32.totalorder %v5984_v11, %v419_v21  ;;  %vm467_vm7 = vcmp.eq.s32.totalorder %v5967_v55, %v419_v21  ;;  %4615 = vmatprep.subr.mxu1 %v5549_v51  ;;  %v6275_v6 = vpop.permute.xlu0 %664 }
  0xcc   : > { %8437 = vst [vmem:[#allocation65_spill] sm:$0xff] %v6255_v60  ;;  %vm469_vm8 = vcmp.eq.s32.totalorder %v5984_v11, %v5993_v34  ;;  %v1086_v1 = vadd.f32 %v6117_v44, %v846_v56  ;;  %v1087_v17 = vadd.f32 %v4323_v22, %v847_v41  ;;  %v1327_v26 = vand.u32 4294901760, %v1326_v48  ;;  %4616 = vmatpush3.msra.mxu1 %v5551_v52 }
  0xcd   : > { %v659_v30 = vpop.permute.xlu1 %658  ;;  %v4231_v27 = vsel %vm467_vm7, 1.0, %v8264_v40  ;;  %1319 = vmatmul.mubr.f32.vlgmr.msra.gmra.mxu0 %v1318_v25  ;;  %v8263_v60 = vand.u32 4294901760, %v6241_v39  ;;  %4617 = vmatprep.subr.mxu1 %v5553_v53  ;;  %v1333_v44 = vand.u32 4294901760, %v1332_v33  ;;  %v4230_v56 = vsel %vm466_vm5, 1.0, %v8264_v40 }
  0xce   : > { %5283 = vset.pattern.permute.xlu1 %v8404_v16  ;;  %v4229_v16 = vsel %vm465_vm6, 1.0, %v8264_v40  ;;  %v611_v43 = vadd.f32 %v4231_v27, %v4183_v10  ;;  %vm705_vm9 = vcmp.eq.s32.totalorder %v5961_v5, %v659_v30  ;;  %1328 = vmatprep.mubr.f32.mxu0 %v1327_v26  ;;  %vm707_vm10 = vcmp.eq.s32.totalorder %v5967_v55, %v659_v30 }
  0xcf   : > { %208 = vperm.xlu1 %5283, %v5933_v62   ;;  %v8266_v48 = vand.u32 4294901760, %v6253_v35  ;;  %4528 = vmatpush3.msra.mxu0 %v5457_v13  ;;  %v1341_v41 = vsub.f32 %v6241_v39, %v8263_v60  ;;  %vm706_vm11 = vcmp.eq.s32.totalorder %v5984_v11, %v659_v30  ;;  %v4277_v27 = vsel %vm705_vm9, 1.0, %v8264_v40 }
  0xd0   : > { %v4279_v33 = vsel %vm707_vm10, 1.0, %v8264_v40  ;;  %4529 = vmatprep.subr.mxu0 %v5460_v14  ;;  %4618 = vmatpush3.msra.mxu1 %v5568_v58  ;;  %v6303_v25 = vand.u32 4294901760, %v1087_v17  ;;  %v6305_v26 = vand.u32 4294901760, %v1086_v1  ;;  %vm231_vm12 = vcmp.eq.s32.totalorder %v5961_v5, %v6082_v2 }
  0xd1   : > { %v851_v21 = vadd.f32 %v4279_v33, %v611_v43  ;;  %v1347_v10 = vsub.f32 %v6253_v35, %v8266_v48  ;;  %4530 = vmatpush3.msra.mxu0 %v5463_v15  ;;  %v609_v60 = vadd.f32 %v4229_v16, %v4181_v49  ;;  %v1342_v40 = vand.u32 4294901760, %v1341_v41  ;;  %v6323_v16 = vpop.permute.xlu0 %673  ;;  %4619 = vmatprep.subr.mxu1 %v5570_v59 }
  0xd2   : > { %v6289_v22 = vpop.permute.xlu1 %181  ;;  %8438 = vst [vmem:[#allocation66_spill] sm:$0xff] %v6303_v25  ;;  %8439 = vst [vmem:[#allocation67_spill] sm:$0xff] %v6305_v26  ;;  %1334 = vmatmul.mubr.f32.gmra.mxu0 %v1333_v44  ;;  %v8440_v43 = vmov 0.0   ;;  %1795 = vmatprep.mubr.f32.mxu1 %v6303_v25  ;;  %v6336_v0 = vsub.f32 %v1086_v1, %v6305_v26  ;;  %vm711_vm5 = vcmp.eq.s32.totalorder %v5961_v5, %v6275_v6 }
  0xd3   : > { %5284 = vset.pattern.permute.xlu1 %v8400_v47  ;;  %vm230_vm13 = vcmp.eq.s32.totalorder %v5967_v55, %v6289_v22  ;;  %v4182_v33 = vsel %vm226_vm4, 1.0, %v8440_v43  ;;  %v4278_v48 = vsel %vm706_vm11, 1.0, %v8440_v43  ;;  %v1348_v19 = vand.u32 4294901760, %v1347_v10  ;;  %4531 = vmatprep.subr.mxu0 %v5471_v18 }
  0xd4   : > { %925 = vperm.xlu1 %5284, %v6124_v46   ;;  %v4186_v49 = vsel %vm230_vm13, 1.0, %v8440_v43  ;;  %v4232_v46 = vsel %vm468_vm3, 1.0, %v8440_v43  ;;  %v610_v32 = vadd.f32 %v4230_v56, %v4182_v33  ;;  %1343 = vmatprep.mubr.f32.mxu0 %v1342_v40  ;;  %v849_v44 = vadd.f32 %v4277_v27, %v609_v60 }
  0xd5   : > { %1797 = vmatmul.mubr.f32.gmra.mxu1 %v6305_v26  ;;  %v614_v30 = vadd.f32 %v6205_v45, %v4186_v49  ;;  %v6333_v10 = vsub.f32 %v1087_v17, %v6303_v25  ;;  %4532 = vmatpush3.msra.mxu0 %v5521_v36  ;;  %v8271_v1 = vand.u32 4294901760, %v6336_v0  ;;  %vm228_vm1 = vcmp.eq.s32.totalorder %v5961_v5, %v6289_v22 }
  0xd6   : > { %v850_v56 = vadd.f32 %v4278_v48, %v610_v32  ;;  %1349 = vmatmul.mubr.f32.gmra.mxu0 %v1348_v19  ;;  %4533 = vmatprep.subr.mxu0 %v5524_v37  ;;  %v4233_v19 = vsel %vm469_vm8, 1.0, %v8440_v43  ;;  %vm229_vm2 = vcmp.eq.s32.totalorder %v5984_v11, %v6289_v22  ;;  %vm232_vm3 = vcmp.eq.s32.totalorder %v5984_v11, %v6082_v2 }
  0xd7   : > { %v899_v41 = vpop.permute.xlu1 %898  ;;  %v8272_v60 = vand.u32 4294901760, %v6333_v10  ;;  %4534 = vmatpush3.msra.mxu0 %v5531_v42  ;;  %v1362_v34 = vsub.f32 %v6336_v0, %v8271_v1  ;;  %vm233_vm4 = vcmp.eq.s32.totalorder %v5967_v55, %v6082_v2  ;;  %vm712_vm9 = vcmp.eq.s32.totalorder %v5984_v11, %v6275_v6 }
  0xd8   : > { %vm945_vm14 = vcmp.eq.s32.totalorder %v5961_v5, %v899_v41  ;;  %vm946_vm15 = vcmp.eq.s32.totalorder %v5984_v11, %v899_v41  ;;  %vm947_vm0 = vcmp.eq.s32.totalorder %v5967_v55, %v899_v41  ;;  %5285 = vset.pattern.permute.xlu1 %v8414_v31  ;;  %4535 = vmatprep.subr.mxu0 %v5576_v61  ;;  %v4284_v2 = vsel %vm712_vm9, 1.0, %v8440_v43 }
  0xd9   : > { %v4325_v40 = vsel %vm945_vm14, 1.0, %v8440_v43  ;;  %v4326_v45 = vsel %vm946_vm15, 1.0, %v8440_v43  ;;  %v4327_v17 = vsel %vm947_vm0, 1.0, %v8440_v43  ;;  %688 = vperm.xlu1 %5285, %v5933_v62   ;;  %v1356_v33 = vsub.f32 %v6333_v10, %v8272_v60  ;;  %v8446_v60 = vld [vmem:[#allocation14_spill] sm:$0xff] }
  0xda   : > { %v1089_v27 = vadd.f32 %v4325_v40, %v849_v44  ;;  %v1090_v31 = vadd.f32 %v4326_v45, %v850_v56  ;;  %v6356_v48 = vadd.f32 %v4327_v17, %v851_v21  ;;  %v6369_v44 = vpop.permute.xlu0 %682  ;;  %v4187_v21 = vsel %vm231_vm12, 1.0, %v8440_v43  ;;  %v8444_v56 = vld [vmem:[#allocation13_spill] sm:$0xff] }
  0xdb   : > { %4536 = vmatpush3.msra.mxu0 %v8444_v56  ;;  %v8445_v40 = vld [vmem:[#allocation17_spill] sm:$0xff]  ;;  %v4184_v45 = vsel %vm228_vm1, 1.0, %v8440_v43  ;;  %v1357_v17 = vand.u32 4294901760, %v1356_v33  ;;  %v1363_v1 = vand.u32 4294901760, %v1362_v34  ;;  %vm713_vm10 = vcmp.eq.s32.totalorder %v5967_v55, %v6275_v6  ;;  %v8452_v6 = vld [vmem:[#allocation19_spill] sm:$0xff] }
  0xdc   : > { %8441 = vst [vmem:[#allocation68_spill] sm:$0xff] %v6356_v48  ;;  %v6367_v49 = vand.u32 4294901760, %v1089_v27  ;;  %v662_v32 = vpop.permute.xlu1 %661  ;;  %v6381_v41 = vand.u32 4294901760, %v1090_v31  ;;  %4620 = vmatpush3.msra.mxu1 %v8445_v40  ;;  %4537 = vmatprep.subr.mxu0 %v8446_v60  ;;  %v4185_v48 = vsel %vm229_vm2, 1.0, %v8440_v43  ;;  %v612_v34 = vadd.f32 %v4232_v46, %v4184_v45  ;;  %v8447_v45 = vld [vmem:[#allocation15_spill] sm:$0xff]  ;;  %v8454_v60 = vld [vmem:[#allocation28_spill] sm:$0xff] }
  0xdd   : > { %vm708_vm6 = vcmp.eq.s32.totalorder %v5961_v5, %v662_v32  ;;  %5287 = vset.pattern.permute.xlu1 %v8425_v4  ;;  %vm709_vm7 = vcmp.eq.s32.totalorder %v5984_v11, %v662_v32  ;;  %vm710_vm8 = vcmp.eq.s32.totalorder %v5967_v55, %v662_v32  ;;  %v4188_v4 = vsel %vm232_vm3, 1.0, %v8440_v43  ;;  %1358 = vmatprep.mubr.f32.mxu0 %v1357_v17 }
  0xde   : > { %8442 = vst [vmem:[#allocation69_spill] sm:$0xff] %v6367_v49  ;;  %8443 = vst [vmem:[#allocation70_spill] sm:$0xff] %v6381_v41  ;;  %451 = vperm.xlu1 %5287, %v5940_v57   ;;  %1802 = vmatprep.mubr.f32.mxu1 %v6381_v41  ;;  %v4280_v22 = vsel %vm708_vm6, 1.0, %v8440_v43  ;;  %v4282_v33 = vsel %vm710_vm8, 1.0, %v8440_v43  ;;  %v4281_v32 = vsel %vm709_vm7, 1.0, %v8440_v43  ;;  %v4189_v17 = vsel %vm233_vm4, 1.0, %v8440_v43 }
  0xdf   : > { %1804 = vmatmul.mubr.f32.gmra.mxu1 %v6367_v49  ;;  %1364 = vmatmul.mubr.f32.gmra.mxu0 %v1363_v1  ;;  %v6414_v26 = vadd.f32 %v4282_v33, %v614_v30  ;;  %v613_v50 = vadd.f32 %v4233_v19, %v4185_v48  ;;  %v6421_v40 = vsub.f32 %v1089_v27, %v6367_v49  ;;  %v4283_v46 = vsel %vm711_vm5, 1.0, %v8440_v43  ;;  %v905_v1 = vpop.permute.xlu0 %904  ;;  %v8448_v30 = vld [vmem:[#allocation18_spill] sm:$0xff]  ;;  %v8449_v19 = vld [vmem:[#allocation16_spill] sm:$0xff] }
  0xe0   : > { %4538 = vmatpush3.msra.mxu0 %v8447_v45  ;;  %4621 = vmatprep.subr.mxu1 %v8448_v30  ;;  %v6430_v33 = vsub.f32 %v1090_v31, %v6381_v41  ;;  %v852_v27 = vadd.f32 %v4280_v22, %v612_v34  ;;  %v4285_v48 = vsel %vm713_vm10, 1.0, %v8440_v43  ;;  %v8450_v31 = vld [vmem:[#allocation20_spill] sm:$0xff]  ;;  %vm951_vm14 = vcmp.eq.s32.totalorder %v5961_v5, %v905_v1  ;;  %v8451_v41 = vld [vmem:[#allocation21_spill] sm:$0xff] }
  0xe1   : > { %v425_v25 = vpop.permute.xlu1 %424  ;;  %4539 = vmatprep.subr.mxu0 %v8449_v19  ;;  %v853_v49 = vadd.f32 %v4281_v32, %v613_v50  ;;  %4622 = vmatpush3.msra.mxu1 %v8452_v6  ;;  %vm952_vm15 = vcmp.eq.s32.totalorder %v5984_v11, %v905_v1  ;;  %vm953_vm0 = vcmp.eq.s32.totalorder %v5967_v55, %v905_v1 }
  0xe2   : > { %vm471_vm11 = vcmp.eq.s32.totalorder %v5961_v5, %v425_v25  ;;  %5288 = vset.pattern.permute.xlu1 %v8400_v47  ;;  %vm472_vm12 = vcmp.eq.s32.totalorder %v5984_v11, %v425_v25  ;;  %vm473_vm13 = vcmp.eq.s32.totalorder %v5967_v55, %v425_v25  ;;  %4540 = vmatpush3.msra.mxu0 %v8450_v31  ;;  %v8453_v25 = vld [vmem:[#allocation22_spill] sm:$0xff]  ;;  %v4331_v31 = vsel %vm951_vm14, 1.0, %v8440_v43 }
  0xe3   : > { %928 = vperm.xlu1 %5288, %v5933_v62   ;;  %v4235_v22 = vsel %vm471_vm11, 1.0, %v8440_v43  ;;  %v4236_v47 = vsel %vm472_vm12, 1.0, %v8440_v43  ;;  %v4237_v34 = vsel %vm473_vm13, 1.0, %v8440_v43  ;;  %4541 = vmatprep.subr.mxu0 %v8451_v41  ;;  %v4332_v30 = vsel %vm952_vm15, 1.0, %v8440_v43  ;;  %v8455_v41 = vld [vmem:[#allocation23_spill] sm:$0xff] }
  0xe4   : > { %v615_v50 = vadd.f32 %v4235_v22, %v4187_v21  ;;  %v616_v32 = vadd.f32 %v4236_v47, %v4188_v4  ;;  %v617_v19 = vadd.f32 %v4237_v34, %v4189_v17  ;;  %4542 = vmatpush3.msra.mxu0 %v8453_v25  ;;  %v8283_v45 = vand.u32 4294901760, %v6430_v33  ;;  %4623 = vmatprep.subr.mxu1 %v8455_v41  ;;  %v8456_v47 = vld [vmem:[#allocation29_spill] sm:$0xff]  ;;  %v8457_v34 = vld [vmem:[#allocation24_spill] sm:$0xff] }
  0xe5   : > { %4543 = vmatprep.subr.mxu0 %v8454_v60  ;;  %v4333_v22 = vsel %vm953_vm0, 1.0, %v8440_v43  ;;  %4624 = vmatpush3.msra.mxu1 %v8457_v34  ;;  %v8498_v34 = vld [vmem:[#allocation6_spill] sm:$0xff] }
  0xe6   : > { %v902_v62 = vpop.permute.xlu1 %901  ;;  %v855_v21 = vadd.f32 %v4283_v46, %v615_v50  ;;  %v856_v4 = vadd.f32 %v4284_v2, %v616_v32  ;;  %v857_v17 = vadd.f32 %v4285_v48, %v617_v19  ;;  %4544 = vmatpush3.msra.mxu0 %v8456_v47  ;;  %v1371_v1 = vsub.f32 %v6430_v33, %v8283_v45  ;;  %v8459_v48 = vld [vmem:[#allocation30_spill] sm:$0xff]  ;;  %v8460_v50 = vld [vmem:[#allocation25_spill] sm:$0xff] }
  0xe7   : > { %931 = vperm.xlu1 %5288, %v5940_v57   ;;  %vm948_vm1 = vcmp.eq.s32.totalorder %v5961_v5, %v902_v62  ;;  %vm949_vm2 = vcmp.eq.s32.totalorder %v5984_v11, %v902_v62  ;;  %vm950_vm3 = vcmp.eq.s32.totalorder %v5967_v55, %v902_v62  ;;  %4545 = vmatprep.subr.mxu0 %v8459_v48  ;;  %v8461_v62 = vld [vmem:[#allocation31_spill] sm:$0xff]  ;;  %v8471_v48 = vld [vmem:[#allocation33_spill] sm:$0xff]  ;;  %v8499_v41 = vand.u32 4294901760, %v8498_v34 }
  0xe8   : > { %v1095_v46 = vadd.f32 %v4331_v31, %v855_v21  ;;  %v1096_v2 = vadd.f32 %v4332_v30, %v856_v4  ;;  %v6471_v19 = vadd.f32 %v4333_v22, %v857_v17  ;;  %v4328_v57 = vsel %vm948_vm1, 1.0, %v8440_v43  ;;  %4625 = vmatprep.subr.mxu1 %v8460_v50  ;;  %4546 = vmatpush3.msra.mxu0 %v8461_v62  ;;  %v8462_v31 = vld [vmem:[#allocation26_spill] sm:$0xff]  ;;  %v8464_v4 = vld [vmem:[#allocation32_spill] sm:$0xff]  ;;  %v8465_v17 = vld [vmem:[#allocation27_spill] sm:$0xff] }
  0xe9   : > { %v1372_v32 = vand.u32 4294901760, %v1371_v1  ;;  %v4329_v45 = vsel %vm949_vm2, 1.0, %v8440_v43  ;;  %v4330_v47 = vsel %vm950_vm3, 1.0, %v8440_v43  ;;  %v1092_v60 = vadd.f32 %v4328_v57, %v852_v27  ;;  %4626 = vmatpush3.msra.mxu1 %v8462_v31  ;;  %4547 = vmatprep.subr.mxu0 %v8464_v4 }
  0xea   : > { %8458 = vst [vmem:[#allocation71_spill] sm:$0xff] %v6471_v19  ;;  %v6482_v30 = vand.u32 4294901760, %v1096_v2  ;;  %v1093_v21 = vadd.f32 %v4329_v45, %v853_v49  ;;  %4627 = vmatprep.subr.mxu1 %v8465_v17  ;;  %v6486_v22 = vand.u32 4294901760, %v1095_v46  ;;  %v6489_v1 = vadd.f32 %v4330_v47, %v6414_v26  ;;  %v8469_v19 = vld [vmem:[#allocation35_spill] sm:$0xff]  ;;  %v8472_v49 = vld [vmem:[#allocation37_spill] sm:$0xff]  ;;  %v8474_v47 = vld [vmem:[#allocation38_spill] sm:$0xff] }
  0xeb   : > { %v6478_v25 = vpop.permute.xlu1 %187  ;;  %1373 = vmatprep.mubr.f32.mxu0 %v1372_v32  ;;  %v6491_v27 = vand.u32 4294901760, %v1092_v60  ;;  %v8284_v57 = vand.u32 4294901760, %v6421_v40  ;;  %4548 = vmatpush3.msra.mxu0 %v8469_v19  ;;  %v8475_v32 = vld [vmem:[#allocation34_spill] sm:$0xff]  ;;  %vm240_vm1 = vcmp.eq.s32.totalorder %v5961_v5, %v6109_v3  ;;  %vm241_vm2 = vcmp.eq.s32.totalorder %v5984_v11, %v6109_v3 }
  0xec   : > { %8463 = vst [vmem:[#allocation72_spill] sm:$0xff] %v6482_v30  ;;  %8466 = vst [vmem:[#allocation73_spill] sm:$0xff] %v6486_v22  ;;  %v6495_v62 = vand.u32 4294901760, %v1093_v21  ;;  %4628 = vmatpush3.msra.mxu1 %v8471_v48  ;;  %4549 = vmatprep.subr.mxu0 %v8472_v49  ;;  %vm236_vm4 = vcmp.eq.s32.totalorder %v5967_v55, %v6478_v25  ;;  %v8477_v49 = vld [vmem:[#allocation36_spill] sm:$0xff]  ;;  %vm234_vm11 = vcmp.eq.s32.totalorder %v5961_v5, %v6478_v25 }
  0xed   : > { %8467 = vst [vmem:[#allocation74_spill] sm:$0xff] %v6489_v1  ;;  %8468 = vst [vmem:[#allocation75_spill] sm:$0xff] %v6491_v27  ;;  %v6500_v45 = vsub.f32 %v1092_v60, %v6491_v27  ;;  %v1377_v26 = vsub.f32 %v6421_v40, %v8284_v57  ;;  %4550 = vmatpush3.msra.mxu0 %v8474_v47  ;;  %4629 = vmatprep.subr.mxu1 %v8475_v32  ;;  %v8479_v47 = vld [vmem:[#allocation44_spill] sm:$0xff]  ;;  %v8480_v32 = vld [vmem:[#allocation45_spill] sm:$0xff] }
  0xee   : > { %8470 = vst [vmem:[#allocation76_spill] sm:$0xff] %v6495_v62  ;;  %v6510_v1 = vsub.f32 %v1096_v2, %v6482_v30  ;;  %v6513_v19 = vsub.f32 %v1093_v21, %v6495_v62  ;;  %1809 = vmatprep.mubr.f32.mxu1 %v6495_v62  ;;  %4630 = vmatpush3.msra.mxu1 %v8477_v49  ;;  %v4192_v2 = vsel %vm236_vm4, 1.0, %v8440_v43  ;;  %v8481_v49 = vld [vmem:[#allocation39_spill] sm:$0xff]  ;;  %v8482_v48 = vld [vmem:[#allocation40_spill] sm:$0xff] }
  0xef   : > { %8473 = vst [vmem:[#allocation77_spill] sm:$0xff] %v6500_v45  ;;  %v6518_v57 = vsub.f32 %v1095_v46, %v6486_v22  ;;  %v1378_v4 = vand.u32 4294901760, %v1377_v26  ;;  %1811 = vmatmul.mubr.f32.gmra.mxu1 %v6491_v27  ;;  %4551 = vmatprep.subr.mxu0 %v8479_v47  ;;  %v8294_v26 = vand.u32 4294901760, %v6500_v45  ;;  %v8486_v47 = vld [vmem:[#allocation42_spill] sm:$0xff]  ;;  %vm235_vm13 = vcmp.eq.s32.totalorder %v5984_v11, %v6478_v25 }
  0xf0   : > { %8476 = vst [vmem:[#allocation78_spill] sm:$0xff] %v6510_v1  ;;  %v428_v60 = vpop.permute.xlu1 %427  ;;  %1816 = vmatprep.mubr.f32.mxu1 %v6482_v30  ;;  %v8291_v62 = vand.u32 4294901760, %v6513_v19  ;;  %4552 = vmatpush3.msra.mxu0 %v8480_v32  ;;  %v8483_v30 = vld [vmem:[#allocation47_spill] sm:$0xff]  ;;  %vm242_vm3 = vcmp.eq.s32.totalorder %v5967_v55, %v6109_v3  ;;  %vm720_vm4 = vcmp.eq.s32.totalorder %v5961_v5, %v6323_v16 }
  0xf1   : > { %8478 = vst [vmem:[#allocation79_spill] sm:$0xff] %v6518_v57  ;;  %vm476_vm6 = vcmp.eq.s32.totalorder %v5967_v55, %v428_v60  ;;  %1379 = vmatmul.mubr.f32.gmra.mxu0 %v1378_v4  ;;  %4631 = vmatprep.subr.mxu1 %v8481_v49  ;;  %v1392_v4 = vsub.f32 %v6500_v45, %v8294_v26  ;;  %v8485_v32 = vld [vmem:[#allocation55_spill] sm:$0xff]  ;;  %v8495_v49 = vld [vmem:[#allocation52_spill] sm:$0xff] }
  0xf2   : > { %v4240_v21 = vsel %vm476_vm6, 1.0, %v8440_v43  ;;  %v1386_v27 = vsub.f32 %v6513_v19, %v8291_v62  ;;  %4632 = vmatpush3.msra.mxu1 %v8482_v48  ;;  %4553 = vmatprep.subr.mxu0 %v8483_v30  ;;  %vm479_vm5 = vcmp.eq.s32.totalorder %v5967_v55, %v8485_v32  ;;  %v8487_v30 = vld [vmem:[#allocation48_spill] sm:$0xff]  ;;  %vm474_vm8 = vcmp.eq.s32.totalorder %v5961_v5, %v428_v60  ;;  %v8488_v26 = vld [vmem:[#allocation43_spill] sm:$0xff] }
  0xf3   : > { %v620_v46 = vadd.f32 %v4240_v21, %v4192_v2  ;;  %1818 = vmatmul.mubr.f32.gmra.mxu1 %v6486_v22  ;;  %v8484_v21 = vld [vmem:[#allocation41_spill] sm:$0xff]  ;;  %4554 = vmatpush3.msra.mxu0 %v8487_v30  ;;  %v1393_v48 = vand.u32 4294901760, %v1392_v4  ;;  %vm477_vm9 = vcmp.eq.s32.totalorder %v5961_v5, %v8485_v32  ;;  %vm475_vm10 = vcmp.eq.s32.totalorder %v5984_v11, %v428_v60 }
  0xf4   : > { %4633 = vmatprep.subr.mxu1 %v8484_v21  ;;  %v1387_v62 = vand.u32 4294901760, %v1386_v27  ;;  %v8489_v2 = vld [vmem:[#allocation49_spill] sm:$0xff]  ;;  %v4243_v21 = vsel %vm479_vm5, 1.0, %v8440_v43  ;;  %v8491_v4 = vand.u32 4294901760, %v6518_v57  ;;  %vm478_vm15 = vcmp.eq.s32.totalorder %v5984_v11, %v8485_v32 }
  0xf5   : > { %v668_v17 = vpop.permute.xlu1 %667  ;;  %4634 = vmatpush3.msra.mxu1 %v8486_v47  ;;  %4555 = vmatprep.subr.mxu0 %v8489_v2  ;;  %v8490_v47 = vand.u32 4294901760, %v6510_v1  ;;  %v6610_v25 = vsel %vm478_vm15, 1.0, %v8440_v43 }
  0xf6   : > { %vm716_vm7 = vcmp.eq.s32.totalorder %v5967_v55, %v668_v17  ;;  %4635 = vmatprep.subr.mxu1 %v8488_v26  ;;  %1388 = vmatprep.mubr.f32.mxu0 %v1387_v62  ;;  %vm714_vm12 = vcmp.eq.s32.totalorder %v5961_v5, %v668_v17  ;;  %v1407_v2 = vsub.f32 %v6518_v57, %v8491_v4  ;;  %v8492_v26 = vld [vmem:[#allocation46_spill] sm:$0xff]  ;;  %v4238_v62 = vsel %vm474_vm8, 1.0, %v8440_v43 }
  0xf7   : > { %v4288_v22 = vsel %vm716_vm7, 1.0, %v8440_v43  ;;  %v1401_v30 = vsub.f32 %v6510_v1, %v8490_v47  ;;  %1394 = vmatmul.mubr.f32.gmra.mxu0 %v1393_v48  ;;  %4636 = vmatpush3.msra.mxu1 %v8492_v26  ;;  %vm715_vm14 = vcmp.eq.s32.totalorder %v5984_v11, %v668_v17  ;;  %v8494_v48 = vld [vmem:[#allocation50_spill] sm:$0xff]  ;;  %v4239_v4 = vsel %vm475_vm10, 1.0, %v8440_v43 }
  0xf8   : > { %v860_v27 = vadd.f32 %v4288_v22, %v620_v46  ;;  %v8493_v46 = vld [vmem:[#allocation51_spill] sm:$0xff]  ;;  %4556 = vmatpush3.msra.mxu0 %v8494_v48  ;;  %v1408_v26 = vand.u32 4294901760, %v1407_v2  ;;  %v4190_v48 = vsel %vm234_vm11, 1.0, %v8440_v43  ;;  %v8497_v2 = vld [vmem:[#allocation54_spill] sm:$0xff]  ;;  %v4287_v31 = vsel %vm715_vm14, 1.0, %v8440_v43 }
  0xf9   : > { %v1402_v22 = vand.u32 4294901760, %v1401_v30  ;;  %4637 = vmatprep.subr.mxu1 %v8493_v46  ;;  %v8496_v30 = vld [vmem:[#allocation53_spill] sm:$0xff]  ;;  %v4286_v46 = vsel %vm714_vm12, 1.0, %v8440_v43  ;;  %vm721_vm8 = vcmp.eq.s32.totalorder %v5984_v11, %v6323_v16  ;;  %vm722_vm10 = vcmp.eq.s32.totalorder %v5967_v55, %v6323_v16 }
  0xfa   : > { %v6571_v47 = vpop.permute.xlu1 %190  ;;  %4638 = vmatpush3.msra.mxu1 %v8495_v49  ;;  %4557 = vmatprep.subr.mxu0 %v8496_v30  ;;  %v4191_v49 = vsel %vm235_vm13, 1.0, %v8440_v43  ;;  %v618_v30 = vadd.f32 %v4238_v62, %v4190_v48 }
  0xfb   : > { %vm239_vm0 = vcmp.eq.s32.totalorder %v5967_v55, %v6571_v47  ;;  %1403 = vmatprep.mubr.f32.mxu0 %v1402_v22  ;;  %4558 = vmatpush3.msra.mxu0 %v8497_v2  ;;  %v4241_v22 = vsel %vm477_vm9, 1.0, %v8440_v43  ;;  %v619_v17 = vadd.f32 %v4239_v4, %v4191_v49  ;;  %vm237_vm9 = vcmp.eq.s32.totalorder %v5961_v5, %v6571_v47  ;;  %v914_v4 = vpop.permute.xlu0 %913 }
  0xfc   : > { %v4195_v60 = vsel %vm239_vm0, 1.0, %v8440_v43  ;;  %1409 = vmatmul.mubr.f32.gmra.mxu0 %v1408_v26  ;;  %4687 = vmatprep.subr.mxu0 %v8499_v41  ;;  %v8500_v26 = vld [vmem:[#allocation5_spill] sm:$0xff]  ;;  %v858_v41 = vadd.f32 %v4286_v46, %v618_v30  ;;  %v4196_v30 = vsel %vm240_vm1, 1.0, %v8440_v43  ;;  %vm238_vm11 = vcmp.eq.s32.totalorder %v5984_v11, %v6571_v47 }
  0xfd   : > { %v623_v50 = vadd.f32 %v4243_v21, %v4195_v60  ;;  %4767 = vmatprep.subr.mxu1 %v8500_v26  ;;  %v859_v32 = vadd.f32 %v4287_v31, %v619_v17  ;;  %v4197_v60 = vsel %vm241_vm2, 1.0, %v8440_v43  ;;  %v4198_v17 = vsel %vm242_vm3, 1.0, %v8440_v43 }
  0xfe   : > { %v4293_v26 = vsel %vm721_vm8, 1.0, %v8440_v43  ;;  %v4193_v3 = vsel %vm237_vm9, 1.0, %v8440_v43  ;;  %vm960_vm13 = vcmp.eq.s32.totalorder %v5961_v5, %v914_v4  ;;  %vm961_vm0 = vcmp.eq.s32.totalorder %v5984_v11, %v914_v4 }
  0xff   : > { %v908_v34 = vpop.permute.xlu1 %907  ;;  %vm962_vm1 = vcmp.eq.s32.totalorder %v5967_v55, %v914_v4 }
 0x100   : > { %vm954_vm6 = vcmp.eq.s32.totalorder %v5961_v5, %v908_v34  ;;  %vm955_vm5 = vcmp.eq.s32.totalorder %v5984_v11, %v908_v34  ;;  %vm956_vm7 = vcmp.eq.s32.totalorder %v5967_v55, %v908_v34 }
 0x101   : > { %v4334_v49 = vsel %vm954_vm6, 1.0, %v8440_v43  ;;  %v4335_v21 = vsel %vm955_vm5, 1.0, %v8440_v43  ;;  %v4336_v62 = vsel %vm956_vm7, 1.0, %v8440_v43 }
 0x102   : > { %v1098_v46 = vadd.f32 %v4334_v49, %v858_v41  ;;  %v1099_v31 = vadd.f32 %v4335_v21, %v859_v32  ;;  %v6631_v48 = vadd.f32 %v4336_v62, %v860_v27  ;;  %v4292_v27 = vsel %vm720_vm4, 1.0, %v8440_v43 }
 0x103   : > { %v4294_v21 = vsel %vm722_vm10, 1.0, %v8440_v43 }
 0x104   : > { %8501 = vst [vmem:[#allocation55_spill] sm:$0xff] %v6631_v48  ;;  %v6652_v41 = vand.u32 4294901760, %v1099_v31  ;;  %v6654_v34 = vand.u32 4294901760, %v1098_v46  ;;  %v671_v32 = vpop.permute.xlu1 %670 }
 0x105   : > { %vm719_vm12 = vcmp.eq.s32.totalorder %v5967_v55, %v671_v32  ;;  %vm717_vm14 = vcmp.eq.s32.totalorder %v5961_v5, %v671_v32  ;;  %vm718_vm15 = vcmp.eq.s32.totalorder %v5984_v11, %v671_v32  ;;  %v4194_v32 = vsel %vm238_vm11, 1.0, %v8440_v43 }
 0x106   : > { %8502 = vst [vmem:[#allocation6_spill] sm:$0xff] %v6652_v41  ;;  %8503 = vst [vmem:[#allocation5_spill] sm:$0xff] %v6654_v34  ;;  %v6662_v49 = vsub.f32 %v1099_v31, %v6652_v41  ;;  %v6665_v16 = vsub.f32 %v1098_v46, %v6654_v34  ;;  %1823 = vmatprep.mubr.f32.mxu1 %v6652_v41  ;;  %v4291_v62 = vsel %vm719_vm12, 1.0, %v8440_v43  ;;  %v4340_v46 = vsel %vm960_vm13, 1.0, %v8440_v43 }
 0x107   : > { %1825 = vmatmul.mubr.f32.gmra.mxu1 %v6654_v34  ;;  %v863_v31 = vadd.f32 %v4291_v62, %v623_v50  ;;  %v621_v41 = vadd.f32 %v4241_v22, %v4193_v3  ;;  %v4289_v6 = vsel %vm717_vm14, 1.0, %v8440_v43  ;;  %v4290_v34 = vsel %vm718_vm15, 1.0, %v8440_v43 }
 0x108   : > { %8504 = vst [vmem:[#allocation80_spill] sm:$0xff] %v6662_v49  ;;  %v8304_v48 = vand.u32 4294901760, %v6662_v49  ;;  %v8318_v2 = vand.u32 4294901760, %v6665_v16 }
 0x109   : > { %v434_v57 = vpop.permute.xlu1 %433  ;;  %v861_v45 = vadd.f32 %v4289_v6, %v621_v41 }
 0x10a   : > { %vm480_vm2 = vcmp.eq.s32.totalorder %v5961_v5, %v434_v57  ;;  %vm481_vm3 = vcmp.eq.s32.totalorder %v5984_v11, %v434_v57  ;;  %vm482_vm4 = vcmp.eq.s32.totalorder %v5967_v55, %v434_v57  ;;  %v1416_v50 = vsub.f32 %v6662_v49, %v8304_v48 }
 0x10b   : > { %v4244_v62 = vsel %vm480_vm2, 1.0, %v8440_v43  ;;  %v4245_v47 = vsel %vm481_vm3, 1.0, %v8440_v43  ;;  %v4246_v22 = vsel %vm482_vm4, 1.0, %v8440_v43  ;;  %v1422_v3 = vsub.f32 %v6665_v16, %v8318_v2 }
 0x10c   : > { %v624_v59 = vadd.f32 %v4244_v62, %v4196_v30  ;;  %v625_v56 = vadd.f32 %v4245_v47, %v4197_v60  ;;  %v626_v58 = vadd.f32 %v4246_v22, %v4198_v17  ;;  %v1417_v61 = vand.u32 4294901760, %v1416_v50 }
 0x10d   : > { %v622_v57 = vadd.f32 %v6610_v25, %v4194_v32  ;;  %v4341_v48 = vsel %vm961_vm0, 1.0, %v8440_v43  ;;  %v4342_v49 = vsel %vm962_vm1, 1.0, %v8440_v43  ;;  %v1423_v1 = vand.u32 4294901760, %v1422_v3 }
 0x10e   : > { %v864_v53 = vadd.f32 %v4292_v27, %v624_v59  ;;  %v865_v42 = vadd.f32 %v4293_v26, %v625_v56  ;;  %v866_v52 = vadd.f32 %v4294_v21, %v626_v58  ;;  %1418 = vmatprep.mubr.f32.mxu0 %v1417_v61  ;;  %v911_v30 = vpop.permute.xlu1 %910  ;;  %vm249_vm2 = vcmp.eq.s32.totalorder %v5961_v5, %v6142_v24 }
 0x10f   : > { %v862_v60 = vadd.f32 %v4290_v34, %v622_v57  ;;  %vm957_vm6 = vcmp.eq.s32.totalorder %v5961_v5, %v911_v30  ;;  %vm958_vm5 = vcmp.eq.s32.totalorder %v5984_v11, %v911_v30  ;;  %vm959_vm7 = vcmp.eq.s32.totalorder %v5967_v55, %v911_v30  ;;  %1424 = vmatmul.mubr.f32.gmra.mxu0 %v1423_v1  ;;  %v6734_v34 = vpop.permute.xlu0 %922 }
 0x110   : > { %v1104_v25 = vadd.f32 %v4340_v46, %v864_v53  ;;  %v1105_v17 = vadd.f32 %v4341_v48, %v865_v42  ;;  %v6706_v32 = vadd.f32 %v4342_v49, %v866_v52  ;;  %v4337_v4 = vsel %vm957_vm6, 1.0, %v8440_v43 }
 0x111   : > { %v4338_v59 = vsel %vm958_vm5, 1.0, %v8440_v43  ;;  %v4339_v58 = vsel %vm959_vm7, 1.0, %v8440_v43  ;;  %v1101_v61 = vadd.f32 %v4337_v4, %v861_v45  ;;  %vm250_vm3 = vcmp.eq.s32.totalorder %v5984_v11, %v6142_v24 }
 0x112   : > { %8505 = vst [vmem:[#allocation81_spill] sm:$0xff] %v6706_v32  ;;  %v6711_v56 = vand.u32 4294901760, %v1105_v17  ;;  %v6713_v6 = vand.u32 4294901760, %v1104_v25  ;;  %v1102_v27 = vadd.f32 %v4338_v59, %v862_v60  ;;  %v6715_v26 = vadd.f32 %v4339_v58, %v863_v31 }
 0x113   : > { %v6717_v41 = vand.u32 4294901760, %v1101_v61  ;;  %v197_v53 = vpop.permute.xlu1 %196  ;;  %vm251_vm6 = vcmp.eq.s32.totalorder %v5967_v55, %v6142_v24  ;;  %vm729_vm5 = vcmp.eq.s32.totalorder %v5961_v5, %v6369_v44  ;;  %vm730_vm7 = vcmp.eq.s32.totalorder %v5984_v11, %v6369_v44 }
 0x114   : > { %8506 = vst [vmem:[#allocation82_spill] sm:$0xff] %v6711_v56  ;;  %8507 = vst [vmem:[#allocation83_spill] sm:$0xff] %v6713_v6  ;;  %v6720_v42 = vsub.f32 %v1105_v17, %v6711_v56  ;;  %v6722_v52 = vand.u32 4294901760, %v1102_v27  ;;  %v6725_v1 = vsub.f32 %v1104_v25, %v6713_v6  ;;  %vm245_vm8 = vcmp.eq.s32.totalorder %v5967_v55, %v197_v53  ;;  %v6756_v17 = vpop.permute.xlu0 %439 }
 0x115   : > { %8508 = vst [vmem:[#allocation84_spill] sm:$0xff] %v6715_v26  ;;  %8509 = vst [vmem:[#allocation85_spill] sm:$0xff] %v6717_v41  ;;  %v6728_v45 = vsub.f32 %v1101_v61, %v6717_v41  ;;  %v4201_v47 = vsel %vm245_vm8, 1.0, %v8440_v43  ;;  %vm488_vm12 = vcmp.eq.s32.totalorder %v5967_v55, %v6756_v17  ;;  %vm243_vm14 = vcmp.eq.s32.totalorder %v5961_v5, %v197_v53 }
 0x116   : > { %8510 = vst [vmem:[#allocation86_spill] sm:$0xff] %v6720_v42  ;;  %8511 = vst [vmem:[#allocation87_spill] sm:$0xff] %v6722_v52  ;;  %v6731_v48 = vsub.f32 %v1102_v27, %v6722_v52  ;;  %1830 = vmatprep.mubr.f32.mxu1 %v6722_v52  ;;  %v8315_v46 = vand.u32 4294901760, %v6720_v42  ;;  %v8314_v62 = vand.u32 4294901760, %v6725_v1  ;;  %vm244_vm0 = vcmp.eq.s32.totalorder %v5984_v11, %v197_v53 }
 0x117   : > { %8512 = vst [vmem:[#allocation88_spill] sm:$0xff] %v6725_v1  ;;  %1832 = vmatmul.mubr.f32.gmra.mxu1 %v6717_v41  ;;  %v8316_v49 = vand.u32 4294901760, %v6728_v45  ;;  %v4199_v53 = vsel %vm243_vm14, 1.0, %v8440_v43  ;;  %vm731_vm8 = vcmp.eq.s32.totalorder %v5967_v55, %v6369_v44  ;;  %vm969_vm14 = vcmp.eq.s32.totalorder %v5961_v5, %v6734_v34 }
 0x118   : > { %1837 = vmatprep.mubr.f32.mxu1 %v6711_v56  ;;  %v437_v21 = vpop.permute.xlu1 %436  ;;  %v8317_v31 = vand.u32 4294901760, %v6731_v48  ;;  %v1446_v25 = vsub.f32 %v6720_v42, %v8315_v46  ;;  %v1452_v59 = vsub.f32 %v6725_v1, %v8314_v62  ;;  %v4302_v62 = vsel %vm730_vm7, 1.0, %v8440_v43 }
 0x119   : > { %vm485_vm9 = vcmp.eq.s32.totalorder %v5967_v55, %v437_v21  ;;  %v1437_v50 = vsub.f32 %v6728_v45, %v8316_v49  ;;  %vm483_vm11 = vcmp.eq.s32.totalorder %v5961_v5, %v437_v21  ;;  %vm484_vm13 = vcmp.eq.s32.totalorder %v5984_v11, %v437_v21 }
 0x11a   : > { %v4249_v22 = vsel %vm485_vm9, 1.0, %v8440_v43  ;;  %v1431_v3 = vsub.f32 %v6731_v48, %v8317_v31  ;;  %v1447_v58 = vand.u32 4294901760, %v1446_v25  ;;  %v4248_v21 = vsel %vm484_vm13, 1.0, %v8440_v43 }
 0x11b   : > { %v629_v57 = vadd.f32 %v4249_v22, %v4201_v47  ;;  %1839 = vmatmul.mubr.f32.gmra.mxu1 %v6713_v6  ;;  %v1438_v30 = vand.u32 4294901760, %v1437_v50  ;;  %v1453_v50 = vand.u32 4294901760, %v1452_v59  ;;  %v4247_v47 = vsel %vm483_vm11, 1.0, %v8440_v43 }
 0x11c   : > { %v1432_v60 = vand.u32 4294901760, %v1431_v3  ;;  %v4252_v22 = vsel %vm488_vm12, 1.0, %v8440_v43  ;;  %v627_v25 = vadd.f32 %v4247_v47, %v4199_v53  ;;  %vm486_vm12 = vcmp.eq.s32.totalorder %v5961_v5, %v6756_v17 }
 0x11d   : > { %v677_v4 = vpop.permute.xlu1 %676 }
 0x11e   : > { %1433 = vmatprep.mubr.f32.mxu0 %v1432_v60  ;;  %vm725_vm10 = vcmp.eq.s32.totalorder %v5967_v55, %v677_v4  ;;  %vm723_vm15 = vcmp.eq.s32.totalorder %v5961_v5, %v677_v4  ;;  %vm724_vm1 = vcmp.eq.s32.totalorder %v5984_v11, %v677_v4  ;;  %v4200_v60 = vsel %vm244_vm0, 1.0, %v8440_v43 }
 0x11f   : > { %v4297_v61 = vsel %vm725_vm10, 1.0, %v8440_v43  ;;  %1439 = vmatmul.mubr.f32.gmra.mxu0 %v1438_v30  ;;  %v4296_v4 = vsel %vm724_vm1, 1.0, %v8440_v43 }
 0x120   : > { %v869_v27 = vadd.f32 %v4297_v61, %v629_v57  ;;  %1448 = vmatprep.mubr.f32.mxu0 %v1447_v58  ;;  %v4295_v57 = vsel %vm723_vm15, 1.0, %v8440_v43  ;;  %v4205_v58 = vsel %vm249_vm2, 1.0, %v8440_v43  ;;  %v4206_v61 = vsel %vm250_vm3, 1.0, %v8440_v43 }
 0x121   : > { %v867_v47 = vadd.f32 %v4295_v57, %v627_v25  ;;  %vm487_vm15 = vcmp.eq.s32.totalorder %v5984_v11, %v6756_v17 }
 0x122   : > { %v200_v3 = vpop.permute.xlu1 %199 }
 0x123   : > { %1454 = vmatmul.mubr.f32.gmra.mxu0 %v1453_v50  ;;  %vm248_vm4 = vcmp.eq.s32.totalorder %v5967_v55, %v200_v3  ;;  %v628_v50 = vadd.f32 %v4248_v21, %v4200_v60  ;;  %vm246_vm13 = vcmp.eq.s32.totalorder %v5961_v5, %v200_v3  ;;  %vm247_vm0 = vcmp.eq.s32.totalorder %v5984_v11, %v200_v3 }
 0x124   : > { %v4204_v30 = vsel %vm248_vm4, 1.0, %v8440_v43  ;;  %v4202_v44 = vsel %vm246_vm13, 1.0, %v8440_v43  ;;  %vm970_vm4 = vcmp.eq.s32.totalorder %v5984_v11, %v6734_v34  ;;  %v4203_v2 = vsel %vm247_vm0, 1.0, %v8440_v43 }
 0x125   : > { %v632_v59 = vadd.f32 %v4252_v22, %v4204_v30  ;;  %v868_v22 = vadd.f32 %v4296_v4, %v628_v50  ;;  %v4207_v50 = vsel %vm251_vm6, 1.0, %v8440_v43  ;;  %vm971_vm6 = vcmp.eq.s32.totalorder %v5967_v55, %v6734_v34 }
 0x127   : > { %v917_v53 = vpop.permute.xlu1 %916 }
 0x128   : > { %vm963_vm9 = vcmp.eq.s32.totalorder %v5961_v5, %v917_v53  ;;  %vm964_vm10 = vcmp.eq.s32.totalorder %v5984_v11, %v917_v53  ;;  %vm965_vm11 = vcmp.eq.s32.totalorder %v5967_v55, %v917_v53  ;;  %v4301_v53 = vsel %vm729_vm5, 1.0, %v8440_v43 }
 0x129   : > { %v4343_v21 = vsel %vm963_vm9, 1.0, %v8440_v43  ;;  %v4344_v30 = vsel %vm964_vm10, 1.0, %v8440_v43  ;;  %v4345_v60 = vsel %vm965_vm11, 1.0, %v8440_v43 }
 0x12a   : > { %v1107_v57 = vadd.f32 %v4343_v21, %v867_v47  ;;  %v1108_v25 = vadd.f32 %v4344_v30, %v868_v22  ;;  %v6803_v4 = vadd.f32 %v4345_v60, %v869_v27  ;;  %v4303_v27 = vsel %vm731_vm8, 1.0, %v8440_v43 }
 0x12b   : > { %v4250_v21 = vsel %vm486_vm12, 1.0, %v8440_v43 }
 0x12c   : > { %8513 = vst [vmem:[#allocation89_spill] sm:$0xff] %v6803_v4  ;;  %v6825_v24 = vand.u32 4294901760, %v1108_v25  ;;  %v6827_v47 = vand.u32 4294901760, %v1107_v57  ;;  %v680_v22 = vpop.permute.xlu1 %679  ;;  %v630_v4 = vadd.f32 %v4250_v21, %v4202_v44 }
 0x12d   : > { %vm728_vm1 = vcmp.eq.s32.totalorder %v5967_v55, %v680_v22  ;;  %vm726_vm2 = vcmp.eq.s32.totalorder %v5961_v5, %v680_v22  ;;  %vm727_vm3 = vcmp.eq.s32.totalorder %v5984_v11, %v680_v22  ;;  %v4251_v22 = vsel %vm487_vm15, 1.0, %v8440_v43 }
 0x12e   : > { %8514 = vst [vmem:[#allocation90_spill] sm:$0xff] %v6825_v24  ;;  %8515 = vst [vmem:[#allocation91_spill] sm:$0xff] %v6827_v47  ;;  %v6837_v30 = vsub.f32 %v1108_v25, %v6825_v24  ;;  %v6840_v60 = vsub.f32 %v1107_v57, %v6827_v47  ;;  %1844 = vmatprep.mubr.f32.mxu1 %v6825_v24  ;;  %v4349_v25 = vsel %vm969_vm14, 1.0, %v8440_v43  ;;  %v4300_v57 = vsel %vm728_vm1, 1.0, %v8440_v43 }
 0x12f   : > { %1846 = vmatmul.mubr.f32.gmra.mxu1 %v6827_v47  ;;  %v872_v46 = vadd.f32 %v4300_v57, %v632_v59  ;;  %v4298_v32 = vsel %vm726_vm2, 1.0, %v8440_v43  ;;  %v4299_v26 = vsel %vm727_vm3, 1.0, %v8440_v43  ;;  %v631_v41 = vadd.f32 %v4251_v22, %v4203_v2 }
 0x130   : > { %8516 = vst [vmem:[#allocation92_spill] sm:$0xff] %v6837_v30  ;;  %v8327_v49 = vand.u32 4294901760, %v6837_v30  ;;  %v8338_v31 = vand.u32 4294901760, %v6840_v60 }
 0x131   : > { %v443_v47 = vpop.permute.xlu1 %442 }
 0x132   : > { %vm489_vm5 = vcmp.eq.s32.totalorder %v5961_v5, %v443_v47  ;;  %vm490_vm7 = vcmp.eq.s32.totalorder %v5984_v11, %v443_v47  ;;  %vm491_vm8 = vcmp.eq.s32.totalorder %v5967_v55, %v443_v47  ;;  %v1461_v17 = vsub.f32 %v6837_v30, %v8327_v49 }
 0x133   : > { %v4253_v59 = vsel %vm489_vm5, 1.0, %v8440_v43  ;;  %v4254_v3 = vsel %vm490_vm7, 1.0, %v8440_v43  ;;  %v4255_v21 = vsel %vm491_vm8, 1.0, %v8440_v43  ;;  %v1467_v44 = vsub.f32 %v6840_v60, %v8338_v31 }
 0x134   : > { %v633_v57 = vadd.f32 %v4253_v59, %v4205_v58  ;;  %v634_v24 = vadd.f32 %v4254_v3, %v4206_v61  ;;  %v635_v6 = vadd.f32 %v4255_v21, %v4207_v50  ;;  %v1462_v56 = vand.u32 4294901760, %v1461_v17 }
 0x135   : > { %v4350_v47 = vsel %vm970_vm4, 1.0, %v8440_v43  ;;  %v4351_v49 = vsel %vm971_vm6, 1.0, %v8440_v43  ;;  %v1468_v52 = vand.u32 4294901760, %v1467_v44  ;;  %v870_v30 = vadd.f32 %v4298_v32, %v630_v4 }
 0x136   : > { %v873_v1 = vadd.f32 %v4301_v53, %v633_v57  ;;  %v874_v42 = vadd.f32 %v4302_v62, %v634_v24  ;;  %v875_v31 = vadd.f32 %v4303_v27, %v635_v6  ;;  %1463 = vmatprep.mubr.f32.mxu0 %v1462_v56  ;;  %v920_v58 = vpop.permute.xlu1 %919  ;;  %v871_v61 = vadd.f32 %v4299_v26, %v631_v41 }
 0x137   : > { %vm966_vm9 = vcmp.eq.s32.totalorder %v5961_v5, %v920_v58  ;;  %vm967_vm10 = vcmp.eq.s32.totalorder %v5984_v11, %v920_v58  ;;  %vm968_vm11 = vcmp.eq.s32.totalorder %v5967_v55, %v920_v58  ;;  %1469 = vmatmul.mubr.f32.gmra.mxu0 %v1468_v52 }
 0x138   : > { %v6889_v50 = vadd.f32 %v4351_v49, %v875_v31  ;;  %v4346_v34 = vsel %vm966_vm9, 1.0, %v8440_v43  ;;  %v4347_v2 = vsel %vm967_vm10, 1.0, %v8440_v43  ;;  %v4348_v32 = vsel %vm968_vm11, 1.0, %v8440_v43 }
 0x139   : > { %v1110_v62 = vadd.f32 %v4346_v34, %v870_v30  ;;  %v1111_v6 = vadd.f32 %v4347_v2, %v871_v61  ;;  %v6894_v56 = vadd.f32 %v4348_v32, %v872_v46  ;;  %v1114_v26 = vadd.f32 %v4350_v47, %v874_v42  ;;  %v449_v2 = vpop.permute.xlu0 %448 }
 0x13a   : > { %8517 = vst [vmem:[#allocation93_spill] sm:$0xff] %v6889_v50  ;;  %v1113_v41 = vadd.f32 %v4349_v25, %v873_v1  ;;  %vm497_vm0 = vcmp.eq.s32.totalorder %v5967_v55, %v449_v2  ;;  %vm495_vm7 = vcmp.eq.s32.totalorder %v5961_v5, %v449_v2  ;;  %vm496_vm11 = vcmp.eq.s32.totalorder %v5984_v11, %v449_v2 }
 0x13b   : > { %8518 = vst [vmem:[#allocation94_spill] sm:$0xff] %v6894_v56  ;;  %v6896_v4 = vand.u32 4294901760, %v1111_v6  ;;  %v6898_v53 = vand.u32 4294901760, %v1110_v62  ;;  %v206_v27 = vpop.permute.xlu1 %205  ;;  %v6900_v52 = vand.u32 4294901760, %v1114_v26 }
 0x13c   : > { %v6902_v49 = vand.u32 4294901760, %v1113_v41  ;;  %vm254_vm12 = vcmp.eq.s32.totalorder %v5967_v55, %v206_v27  ;;  %vm252_vm2 = vcmp.eq.s32.totalorder %v5961_v5, %v206_v27  ;;  %vm253_vm4 = vcmp.eq.s32.totalorder %v5984_v11, %v206_v27 }
 0x13d   : > { %8519 = vst [vmem:[#allocation95_spill] sm:$0xff] %v6898_v53  ;;  %8520 = vst [vmem:[#allocation96_spill] sm:$0xff] %v6900_v52  ;;  %v6905_v31 = vsub.f32 %v1111_v6, %v6896_v4  ;;  %v6908_v24 = vsub.f32 %v1110_v62, %v6898_v53  ;;  %1851 = vmatprep.mubr.f32.mxu1 %v6896_v4  ;;  %v6913_v42 = vsub.f32 %v1114_v26, %v6900_v52 }
 0x13e   : > { %8521 = vst [vmem:[#allocation97_spill] sm:$0xff] %v6902_v49  ;;  %1853 = vmatmul.mubr.f32.gmra.mxu1 %v6898_v53  ;;  %v6916_v1 = vsub.f32 %v1113_v41, %v6902_v49  ;;  %v4210_v44 = vsel %vm254_vm12, 1.0, %v8440_v43  ;;  %v4209_v27 = vsel %vm253_vm4, 1.0, %v8440_v43 }
 0x13f   : > { %1858 = vmatprep.mubr.f32.mxu1 %v6900_v52  ;;  %v8342_v46 = vand.u32 4294901760, %v6905_v31  ;;  %v8341_v30 = vand.u32 4294901760, %v6908_v24  ;;  %v8340_v25 = vand.u32 4294901760, %v6913_v42 }
 0x140   : > { %v446_v22 = vpop.permute.xlu1 %445  ;;  %v8339_v3 = vand.u32 4294901760, %v6916_v1 }
 0x141   : > { %v1476_v17 = vsub.f32 %v6905_v31, %v8342_v46  ;;  %v1482_v59 = vsub.f32 %v6908_v24, %v8341_v30  ;;  %vm494_vm13 = vcmp.eq.s32.totalorder %v5967_v55, %v446_v22  ;;  %v1491_v21 = vsub.f32 %v6913_v42, %v8340_v25 }
 0x142   : > { %1860 = vmatmul.mubr.f32.gmra.mxu1 %v6902_v49  ;;  %v4258_v57 = vsel %vm494_vm13, 1.0, %v8440_v43  ;;  %v1497_v32 = vsub.f32 %v6916_v1, %v8339_v3  ;;  %vm492_vm15 = vcmp.eq.s32.totalorder %v5961_v5, %v446_v22  ;;  %vm493_vm1 = vcmp.eq.s32.totalorder %v5984_v11, %v446_v22 }
 0x143   : > { %v1477_v47 = vand.u32 4294901760, %v1476_v17  ;;  %v638_v58 = vadd.f32 %v4258_v57, %v4210_v44  ;;  %v1483_v61 = vand.u32 4294901760, %v1482_v59  ;;  %v1492_v34 = vand.u32 4294901760, %v1491_v21 }
 0x144   : > { %v1498_v26 = vand.u32 4294901760, %v1497_v32  ;;  %v4256_v17 = vsel %vm492_vm15, 1.0, %v8440_v43  ;;  %v4261_v59 = vsel %vm497_vm0, 1.0, %v8440_v43  ;;  %v4257_v44 = vsel %vm493_vm1, 1.0, %v8440_v43 }
 0x145   : > { %1478 = vmatprep.mubr.f32.mxu0 %v1477_v47  ;;  %v686_v62 = vpop.permute.xlu1 %685  ;;  %v4208_v22 = vsel %vm252_vm2, 1.0, %v8440_v43 }
 0x146   : > { %1484 = vmatmul.mubr.f32.gmra.mxu0 %v1483_v61  ;;  %vm734_vm14 = vcmp.eq.s32.totalorder %v5967_v55, %v686_v62  ;;  %vm732_vm3 = vcmp.eq.s32.totalorder %v5961_v5, %v686_v62  ;;  %vm733_vm6 = vcmp.eq.s32.totalorder %v5984_v11, %v686_v62  ;;  %v636_v61 = vadd.f32 %v4256_v17, %v4208_v22 }
 0x147   : > { %1493 = vmatprep.mubr.f32.mxu0 %v1492_v34  ;;  %v4306_v6 = vsel %vm734_vm14, 1.0, %v8440_v43  ;;  %v4304_v57 = vsel %vm732_vm3, 1.0, %v8440_v43  ;;  %v4305_v34 = vsel %vm733_vm6, 1.0, %v8440_v43  ;;  %v637_v62 = vadd.f32 %v4257_v44, %v4209_v27 }
 0x148   : > { %v878_v41 = vadd.f32 %v4306_v6, %v638_v58  ;;  %v6956_v58 = vpop.permute.xlu0 %211  ;;  %v876_v6 = vadd.f32 %v4304_v57, %v636_v61 }
 0x149   : > { %v877_v3 = vadd.f32 %v4305_v34, %v637_v62  ;;  %vm258_vm13 = vcmp.eq.s32.totalorder %v5961_v5, %v6956_v58  ;;  %vm260_vm14 = vcmp.eq.s32.totalorder %v5967_v55, %v6956_v58  ;;  %vm259_vm0 = vcmp.eq.s32.totalorder %v5984_v11, %v6956_v58 }
 0x14a   : > { %1499 = vmatmul.mubr.f32.gmra.mxu0 %v1498_v26  ;;  %v209_v21 = vpop.permute.xlu1 %208  ;;  %v4214_v62 = vsel %vm258_vm13, 1.0, %v8440_v43 }
 0x14b   : > { %vm257_vm5 = vcmp.eq.s32.totalorder %v5967_v55, %v209_v21  ;;  %vm255_vm12 = vcmp.eq.s32.totalorder %v5961_v5, %v209_v21  ;;  %vm256_vm2 = vcmp.eq.s32.totalorder %v5984_v11, %v209_v21 }
 0x14c   : > { %v4213_v47 = vsel %vm257_vm5, 1.0, %v8440_v43  ;;  %v6970_v57 = vpop.permute.xlu0 %691 }
 0x14d   : > { %v641_v32 = vadd.f32 %v4261_v59, %v4213_v47  ;;  %v4259_v47 = vsel %vm495_vm7, 1.0, %v8440_v43  ;;  %vm740_vm1 = vcmp.eq.s32.totalorder %v5967_v55, %v6970_v57  ;;  %vm738_vm6 = vcmp.eq.s32.totalorder %v5961_v5, %v6970_v57 }
 0x14f   : > { %v926_v26 = vpop.permute.xlu1 %925 }
 0x150   : > { %vm972_vm8 = vcmp.eq.s32.totalorder %v5961_v5, %v926_v26  ;;  %vm973_vm9 = vcmp.eq.s32.totalorder %v5984_v11, %v926_v26  ;;  %vm974_vm10 = vcmp.eq.s32.totalorder %v5967_v55, %v926_v26 }
 0x151   : > { %v4352_v25 = vsel %vm972_vm8, 1.0, %v8440_v43  ;;  %v4353_v30 = vsel %vm973_vm9, 1.0, %v8440_v43  ;;  %v4354_v17 = vsel %vm974_vm10, 1.0, %v8440_v43  ;;  %vm739_vm9 = vcmp.eq.s32.totalorder %v5984_v11, %v6970_v57 }
 0x152   : > { %v1116_v59 = vadd.f32 %v4352_v25, %v876_v6  ;;  %v1117_v44 = vadd.f32 %v4353_v30, %v877_v3  ;;  %v6968_v22 = vadd.f32 %v4354_v17, %v878_v41  ;;  %v4260_v30 = vsel %vm496_vm11, 1.0, %v8440_v43 }
 0x153   : > { %v4211_v25 = vsel %vm255_vm12, 1.0, %v8440_v43  ;;  %v4216_v6 = vsel %vm260_vm14, 1.0, %v8440_v43 }
 0x154   : > { %8522 = vst [vmem:[#allocation98_spill] sm:$0xff] %v6968_v22  ;;  %v6974_v27 = vand.u32 4294901760, %v1117_v44  ;;  %v6976_v61 = vand.u32 4294901760, %v1116_v59  ;;  %v689_v34 = vpop.permute.xlu1 %688  ;;  %v4312_v22 = vsel %vm740_vm1, 1.0, %v8440_v43 }
 0x155   : > { %vm737_vm15 = vcmp.eq.s32.totalorder %v5967_v55, %v689_v34  ;;  %vm735_vm3 = vcmp.eq.s32.totalorder %v5961_v5, %v689_v34  ;;  %vm736_vm4 = vcmp.eq.s32.totalorder %v5984_v11, %v689_v34 }
 0x156   : > { %8523 = vst [vmem:[#allocation99_spill] sm:$0xff] %v6974_v27  ;;  %8524 = vst [vmem:[#allocation100_spill] sm:$0xff] %v6976_v61  ;;  %v6991_v3 = vsub.f32 %v1117_v44, %v6974_v27  ;;  %v6994_v2 = vsub.f32 %v1116_v59, %v6976_v61  ;;  %1865 = vmatprep.mubr.f32.mxu1 %v6974_v27  ;;  %v4309_v41 = vsel %vm737_vm15, 1.0, %v8440_v43  ;;  %v4212_v59 = vsel %vm256_vm2, 1.0, %v8440_v43 }
 0x157   : > { %1867 = vmatmul.mubr.f32.gmra.mxu1 %v6976_v61  ;;  %v881_v21 = vadd.f32 %v4309_v41, %v641_v32  ;;  %v639_v44 = vadd.f32 %v4259_v47, %v4211_v25  ;;  %v4307_v47 = vsel %vm735_vm3, 1.0, %v8440_v43  ;;  %v4308_v25 = vsel %vm736_vm4, 1.0, %v8440_v43 }
 0x158   : > { %v8347_v26 = vand.u32 4294901760, %v6991_v3  ;;  %v1511_v17 = vand.u32 4294901760, %v6994_v2  ;;  %v640_v56 = vadd.f32 %v4260_v30, %v4212_v59  ;;  %v4310_v30 = vsel %vm738_vm6, 1.0, %v8440_v43 }
 0x159   : > { %v452_v46 = vpop.permute.xlu1 %451  ;;  %v879_v52 = vadd.f32 %v4307_v47, %v639_v44 }
 0x15a   : > { %vm498_vm5 = vcmp.eq.s32.totalorder %v5961_v5, %v452_v46  ;;  %vm499_vm7 = vcmp.eq.s32.totalorder %v5984_v11, %v452_v46  ;;  %vm500_vm8 = vcmp.eq.s32.totalorder %v5967_v55, %v452_v46  ;;  %v1506_v32 = vsub.f32 %v6991_v3, %v8347_v26 }
 0x15b   : > { %v4264_v41 = vsel %vm500_vm8, 1.0, %v8440_v43  ;;  %v1512_v50 = vsub.f32 %v6994_v2, %v1511_v17  ;;  %v4262_v61 = vsel %vm498_vm5, 1.0, %v8440_v43  ;;  %v4215_v26 = vsel %vm259_vm0, 1.0, %v8440_v43 }
 0x15c   : > { %v644_v46 = vadd.f32 %v4264_v41, %v4216_v6  ;;  %v1507_v27 = vand.u32 4294901760, %v1506_v32  ;;  %v4263_v34 = vsel %vm499_vm7, 1.0, %v8440_v43  ;;  %v880_v53 = vadd.f32 %v4308_v25, %v640_v56 }
 0x15d   : > { %v1513_v49 = vand.u32 4294901760, %v1512_v50  ;;  %v642_v32 = vadd.f32 %v4262_v61, %v4214_v62  ;;  %v643_v58 = vadd.f32 %v4263_v34, %v4215_v26  ;;  %vm1163_vm0 = vcmask 392192  }
 0x15e   : > { %v884_v6 = vadd.f32 %v4312_v22, %v644_v46  ;;  %1508 = vmatprep.mubr.f32.mxu0 %v1507_v27  ;;  %v929_v59 = vpop.permute.xlu1 %928  ;;  %v4311_v22 = vsel %vm739_vm9, 1.0, %v8440_v43 }
 0x15f   : > { %vm975_vm10 = vcmp.eq.s32.totalorder %v5961_v5, %v929_v59  ;;  %vm976_vm11 = vcmp.eq.s32.totalorder %v5984_v11, %v929_v59  ;;  %vm977_vm12 = vcmp.eq.s32.totalorder %v5967_v55, %v929_v59  ;;  %1514 = vmatmul.mubr.f32.gmra.mxu0 %v1513_v49  ;;  %v882_v25 = vadd.f32 %v4310_v30, %v642_v32 }
 0x160   : > { %v4355_v50 = vsel %vm975_vm10, 1.0, %v8440_v43  ;;  %v4356_v56 = vsel %vm976_vm11, 1.0, %v8440_v43  ;;  %v4357_v44 = vsel %vm977_vm12, 1.0, %v8440_v43  ;;  %v883_v26 = vadd.f32 %v4311_v22, %v643_v58 }
 0x161   : > { %v1119_v27 = vadd.f32 %v4355_v50, %v879_v52  ;;  %v1120_v61 = vadd.f32 %v4356_v56, %v880_v53  ;;  %v7048_v62 = vadd.f32 %v4357_v44, %v881_v21  ;;  %v8525_v22 = vand.u32 4294901760, %v6175_v63 }
 0x162   : > { %v932_v47 = vpop.permute.xlu1 %931 }
 0x163   : > { %v7050_v41 = vand.u32 4294901760, %v1120_v61  ;;  %v7052_v49 = vand.u32 4294901760, %v1119_v27  ;;  %vm978_vm13 = vcmp.eq.s32.totalorder %v5961_v5, %v932_v47  ;;  %vm979_vm14 = vcmp.eq.s32.totalorder %v5984_v11, %v932_v47 }
 0x164   : > { %vm980_vm15 = vcmp.eq.s32.totalorder %v5967_v55, %v932_v47  ;;  %v4358_v57 = vsel %vm978_vm13, 1.0, %v8440_v43  ;;  %v4359_v21 = vsel %vm979_vm14, 1.0, %v8440_v43 }
 0x165   : > { %v7059_v52 = vsub.f32 %v1120_v61, %v7050_v41  ;;  %v7062_v53 = vsub.f32 %v1119_v27, %v7052_v49  ;;  %v4360_v46 = vsel %vm980_vm15, 1.0, %v8440_v43  ;;  %1872 = vmatprep.mubr.f32.mxu1 %v7050_v41  ;;  %v1122_v5 = vadd.f32 %v4358_v57, %v882_v25 }
 0x166   : > { %v1123_v34 = vadd.f32 %v4359_v21, %v883_v26  ;;  %v7067_v30 = vadd.f32 %v4360_v46, %v884_v6  ;;  %1874 = vmatmul.mubr.f32.gmra.mxu1 %v7052_v49  ;;  %v8526_v26 = vand.u32 4294901760, %v6217_v38  ;;  %v8527_v57 = vand.u32 4294901760, %v6188_v54 }
 0x167   : > { %v1520_v11 = vand.u32 4294901760, %v7059_v52  ;;  %v1526_v55 = vand.u32 4294901760, %v7062_v53  ;;  %v7074_v32 = vand.u32 4294901760, %v1122_v5 }
 0x168   : > { %v7072_v59 = vand.u32 4294901760, %v1123_v34 }
 0x169   : > { %v1521_v43 = vsub.f32 %v7059_v52, %v1520_v11  ;;  %v1527_v58 = vsub.f32 %v7062_v53, %v1526_v55  ;;  %v7086_v50 = vsub.f32 %v1122_v5, %v7074_v32  ;;  %v8528_v5 = vand.u32 4294901760, %v6195_v20 }
 0x16a   : > { %v7083_v6 = vsub.f32 %v1123_v34, %v7072_v59  ;;  %1879 = vmatprep.mubr.f32.mxu1 %v7072_v59  ;;  %v8529_v34 = vand.u32 4294901760, %v6241_v39 }
 0x16b   : > { %1881 = vmatmul.mubr.f32.gmra.mxu1 %v7074_v32  ;;  %v1522_v56 = vand.u32 4294901760, %v1521_v43  ;;  %v1528_v44 = vand.u32 4294901760, %v1527_v58  ;;  %v1541_v61 = vand.u32 4294901760, %v7086_v50  ;;  %v8550_v43 = vld [vmem:[#allocation12_spill] sm:$0xff]  ;;  %v8552_v58 = vld [vmem:[#allocation10_spill] sm:$0xff] }
 0x16c   : > { %2258 = vmatprep.mubr.f32.mxu1 %v8525_v22  ;;  %v1535_v27 = vand.u32 4294901760, %v7083_v6 }
 0x16d   : > { %1523 = vmatprep.mubr.f32.mxu0 %v1522_v56  ;;  %v1542_v25 = vsub.f32 %v7086_v50, %v1541_v61 }
 0x16e   : > { %1529 = vmatmul.mubr.f32.gmra.mxu0 %v1528_v44  ;;  %v1536_v47 = vsub.f32 %v7083_v6, %v1535_v27  ;;  %v8553_v44 = vld [vmem:[#allocation13_spill] sm:$0xff] }
 0x16f   : > { %2262 = vmatmul.mubr.f32.vlgmr.msra.gmra.mxu1 %v8526_v26  ;;  %v1543_v46 = vand.u32 4294901760, %v1542_v25  ;;  %v8554_v22 = vand.u32 4294901760, %v8553_v44  ;;  %v8583_v44 = vld [vmem:[#allocation88_spill] sm:$0xff] }
 0x170   : > { %2269 = vmatprep.mubr.f32.mxu1 %v8527_v57  ;;  %v1537_v21 = vand.u32 4294901760, %v1536_v47  ;;  %4768 = vmatpush3.msra.mxu1 %v5441_v7  ;;  %v8530_v7 = vand.u32 4294901760, %v6253_v35  ;;  %v8555_v47 = vld [vmem:[#allocation11_spill] sm:$0xff]  ;;  %v8560_v57 = vld [vmem:[#allocation14_spill] sm:$0xff] }
 0x171   : > { %4769 = vmatprep.subr.mxu1 %v5443_v8  ;;  %v8531_v8 = vand.u32 4294901760, %v5457_v13  ;;  %v8536_v13 = vand.u32 4294901760, %v6430_v33 }
 0x172   : > { %1538 = vmatprep.mubr.f32.mxu0 %v1537_v21  ;;  %4770 = vmatpush3.msra.mxu1 %v5445_v9  ;;  %v8532_v9 = vand.u32 4294901760, %v6333_v10  ;;  %v8561_v21 = vand.u32 4294901760, %v8560_v57  ;;  %v8587_v57 = vld [vmem:[#allocation28_spill] sm:$0xff] }
 0x173   : > { %1544 = vmatmul.mubr.f32.gmra.mxu0 %v1543_v46  ;;  %2273 = vmatmul.mubr.f32.gmra.mxu1 %v8528_v5  ;;  %v8562_v46 = vld [vmem:[#allocation17_spill] sm:$0xff] }
 0x174   : > { %2016 = vmatprep.mubr.f32.mxu0 %v6175_v63  ;;  %2280 = vmatprep.mubr.f32.mxu1 %v8529_v34  ;;  %v8533_v63 = vand.u32 4294901760, %v5460_v14  ;;  %v8538_v14 = vand.u32 4294901760, %v5521_v36  ;;  %v8563_v34 = vld [vmem:[#allocation15_spill] sm:$0xff] }
 0x175   : > { %4771 = vmatprep.subr.mxu1 %v5453_v12  ;;  %v8534_v12 = vand.u32 4294901760, %v5463_v15  ;;  %v8539_v15 = vand.u32 4294901760, %v6421_v40 }
 0x176   : > { %4772 = vmatpush3.msra.mxu1 %v5485_v23  ;;  %v8535_v23 = vand.u32 4294901760, %v6336_v0 }
 0x177   : > { %2019 = vmatmul.mubr.f32.vlgmr.msra.gmra.mxu0 %v6217_v38  ;;  %2284 = vmatmul.mubr.f32.gmra.mxu1 %v8530_v7  ;;  %v8545_v38 = vld [vmem:[#allocation9_spill] sm:$0xff]  ;;  %v8564_v7 = vand.u32 4294901760, %v8563_v34  ;;  %v8592_v34 = vld [vmem:[#allocation27_spill] sm:$0xff] }
 0x178   : > { %4688 = vmatpush3.msra.mxu0 %v8531_v8  ;;  %2025 = vmatprep.mubr.f32.mxu0 %v6188_v54  ;;  %v8537_v54 = vand.u32 4294901760, %v5471_v18  ;;  %v8541_v18 = vand.u32 4294901760, %v5524_v37  ;;  %v8551_v37 = vand.u32 4294901760, %v8550_v43  ;;  %v8565_v8 = vld [vmem:[#allocation18_spill] sm:$0xff]  ;;  %v8582_v43 = vld [vmem:[#allocation25_spill] sm:$0xff] }
 0x179   : > { %2291 = vmatprep.mubr.f32.mxu1 %v8532_v9  ;;  %4689 = vmatprep.subr.mxu0 %v8533_v63  ;;  %v8568_v9 = vld [vmem:[#allocation16_spill] sm:$0xff] }
 0x17a   : > { %4690 = vmatpush3.msra.mxu0 %v8534_v12  ;;  %4773 = vmatprep.subr.mxu1 %v5498_v28  ;;  %v8540_v28 = vand.u32 4294901760, %v6513_v19  ;;  %v8569_v63 = vand.u32 4294901760, %v8568_v9  ;;  %v8570_v12 = vld [vmem:[#allocation19_spill] sm:$0xff] }
 0x17b   : > { %2028 = vmatmul.mubr.f32.gmra.mxu0 %v6195_v20  ;;  %2295 = vmatmul.mubr.f32.gmra.mxu1 %v8535_v23  ;;  %v8542_v20 = vld [vmem:[#allocation8_spill] sm:$0xff] }
 0x17c   : > { %2034 = vmatprep.mubr.f32.mxu0 %v6241_v39  ;;  %2302 = vmatprep.mubr.f32.mxu1 %v8536_v13  ;;  %v8571_v13 = vld [vmem:[#allocation20_spill] sm:$0xff] }
 0x17d   : > { %4691 = vmatprep.subr.mxu0 %v8537_v54  ;;  %4774 = vmatpush3.msra.mxu1 %v5500_v29  ;;  %v8543_v29 = vld [vmem:[#allocation7_spill] sm:$0xff]  ;;  %v8572_v54 = vand.u32 4294901760, %v8571_v13 }
 0x17e   : > { %4692 = vmatpush3.msra.mxu0 %v8538_v14  ;;  %4775 = vmatprep.subr.mxu1 %v5549_v51  ;;  %v8544_v36 = vand.u32 4294901760, %v8543_v29  ;;  %v8546_v51 = vld [vmem:[#allocation77_spill] sm:$0xff]  ;;  %v4479_v56 = vpop.f32.mrf.mxu1  ;;  %v8573_v14 = vld [vmem:[#allocation23_spill] sm:$0xff] }
 0x17f   : > { %2037 = vmatmul.mubr.f32.gmra.mxu0 %v6253_v35  ;;  %2306 = vmatmul.mubr.f32.gmra.mxu1 %v8539_v15  ;;  %v8547_v39 = vand.u32 4294901760, %v8546_v51  ;;  %v8548_v35 = vld [vmem:[#allocation78_spill] sm:$0xff]  ;;  %v8574_v15 = vand.u32 4294901760, %v6728_v45  ;;  %v8577_v29 = vld [vmem:[#allocation21_spill] sm:$0xff] }
 0x180   : > { %2043 = vmatprep.mubr.f32.mxu0 %v6333_v10  ;;  %2313 = vmatprep.mubr.f32.mxu1 %v8540_v28  ;;  %v8549_v10 = vand.u32 4294901760, %v8548_v35  ;;  %v4480_v5 = vpop.f32.mrf.mxu1 }
 0x181   : > { %4693 = vmatprep.subr.mxu0 %v8541_v18  ;;  %4776 = vmatpush3.msra.mxu1 %v8542_v20  ;;  %v8575_v18 = vld [vmem:[#allocation86_spill] sm:$0xff] }
 0x182   : > { %4694 = vmatpush3.msra.mxu0 %v8544_v36  ;;  %4777 = vmatprep.subr.mxu1 %v8545_v38  ;;  %v4482_v23 = vpop.f32.mrf.mxu1  ;;  %v8576_v20 = vand.u32 4294901760, %v8575_v18  ;;  %v8578_v36 = vand.u32 4294901760, %v8577_v29  ;;  %v8579_v38 = vld [vmem:[#allocation24_spill] sm:$0xff] }
 0x183   : > { %2046 = vmatmul.mubr.f32.gmra.mxu0 %v6336_v0  ;;  %2317 = vmatmul.mubr.f32.gmra.mxu1 %v8547_v39  ;;  %v8556_v0 = vld [vmem:[#allocation79_spill] sm:$0xff] }
 0x184   : > { %2052 = vmatprep.mubr.f32.mxu0 %v6430_v33  ;;  %2324 = vmatprep.mubr.f32.mxu1 %v8549_v10  ;;  %v8557_v25 = vand.u32 4294901760, %v8556_v0  ;;  %v8558_v33 = vld [vmem:[#allocation80_spill] sm:$0xff] }
 0x185   : > { %4695 = vmatprep.subr.mxu0 %v8551_v37  ;;  %4778 = vmatpush3.msra.mxu1 %v8552_v58  ;;  %v8559_v26 = vand.u32 4294901760, %v8558_v33  ;;  %v4481_v37 = vadd.f32 %v4480_v5, %v4479_v56  ;;  %v8590_v5 = vld [vmem:[#allocation29_spill] sm:$0xff] }
 0x186   : > { %4696 = vmatpush3.msra.mxu0 %v8554_v22  ;;  %4779 = vmatprep.subr.mxu1 %v8555_v47  ;;  %v8584_v22 = vand.u32 4294901760, %v8583_v44 }
 0x187   : > { %2055 = vmatmul.mubr.f32.gmra.mxu0 %v6421_v40  ;;  %2328 = vmatmul.mubr.f32.gmra.mxu1 %v8557_v25  ;;  %v8566_v40 = vand.u32 4294901760, %v6665_v16  ;;  %v8585_v25 = vld [vmem:[#allocation92_spill] sm:$0xff] }
 0x188   : > { %2061 = vmatprep.mubr.f32.mxu0 %v6513_v19  ;;  %2335 = vmatprep.mubr.f32.mxu1 %v8559_v26  ;;  %v8567_v19 = vand.u32 4294901760, %v6731_v48 }
 0x189   : > { %4697 = vmatprep.subr.mxu0 %v8561_v21  ;;  %4780 = vmatpush3.msra.mxu1 %v8562_v46  ;;  %v8588_v21 = vand.u32 4294901760, %v8587_v57  ;;  %v8589_v46 = vld [vmem:[#allocation26_spill] sm:$0xff] }
 0x18a   : > { %4698 = vmatpush3.msra.mxu0 %v8564_v7  ;;  %4781 = vmatprep.subr.mxu1 %v8565_v8 }
 0x18b   : > { %2064 = vmatmul.mubr.f32.gmra.mxu0 %v8546_v51  ;;  %2339 = vmatmul.mubr.f32.gmra.mxu1 %v8566_v40  ;;  %v4483_v51 = vpop.f32.mrf.mxu1  ;;  %v1162_v40 = vld [vmem:[%s8131_s1 + $0x128] sm:$0xff] }
 0x18c   : > { %2070 = vmatprep.mubr.f32.mxu0 %v8548_v35  ;;  %2346 = vmatprep.mubr.f32.mxu1 %v8567_v19  ;;  %v8580_v35 = vld [vmem:[#allocation22_spill] sm:$0xff]  ;;  %v4484_v7 = vadd.f32 %v4483_v51, %v4482_v23 }
 0x18d   : > { %4699 = vmatprep.subr.mxu0 %v8569_v63  ;;  %4782 = vmatpush3.msra.mxu1 %v8570_v12  ;;  %v4399_v28 = vpop.f32.mrf.mxu0  ;;  %v8581_v10 = vand.u32 4294901760, %v8580_v35  ;;  %v4485_v47 = vpop.f32.mrf.mxu1  ;;  %v8594_v63 = vand.u32 4294901760, %v6905_v31  ;;  %v8595_v23 = vld [vmem:[#allocation30_spill] sm:$0xff] }
 0x18e   : > { %4700 = vmatpush3.msra.mxu0 %v8572_v54  ;;  %4783 = vmatprep.subr.mxu1 %v8573_v14  ;;  %v8596_v13 = vand.u32 4294901760, %v8595_v23  ;;  %v8598_v14 = vld [vmem:[#allocation31_spill] sm:$0xff]  ;;  %v8618_v23 = vld [vmem:[#allocation44_spill] sm:$0xff] }
 0x18f   : > { %2073 = vmatmul.mubr.f32.gmra.mxu0 %v8556_v0  ;;  %2350 = vmatmul.mubr.f32.gmra.mxu1 %v8574_v15  ;;  %v4400_v39 = vpop.f32.mrf.mxu0  ;;  %v4486_v19 = vpop.f32.mrf.mxu1  ;;  %v8599_v15 = vand.u32 4294901760, %v8598_v14 }
 0x190   : > { %2079 = vmatprep.mubr.f32.mxu0 %v8558_v33  ;;  %2357 = vmatprep.mubr.f32.mxu1 %v8576_v20  ;;  %v4401_v58 = vadd.f32 %v4400_v39, %v4399_v28  ;;  %v8586_v33 = vand.u32 4294901760, %v8585_v25  ;;  %v8600_v28 = vld [vmem:[#allocation34_spill] sm:$0xff]  ;;  %v7230_v20 = vand.u32 4294901760, %v1162_v40  ;;  %v4487_v29 = vadd.f32 %v4486_v19, %v4485_v47 }
 0x191   : > { %4701 = vmatprep.subr.mxu0 %v8578_v36  ;;  %4784 = vmatpush3.msra.mxu1 %v8579_v38  ;;  %v8601_v36 = vand.u32 4294901760, %v6908_v24  ;;  %v1161_v38 = vld [vmem:[%s8131_s1 + $0x120] sm:$0xff]  ;;  %v8602_v39 = vand.u32 4294901760, %v6913_v42 }
 0x192   : > { %4702 = vmatpush3.msra.mxu0 %v8581_v10  ;;  %4785 = vmatprep.subr.mxu1 %v8582_v43  ;;  %v4402_v0 = vpop.f32.mrf.mxu0  ;;  %v7205_v26 = vadd.f32 %v4481_v37, %v4401_v58  ;;  %v8603_v10 = vld [vmem:[#allocation32_spill] sm:$0xff]  ;;  %v8606_v58 = vld [vmem:[#allocation35_spill] sm:$0xff]  ;;  %v7250_v47 = vsub.f32 %v1162_v40, %v7230_v20 }
 0x193   : > { %2082 = vmatmul.mubr.f32.gmra.mxu0 %v6665_v16  ;;  %2361 = vmatmul.mubr.f32.gmra.mxu1 %v8584_v22  ;;  %v8591_v16 = vand.u32 4294901760, %v8590_v5  ;;  %v8604_v43 = vand.u32 4294901760, %v8603_v10  ;;  %v8605_v37 = vld [vmem:[#allocation36_spill] sm:$0xff]  ;;  %v8608_v22 = vld [vmem:[#allocation39_spill] sm:$0xff] }
 0x194   : > { %2088 = vmatprep.mubr.f32.mxu0 %v6731_v48  ;;  %2368 = vmatprep.mubr.f32.mxu1 %v8586_v33  ;;  %v4403_v56 = vpop.f32.mrf.mxu0  ;;  %v8593_v48 = vand.u32 4294901760, %v6840_v60  ;;  %v1160_v33 = vld [vmem:[%s8131_s1 + $0x118] sm:$0xff] }
 0x195   : > { %4703 = vmatprep.subr.mxu0 %v8588_v21  ;;  %4786 = vmatpush3.msra.mxu1 %v8589_v46  ;;  %v4404_v8 = vadd.f32 %v4403_v56, %v4402_v0  ;;  %v4488_v51 = vpop.f32.mrf.mxu1  ;;  %v7252_v0 = vand.u32 4294901760, %v1161_v38  ;;  %v8610_v46 = vand.u32 4294901760, %v6991_v3  ;;  %v8611_v56 = vld [vmem:[#allocation37_spill] sm:$0xff] }
 0x196   : > { %4704 = vmatpush3.msra.mxu0 %v8591_v16  ;;  %4787 = vmatprep.subr.mxu1 %v8592_v34  ;;  %v4405_v9 = vpop.f32.mrf.mxu0  ;;  %v8612_v5 = vand.u32 4294901760, %v8611_v56  ;;  %v8613_v16 = vld [vmem:[#allocation40_spill] sm:$0xff]  ;;  %v8614_v34 = vld [vmem:[#allocation38_spill] sm:$0xff] }
 0x197   : > { %2091 = vmatmul.mubr.f32.gmra.mxu0 %v6728_v45  ;;  %2372 = vmatmul.mubr.f32.gmra.mxu1 %v8593_v48  ;;  %v7222_v12 = vadd.f32 %v4484_v7, %v4404_v8  ;;  %v8597_v45 = vld [vmem:[#allocation33_spill] sm:$0xff]  ;;  %v4489_v57 = vpop.f32.mrf.mxu1  ;;  %v8615_v7 = vand.u32 4294901760, %v8614_v34  ;;  %v7270_v48 = vand.u32 4294901760, %v7250_v47  ;;  %v7273_v40 = vsub.f32 %v1161_v38, %v7252_v0 }
 0x198   : > { %2097 = vmatprep.mubr.f32.mxu0 %v8575_v18  ;;  %2379 = vmatprep.mubr.f32.mxu1 %v8594_v63  ;;  %v4406_v54 = vpop.f32.mrf.mxu0  ;;  %v8616_v8 = vld [vmem:[#allocation41_spill] sm:$0xff]  ;;  %v4490_v19 = vadd.f32 %v4489_v57, %v4488_v51  ;;  %v8627_v51 = vld [vmem:[#allocation48_spill] sm:$0xff]  ;;  %v8634_v57 = vld [vmem:[#allocation50_spill] sm:$0xff] }
 0x199   : > { %4705 = vmatprep.subr.mxu0 %v8596_v13  ;;  %4788 = vmatpush3.msra.mxu1 %v8597_v45  ;;  %v4407_v18 = vadd.f32 %v4406_v54, %v4405_v9  ;;  %v8619_v13 = vand.u32 4294901760, %v8618_v23  ;;  %v8620_v45 = vld [vmem:[#allocation42_spill] sm:$0xff]  ;;  %v1159_v54 = vld [vmem:[%s8131_s1 + $0x110] sm:$0xff] }
 0x19a   : > { %4706 = vmatpush3.msra.mxu0 %v8599_v15  ;;  %4789 = vmatprep.subr.mxu1 %v8600_v28  ;;  %v7308_v28 = vand.u32 4294901760, %v1159_v54  ;;  %v8642_v23 = vld [vmem:[#allocation59_spill] sm:$0xff] }
 0x19b   : > { %2100 = vmatmul.mubr.f32.gmra.mxu0 %v8583_v44  ;;  %2383 = vmatmul.mubr.f32.gmra.mxu1 %v8601_v36  ;;  %v7241_v35 = vadd.f32 %v4487_v29, %v4407_v18  ;;  %v8607_v44 = vand.u32 4294901760, %v8606_v58  ;;  %v8624_v29 = vld [vmem:[#allocation47_spill] sm:$0xff]  ;;  %v8626_v36 = vld [vmem:[#allocation46_spill] sm:$0xff]  ;;  %v8631_v58 = vld [vmem:[#allocation49_spill] sm:$0xff] }
 0x19c   : > { %2106 = vmatprep.mubr.f32.mxu0 %v8585_v25  ;;  %2390 = vmatprep.mubr.f32.mxu1 %v8602_v39  ;;  %v8609_v25 = vand.u32 4294901760, %v6916_v1  ;;  %v8625_v18 = vand.u32 4294901760, %v8624_v29  ;;  %v8628_v39 = vand.u32 4294901760, %v8627_v51 }
 0x19d   : > { %4707 = vmatprep.subr.mxu0 %v8604_v43  ;;  %4790 = vmatpush3.msra.mxu1 %v8605_v37  ;;  %v8630_v43 = vld [vmem:[#allocation60_spill] sm:$0xff]  ;;  %v7330_v37 = vsub.f32 %v1159_v54, %v7308_v28  ;;  %v8643_v54 = vld [vmem:[#allocation63_spill] sm:$0xff] }
 0x19e   : > { %4708 = vmatpush3.msra.mxu0 %v8607_v44  ;;  %4791 = vmatprep.subr.mxu1 %v8608_v22  ;;  %v8632_v44 = vand.u32 4294901760, %v8631_v58  ;;  %v8633_v22 = vld [vmem:[#allocation52_spill] sm:$0xff]  ;;  %v8647_v58 = vld [vmem:[#allocation67_spill] sm:$0xff] }
 0x19f   : > { %2109 = vmatmul.mubr.f32.gmra.mxu0 %v6840_v60  ;;  %2394 = vmatmul.mubr.f32.gmra.mxu1 %v8609_v25  ;;  %v4408_v21 = vpop.f32.mrf.mxu0  ;;  %v4491_v38 = vpop.f32.mrf.mxu1 }
 0x1a0   : > { %2115 = vmatprep.mubr.f32.mxu0 %v6905_v31  ;;  %2401 = vmatprep.mubr.f32.mxu1 %v8610_v46  ;;  %v7275_v31 = vand.u32 4294901760, %v1160_v33  ;;  %v8636_v46 = vld [vmem:[#allocation61_spill] sm:$0xff] }
 0x1a1   : > { %4709 = vmatprep.subr.mxu0 %v8612_v5  ;;  %4792 = vmatpush3.msra.mxu1 %v8613_v16  ;;  %v4409_v60 = vpop.f32.mrf.mxu0  ;;  %v8637_v5 = vld [vmem:[#allocation58_spill] sm:$0xff]  ;;  %v7349_v16 = vand.u32 4294901760, %v7330_v37 }
 0x1a2   : > { %4710 = vmatpush3.msra.mxu0 %v8615_v7  ;;  %4793 = vmatprep.subr.mxu1 %v8616_v8  ;;  %v4410_v9 = vadd.f32 %v4409_v60, %v4408_v21  ;;  %v7300_v15 = vsub.f32 %v1160_v33, %v7275_v31  ;;  %v4492_v33 = vpop.f32.mrf.mxu1  ;;  %v1157_v21 = vld [vmem:[%s8131_s1 + $0x100] sm:$0xff] }
 0x1a3   : > { %2118 = vmatmul.mubr.f32.gmra.mxu0 %v6908_v24  ;;  %2405 = vmatmul.mubr.f32.gmra.mxu1 %v1511_v17  ;;  %v8621_v24 = vld [vmem:[#allocation45_spill] sm:$0xff]  ;;  %v8623_v17 = vld [vmem:[#allocation43_spill] sm:$0xff]  ;;  %v7356_v8 = vand.u32 4294901760, %v1157_v21 }
 0x1a4   : > { %2124 = vmatprep.mubr.f32.mxu0 %v6913_v42  ;;  %2412 = vmatprep.mubr.f32.mxu1 %v1520_v11  ;;  %v7283_v63 = vadd.f32 %v4490_v19, %v4410_v9  ;;  %v8622_v14 = vand.u32 4294901760, %v8621_v24  ;;  %v3169_v42 = vsub.f32 %v7250_v47, %v7270_v48  ;;  %v7297_v11 = vand.u32 4294901760, %v7273_v40  ;;  %v8638_v60 = vld [vmem:[#allocation53_spill] sm:$0xff]  ;;  %v8640_v19 = vld [vmem:[#allocation54_spill] sm:$0xff] }
 0x1a5   : > { %4711 = vmatprep.subr.mxu0 %v8619_v13  ;;  %4794 = vmatpush3.msra.mxu1 %v8620_v45  ;;  %v8639_v34 = vand.u32 4294901760, %v8638_v60  ;;  %v8641_v9 = vand.u32 4294901760, %v8640_v19  ;;  %v3190_v24 = vsub.f32 %v7330_v37, %v7349_v16  ;;  %v8654_v19 = vld [vmem:[#allocation72_spill] sm:$0xff] }
 0x1a6   : > { %8617 = vst [vmem:[#allocation8_spill] sm:$0xff] %v7283_v63  ;;  %4712 = vmatpush3.msra.mxu0 %v8622_v14  ;;  %4795 = vmatprep.subr.mxu1 %v8623_v17  ;;  %v3170_v10 = vand.u32 4294901760, %v3169_v42  ;;  %v4493_v14 = vadd.f32 %v4492_v33, %v4491_v38  ;;  %v8646_v38 = vld [vmem:[#allocation66_spill] sm:$0xff] }
 0x1a7   : > { %2127 = vmatmul.mubr.f32.gmra.mxu0 %v6916_v1  ;;  %2416 = vmatmul.mubr.f32.gmra.mxu1 %v1526_v55  ;;  %v8629_v1 = vld [vmem:[#allocation51_spill] sm:$0xff]  ;;  %v7319_v55 = vand.u32 4294901760, %v7300_v15  ;;  %v8648_v33 = vld [vmem:[#allocation70_spill] sm:$0xff] }
 0x1a8   : > { %2133 = vmatprep.mubr.f32.mxu0 %v6991_v3  ;;  %2423 = vmatprep.mubr.f32.mxu1 %v1535_v27  ;;  %v3176_v3 = vsub.f32 %v7273_v40, %v7297_v11  ;;  %v1158_v27 = vld [vmem:[%s8131_s1 + $0x108] sm:$0xff] }
 0x1a9   : > { %4713 = vmatprep.subr.mxu0 %v8625_v18  ;;  %4796 = vmatpush3.msra.mxu1 %v8626_v36  ;;  %v7335_v25 = vand.u32 4294901760, %v1158_v27  ;;  %v8645_v18 = vld [vmem:[#allocation64_spill] sm:$0xff] }
 0x1aa   : > { %4714 = vmatpush3.msra.mxu0 %v8628_v39  ;;  %4797 = vmatprep.subr.mxu1 %v8629_v1  ;;  %v3191_v39 = vand.u32 4294901760, %v3190_v24 }
 0x1ab   : > { %2136 = vmatmul.mubr.f32.gmra.mxu0 %v6994_v2  ;;  %2427 = vmatmul.mubr.f32.gmra.mxu1 %v1541_v61  ;;  %v8635_v2 = vand.u32 4294901760, %v8634_v57  ;;  %v3177_v61 = vand.u32 4294901760, %v3176_v3  ;;  %v7354_v7 = vsub.f32 %v1158_v27, %v7335_v25 }
 0x1ac   : > { %2142 = vmatprep.mubr.f32.mxu0 %v7059_v52  ;;  %2802 = vmatprep.mubr.f32.mxu1 %v8630_v43  ;;  %v3183_v52 = vsub.f32 %v7300_v15, %v7319_v55 }
 0x1ad   : > { %4715 = vmatprep.subr.mxu0 %v8632_v44  ;;  %4798 = vmatpush3.msra.mxu1 %v8633_v22  ;;  %v7368_v42 = vand.u32 4294901760, %v7354_v7 }
 0x1ae   : > { %4716 = vmatpush3.msra.mxu0 %v8635_v2  ;;  %5015 = vmatprep.subr.mxu1 %v3170_v10 }
 0x1af   : > { %2145 = vmatmul.mubr.f32.gmra.mxu0 %v7062_v53  ;;  %2804 = vmatmul.mubr.f32.vlgmr.msra.gmra.mxu1 %v8636_v46  ;;  %v4494_v56 = vpop.f32.mrf.mxu1  ;;  %v3197_v1 = vsub.f32 %v7354_v7, %v7368_v42 }
 0x1b0   : > { %2151 = vmatprep.mubr.f32.mxu0 %v7083_v6  ;;  %2809 = vmatprep.mubr.f32.mxu1 %v8637_v5  ;;  %v3184_v6 = vand.u32 4294901760, %v3183_v52 }
 0x1b1   : > { %4717 = vmatprep.subr.mxu0 %v8639_v34  ;;  %5016 = vmatpush3.msra.mxu1 %v3170_v10  ;;  %v4411_v53 = vpop.f32.mrf.mxu0  ;;  %v4495_v45 = vpop.f32.mrf.mxu1  ;;  %v3198_v2 = vand.u32 4294901760, %v3197_v1  ;;  %v8663_v1 = vld [vmem:[#allocation90_spill] sm:$0xff] }
 0x1b2   : > { %4718 = vmatpush3.msra.mxu0 %v8641_v9  ;;  %5017 = vmatprep.subr.mxu1 %v3177_v61  ;;  %v4496_v27 = vadd.f32 %v4495_v45, %v4494_v56  ;;  %v8650_v56 = vld [vmem:[#allocation69_spill] sm:$0xff]  ;;  %v8658_v45 = vld [vmem:[#allocation87_spill] sm:$0xff] }
 0x1b3   : > { %2154 = vmatmul.mubr.f32.gmra.mxu0 %v7086_v50  ;;  %2811 = vmatmul.mubr.f32.gmra.mxu1 %v8642_v23  ;;  %v4412_v13 = vpop.f32.mrf.mxu0  ;;  %v7371_v50 = vsub.f32 %v1157_v21, %v7356_v8  ;;  %v4497_v36 = vpop.f32.mrf.mxu1  ;;  %v8655_v9 = vld [vmem:[#allocation73_spill] sm:$0xff] }
 0x1b4   : > { %2593 = vmatprep.mubr.f32.mxu0 %v8630_v43  ;;  %2816 = vmatprep.mubr.f32.mxu1 %v8643_v54  ;;  %v4413_v17 = vadd.f32 %v4412_v13, %v4411_v53  ;;  %v8653_v53 = vld [vmem:[#allocation75_spill] sm:$0xff]  ;;  %v8657_v13 = vld [vmem:[#allocation5_spill] sm:$0xff] }
 0x1b5   : > { %4979 = vmatprep.subr.mxu0 %v7230_v20  ;;  %5018 = vmatpush3.msra.mxu1 %v3177_v61  ;;  %v7384_v10 = vand.u32 4294901760, %v7371_v50  ;;  %v4498_v44 = vpop.f32.mrf.mxu1 }
 0x1b6   : > { %5019 = vmatprep.subr.mxu1 %v3184_v6  ;;  %v7373_v29 = vadd.f32 %v4493_v14, %v4413_v17  ;;  %v4499_v21 = vadd.f32 %v4498_v44, %v4497_v36  ;;  %v8659_v14 = vld [vmem:[#allocation85_spill] sm:$0xff]  ;;  %v8660_v17 = vld [vmem:[#allocation82_spill] sm:$0xff]  ;;  %v8666_v44 = vld [vmem:[#allocation96_spill] sm:$0xff] }
 0x1b7   : > { %2595 = vmatmul.mubr.f32.vlgmr.msra.gmra.mxu0 %v8636_v46  ;;  %2818 = vmatmul.mubr.f32.gmra.mxu1 %v8645_v18  ;;  %v4414_v51 = vpop.f32.mrf.mxu0  ;;  %v3204_v61 = vsub.f32 %v7371_v50, %v7384_v10 }
 0x1b8   : > { %8644 = vst [vmem:[#allocation7_spill] sm:$0xff] %v7373_v29  ;;  %4980 = vmatpush3.msra.mxu0 %v7230_v20  ;;  %2600 = vmatprep.mubr.f32.mxu0 %v8637_v5  ;;  %v8651_v5 = vld [vmem:[#allocation76_spill] sm:$0xff] }
 0x1b9   : > { %2823 = vmatprep.mubr.f32.mxu1 %v8646_v38  ;;  %4981 = vmatprep.subr.mxu0 %v7252_v0  ;;  %v4415_v3 = vpop.f32.mrf.mxu0  ;;  %v3205_v34 = vand.u32 4294901760, %v3204_v61  ;;  %v8668_v61 = vld [vmem:[#allocation57_spill] sm:$0xff] }
 0x1ba   : > { %4982 = vmatpush3.msra.mxu0 %v7252_v0  ;;  %5020 = vmatpush3.msra.mxu1 %v3184_v6  ;;  %v4416_v43 = vadd.f32 %v4415_v3, %v4414_v51  ;;  %v8656_v6 = vld [vmem:[#allocation6_spill] sm:$0xff] }
 0x1bb   : > { %2602 = vmatmul.mubr.f32.gmra.mxu0 %v8642_v23  ;;  %2825 = vmatmul.mubr.f32.gmra.mxu1 %v8647_v58 }
 0x1bc   : > { %v4417_v22 = vpop.f32.mrf.mxu0  ;;  %2607 = vmatprep.mubr.f32.mxu0 %v8643_v54  ;;  %2830 = vmatprep.mubr.f32.mxu1 %v8648_v33  ;;  %v7391_v57 = vadd.f32 %v4496_v27, %v4416_v43  ;;  %v8664_v27 = vld [vmem:[#allocation91_spill] sm:$0xff] }
 0x1bd   : > { %4983 = vmatprep.subr.mxu0 %v7275_v31  ;;  %5021 = vmatprep.subr.mxu1 %v3191_v39 }
 0x1be   : > { %8649 = vst [vmem:[#allocation9_spill] sm:$0xff] %v7391_v57  ;;  %v4418_v52 = vpop.f32.mrf.mxu0  ;;  %4984 = vmatpush3.msra.mxu0 %v7275_v31  ;;  %5022 = vmatpush3.msra.mxu1 %v3191_v39  ;;  %v8662_v39 = vld [vmem:[#allocation83_spill] sm:$0xff] }
 0x1bf   : > { %v4419_v46 = vadd.f32 %v4418_v52, %v4417_v22  ;;  %2609 = vmatmul.mubr.f32.gmra.mxu0 %v8645_v18  ;;  %2832 = vmatmul.mubr.f32.gmra.mxu1 %v8650_v56  ;;  %v1165_v52 = vsel %vm1163_vm0, %v8668_v61, 0 }
 0x1c0   : > { %2614 = vmatprep.mubr.f32.mxu0 %v8646_v38  ;;  %2837 = vmatprep.mubr.f32.mxu1 %v8651_v5 }
 0x1c1   : > { %v7401_v60 = vadd.f32 %v4499_v21, %v4419_v46  ;;  %4985 = vmatprep.subr.mxu0 %v7308_v28  ;;  %5023 = vmatprep.subr.mxu1 %v3198_v2  ;;  %v8669_v21 = vld [vmem:[#allocation99_spill] sm:$0xff] }
 0x1c2   : > { %4986 = vmatpush3.msra.mxu0 %v7308_v28  ;;  %5024 = vmatpush3.msra.mxu1 %v3198_v2  ;;  %v8667_v2 = vld [vmem:[#allocation97_spill] sm:$0xff] }
 0x1c3   : > { %8652 = vst [vmem:[#allocation77_spill] sm:$0xff] %v7401_v60  ;;  %2616 = vmatmul.mubr.f32.gmra.mxu0 %v8647_v58  ;;  %2839 = vmatmul.mubr.f32.gmra.mxu1 %v8653_v53  ;;  %v8665_v58 = vld [vmem:[#allocation95_spill] sm:$0xff] }
 0x1c4   : > { %2621 = vmatprep.mubr.f32.mxu0 %v8648_v33  ;;  %2844 = vmatprep.mubr.f32.mxu1 %v8654_v19 }
 0x1c5   : > { %4987 = vmatprep.subr.mxu0 %v7335_v25  ;;  %5025 = vmatprep.subr.mxu1 %v3205_v34 }
 0x1c6   : > { %4988 = vmatpush3.msra.mxu0 %v7335_v25  ;;  %5026 = vmatpush3.msra.mxu1 %v3205_v34  ;;  %v8670_v34 = vld [vmem:[#allocation56_spill] sm:$0xff] }
 0x1c7   : > { %2623 = vmatmul.mubr.f32.gmra.mxu0 %v8650_v56  ;;  %2846 = vmatmul.mubr.f32.gmra.mxu1 %v8655_v9  ;;  %v4500_v23 = vpop.f32.mrf.mxu1 }
 0x1c8   : > { %2628 = vmatprep.mubr.f32.mxu0 %v8651_v5  ;;  %2851 = vmatprep.mubr.f32.mxu1 %v8656_v6 }
 0x1c9   : > { %4989 = vmatprep.subr.mxu0 %v7356_v8  ;;  %5087 = vmatprep.subr.mxu1 %v7230_v20  ;;  %v4501_v54 = vpop.f32.mrf.mxu1 }
 0x1ca   : > { %4990 = vmatpush3.msra.mxu0 %v7356_v8  ;;  %v4502_v36 = vadd.f32 %v4501_v54, %v4500_v23  ;;  %v8671_v23 = vld [vmem:[#allocation62_spill] sm:$0xff] }
 0x1cb   : > { %2630 = vmatmul.mubr.f32.gmra.mxu0 %v8653_v53  ;;  %2853 = vmatmul.mubr.f32.gmra.mxu1 %v8657_v13  ;;  %v1168_v53 = vsel %vm1163_vm0, %v8670_v34, 0 }
 0x1cc   : > { %2635 = vmatprep.mubr.f32.mxu0 %v8654_v19  ;;  %2858 = vmatprep.mubr.f32.mxu1 %v8658_v45 }
 0x1cd   : > { %5051 = vmatprep.subr.mxu0 %v7250_v47 }
 0x1cf   : > { %v4420_v24 = vpop.f32.mrf.mxu0  ;;  %2637 = vmatmul.mubr.f32.gmra.mxu0 %v8655_v9  ;;  %2860 = vmatmul.mubr.f32.gmra.mxu1 %v8659_v14 }
 0x1d0   : > { %2642 = vmatprep.mubr.f32.mxu0 %v8656_v6  ;;  %2865 = vmatprep.mubr.f32.mxu1 %v8660_v17  ;;  %v7449_v6 = vand.u32 4294901760, %v1165_v52 }
 0x1d1   : > { %v4421_v18 = vpop.f32.mrf.mxu0 }
 0x1d2   : > { %v4422_v51 = vadd.f32 %v4421_v18, %v4420_v24  ;;  %v8674_v24 = vld [vmem:[#allocation65_spill] sm:$0xff] }
 0x1d3   : > { %2644 = vmatmul.mubr.f32.gmra.mxu0 %v8657_v13  ;;  %2867 = vmatmul.mubr.f32.gmra.mxu1 %v8662_v39  ;;  %v1171_v13 = vsel %vm1163_vm0, %v8671_v23, 0 }
 0x1d4   : > { %v7427_v38 = vadd.f32 %v4502_v36, %v4422_v51  ;;  %2649 = vmatprep.mubr.f32.mxu0 %v8658_v45  ;;  %2872 = vmatprep.mubr.f32.mxu1 %v8663_v1  ;;  %v7463_v51 = vand.u32 4294901760, %v1171_v13 }
 0x1d6   : > { %8661 = vst [vmem:[#allocation78_spill] sm:$0xff] %v7427_v38 }
 0x1d7   : > { %v4503_v3 = vpop.f32.mrf.mxu1  ;;  %2651 = vmatmul.mubr.f32.gmra.mxu0 %v8659_v14  ;;  %2874 = vmatmul.mubr.f32.gmra.mxu1 %v8664_v27  ;;  %v1174_v14 = vsel %vm1163_vm0, %v8674_v24, 0 }
 0x1d8   : > { %2656 = vmatprep.mubr.f32.mxu0 %v8660_v17  ;;  %2879 = vmatprep.mubr.f32.mxu1 %v6896_v4  ;;  %v7461_v17 = vand.u32 4294901760, %v1168_v53 }
 0x1d9   : > { %v4504_v43 = vpop.f32.mrf.mxu1 }
 0x1da   : > { %v4505_v56 = vadd.f32 %v4504_v43, %v4503_v3  ;;  %v7474_v43 = vand.u32 4294901760, %v1174_v14 }
 0x1db   : > { %2658 = vmatmul.mubr.f32.gmra.mxu0 %v8662_v39  ;;  %2881 = vmatmul.mubr.f32.gmra.mxu1 %v8665_v58  ;;  %v4506_v22 = vpop.f32.mrf.mxu1  ;;  %v7466_v39 = vsub.f32 %v1165_v52, %v7449_v6 }
 0x1dc   : > { %2663 = vmatprep.mubr.f32.mxu0 %v8663_v1  ;;  %2886 = vmatprep.mubr.f32.mxu1 %v8666_v44  ;;  %v8675_v1 = vld [vmem:[#allocation68_spill] sm:$0xff] }
 0x1dd   : > { %v4507_v19 = vpop.f32.mrf.mxu1  ;;  %v1177_v3 = vsel %vm1163_vm0, %v8675_v1, 0  ;;  %v8356_v52 = vand.u32 4294901760, %v7466_v39 }
 0x1de   : > { %v4508_v18 = vadd.f32 %v4507_v19, %v4506_v22 }
 0x1df   : > { %v4423_v33 = vpop.f32.mrf.mxu0  ;;  %2665 = vmatmul.mubr.f32.gmra.mxu0 %v8664_v27  ;;  %2888 = vmatmul.mubr.f32.gmra.mxu1 %v8667_v2 }
 0x1e0   : > { %2670 = vmatprep.mubr.f32.mxu0 %v6896_v4  ;;  %2893 = vmatprep.mubr.f32.mxu1 %v8669_v21  ;;  %v8673_v4 = vld [vmem:[#allocation100_spill] sm:$0xff] }
 0x1e1   : > { %v4424_v46 = vpop.f32.mrf.mxu0 }
 0x1e2   : > { %v4425_v5 = vadd.f32 %v4424_v46, %v4423_v33  ;;  %v8678_v33 = vld [vmem:[#allocation74_spill] sm:$0xff]  ;;  %v7489_v46 = vsub.f32 %v1171_v13, %v7463_v51  ;;  %v2988_v13 = vsub.f32 %v7466_v39, %v8356_v52 }
 0x1e3   : > { %v4426_v9 = vpop.f32.mrf.mxu0  ;;  %2672 = vmatmul.mubr.f32.gmra.mxu0 %v8665_v58  ;;  %2895 = vmatmul.mubr.f32.gmra.mxu1 %v8673_v4  ;;  %v7479_v58 = vsub.f32 %v1168_v53, %v7461_v17  ;;  %v1180_v61 = vsel %vm1163_vm0, %v8678_v33, 0  ;;  %v8679_v53 = vld [vmem:[#allocation55_spill] sm:$0xff]  ;;  %v8683_v52 = vld [vmem:[#allocation94_spill] sm:$0xff] }
 0x1e4   : > { %v7453_v45 = vadd.f32 %v4505_v56, %v4425_v5  ;;  %2677 = vmatprep.mubr.f32.mxu0 %v8666_v44  ;;  %2900 = vmatprep.mubr.f32.mxu1 %v7050_v41  ;;  %v8677_v44 = vld [vmem:[#allocation71_spill] sm:$0xff]  ;;  %v7498_v56 = vand.u32 4294901760, %v1180_v61  ;;  %v1186_v19 = vsel %vm1163_vm0, %v8679_v53, 0 }
 0x1e5   : > { %v4427_v54 = vpop.f32.mrf.mxu0  ;;  %v1183_v22 = vsel %vm1163_vm0, %v8677_v44, 0  ;;  %v8355_v34 = vand.u32 4294901760, %v7479_v58  ;;  %v7519_v24 = vand.u32 4294901760, %v1186_v19  ;;  %v2989_v44 = vand.u32 4294901760, %v2988_v13 }
 0x1e6   : > { %8672 = vst [vmem:[#allocation12_spill] sm:$0xff] %v7453_v45  ;;  %v4428_v36 = vadd.f32 %v4427_v54, %v4426_v9  ;;  %v7500_v5 = vand.u32 4294901760, %v1183_v22  ;;  %v8680_v9 = vld [vmem:[#allocation84_spill] sm:$0xff] }
 0x1e7   : > { %2679 = vmatmul.mubr.f32.gmra.mxu0 %v8667_v2  ;;  %2902 = vmatmul.mubr.f32.gmra.mxu1 %v7052_v49  ;;  %v7486_v2 = vand.u32 4294901760, %v1177_v3  ;;  %v1189_v23 = vsel %vm1163_vm0, %v8680_v9, 0 }
 0x1e8   : > { %v7470_v27 = vadd.f32 %v4508_v18, %v4428_v36  ;;  %2684 = vmatprep.mubr.f32.mxu0 %v8669_v21  ;;  %2907 = vmatprep.mubr.f32.mxu1 %v7072_v59  ;;  %v7494_v21 = vsub.f32 %v1174_v14, %v7474_v43  ;;  %v7522_v14 = vsub.f32 %v1180_v61, %v7498_v56  ;;  %v8681_v36 = vld [vmem:[#allocation81_spill] sm:$0xff] }
 0x1e9   : > { %v7525_v18 = vsub.f32 %v1183_v22, %v7500_v5  ;;  %v1192_v1 = vsel %vm1163_vm0, %v8681_v36, 0  ;;  %v8682_v61 = vld [vmem:[#allocation89_spill] sm:$0xff] }
 0x1ea   : > { %8676 = vst [vmem:[#allocation10_spill] sm:$0xff] %v7470_v27  ;;  %v8357_v54 = vand.u32 4294901760, %v7494_v21  ;;  %v1195_v53 = vsel %vm1163_vm0, %v8682_v61, 0  ;;  %v7549_v36 = vand.u32 4294901760, %v1192_v1 }
 0x1eb   : > { %2686 = vmatmul.mubr.f32.gmra.mxu0 %v8673_v4  ;;  %2909 = vmatmul.mubr.f32.gmra.mxu1 %v7074_v32  ;;  %v7512_v4 = vsub.f32 %v1177_v3, %v7486_v2 }
 0x1ec   : > { %2691 = vmatprep.mubr.f32.mxu0 %v7050_v41  ;;  %5027 = vmatprep.mubr.f32.mxu1 %v7449_v6  ;;  %v8354_v41 = vand.u32 4294901760, %v7489_v46  ;;  %v3018_v9 = vsub.f32 %v7494_v21, %v8357_v54  ;;  %v7579_v57 = vsub.f32 %v1192_v1, %v7549_v36  ;;  %v1207_v1 = vsel %vm1163_vm0, %v7048_v62, 0 }
 0x1ed   : > { %v8684_v13 = vand.u32 4294901760, %v7512_v4 }
 0x1ee   : > { %v3008_v33 = vsub.f32 %v7489_v46, %v8354_v41  ;;  %v7564_v41 = vand.u32 4294901760, %v1195_v53 }
 0x1ef   : > { %2693 = vmatmul.mubr.f32.gmra.mxu0 %v7052_v49  ;;  %5028 = vmatmul.mubr.f32.vlgmr.msra.gmra.mxu1 %v7461_v17  ;;  %v2998_v49 = vsub.f32 %v7479_v58, %v8355_v34  ;;  %v4509_v3 = vpop.f32.mrf.mxu1  ;;  %v7553_v34 = vsub.f32 %v1186_v19, %v7519_v24  ;;  %v3028_v45 = vsub.f32 %v7512_v4, %v8684_v13  ;;  %v3019_v19 = vand.u32 4294901760, %v3018_v9 }
 0x1f0   : > { %2698 = vmatprep.mubr.f32.mxu0 %v7072_v59  ;;  %5030 = vmatprep.mubr.f32.mxu1 %v7463_v51  ;;  %v7533_v59 = vand.u32 4294901760, %v1189_v23  ;;  %v3009_v27 = vand.u32 4294901760, %v3008_v33  ;;  %v8686_v33 = vand.u32 4294901760, %v7522_v14  ;;  %v8687_v13 = vand.u32 4294901760, %v7525_v18 }
 0x1f1   : > { %5088 = vmatpush3.msra.mxu1 %v7230_v20  ;;  %v2999_v61 = vand.u32 4294901760, %v2998_v49  ;;  %v4510_v54 = vpop.f32.mrf.mxu1  ;;  %v3029_v63 = vand.u32 4294901760, %v3028_v45 }
 0x1f2   : > { %5089 = vmatprep.subr.mxu1 %v7252_v0  ;;  %v3038_v38 = vsub.f32 %v7522_v14, %v8686_v33  ;;  %v3048_v60 = vsub.f32 %v7525_v18, %v8687_v13  ;;  %v4511_v9 = vadd.f32 %v4510_v54, %v4509_v3  ;;  %v8688_v33 = vld [vmem:[#allocation98_spill] sm:$0xff]  ;;  %v7593_v54 = vsub.f32 %v1195_v53, %v7564_v41 }
 0x1f3   : > { %2700 = vmatmul.mubr.f32.gmra.mxu0 %v7074_v32  ;;  %5031 = vmatmul.mubr.f32.gmra.mxu1 %v7474_v43  ;;  %v7557_v32 = vsub.f32 %v1189_v23, %v7533_v59  ;;  %v8685_v23 = vld [vmem:[#allocation93_spill] sm:$0xff]  ;;  %v1204_v29 = vsel %vm1163_vm0, %v8688_v33, 0 }
 0x1f4   : > { %4991 = vmatprep.mubr.f32.mxu0 %v2989_v44  ;;  %5033 = vmatprep.mubr.f32.mxu1 %v7486_v2  ;;  %v1198_v44 = vsel %vm1163_vm0, %v8683_v52, 0  ;;  %v1201_v49 = vsel %vm1163_vm0, %v8685_v23, 0  ;;  %v3039_v45 = vand.u32 4294901760, %v3038_v38  ;;  %v1210_v38 = vsel %vm1163_vm0, %v7067_v30, 0 }
 0x1f5   : > { %5090 = vmatpush3.msra.mxu1 %v7252_v0  ;;  %v7589_v13 = vand.u32 4294901760, %v1201_v49 }
 0x1f6   : > { %5091 = vmatprep.subr.mxu1 %v7275_v31 }
 0x1f7   : > { %v4429_v22 = vpop.f32.mrf.mxu0  ;;  %4992 = vmatmul.mubr.f32.vlgmr.msra.gmra.mxu0 %v2999_v61  ;;  %5034 = vmatmul.mubr.f32.gmra.mxu1 %v7498_v56  ;;  %v8359_v61 = vand.u32 4294901760, %v7553_v34 }
 0x1f8   : > { %5052 = vmatpush3.msra.mxu0 %v7250_v47  ;;  %4994 = vmatprep.mubr.f32.mxu0 %v3009_v27  ;;  %v7583_v47 = vand.u32 4294901760, %v1198_v44  ;;  %v8358_v27 = vand.u32 4294901760, %v7557_v32 }
 0x1f9   : > { %v4430_v52 = vpop.f32.mrf.mxu0  ;;  %5036 = vmatprep.mubr.f32.mxu1 %v7500_v5  ;;  %5053 = vmatprep.subr.mxu0 %v7273_v40 }
 0x1fa   : > { %v4431_v23 = vadd.f32 %v4430_v52, %v4429_v22  ;;  %5054 = vmatpush3.msra.mxu0 %v7273_v40  ;;  %5092 = vmatpush3.msra.mxu1 %v7275_v31  ;;  %v3058_v40 = vsub.f32 %v7553_v34, %v8359_v61  ;;  %v8360_v22 = vand.u32 4294901760, %v7579_v57  ;;  %v3049_v52 = vand.u32 4294901760, %v3048_v60 }
 0x1fb   : > { %4995 = vmatmul.mubr.f32.gmra.mxu0 %v3019_v19  ;;  %5037 = vmatmul.mubr.f32.gmra.mxu1 %v7519_v24  ;;  %v3068_v62 = vsub.f32 %v7557_v32, %v8358_v27  ;;  %v7609_v19 = vand.u32 4294901760, %v1204_v29  ;;  %v8361_v60 = vand.u32 4294901760, %v7593_v54  ;;  %v7627_v27 = vand.u32 4294901760, %v1210_v38 }
 0x1fc   : > { %v7597_v3 = vadd.f32 %v4511_v9, %v4431_v23  ;;  %4997 = vmatprep.mubr.f32.mxu0 %v3029_v63  ;;  %5039 = vmatprep.mubr.f32.mxu1 %v7533_v59  ;;  %v7613_v63 = vsub.f32 %v1198_v44, %v7583_v47  ;;  %v7619_v9 = vand.u32 4294901760, %v1207_v1  ;;  %v7623_v23 = vsub.f32 %v1201_v49, %v7589_v13 }
 0x1fd   : > { %5055 = vmatprep.subr.mxu0 %v7300_v15  ;;  %5093 = vmatprep.subr.mxu1 %v7308_v28  ;;  %v3059_v30 = vand.u32 4294901760, %v3058_v40  ;;  %v3078_v61 = vsub.f32 %v7579_v57, %v8360_v22  ;;  %v3088_v40 = vsub.f32 %v7593_v54, %v8361_v60 }
 0x1fe   : > { %8689 = vst [vmem:[#allocation13_spill] sm:$0xff] %v7597_v3  ;;  %v4512_v53 = vpop.f32.mrf.mxu1  ;;  %5056 = vmatpush3.msra.mxu0 %v7300_v15  ;;  %5094 = vmatpush3.msra.mxu1 %v7308_v28  ;;  %v8362_v49 = vand.u32 4294901760, %v7613_v63 }
 0x1ff   : > { %4998 = vmatmul.mubr.f32.gmra.mxu0 %v3039_v45  ;;  %5040 = vmatmul.mubr.f32.gmra.mxu1 %v7549_v36  ;;  %v7636_v45 = vsub.f32 %v1204_v29, %v7609_v19  ;;  %v3079_v60 = vand.u32 4294901760, %v3078_v61 }
 0x200   : > { %v4513_v33 = vpop.f32.mrf.mxu1  ;;  %5000 = vmatprep.mubr.f32.mxu0 %v3049_v52  ;;  %5042 = vmatprep.mubr.f32.mxu1 %v7564_v41  ;;  %v3069_v52 = vand.u32 4294901760, %v3068_v62 }
 0x201   : > { %v4514_v44 = vadd.f32 %v4513_v33, %v4512_v53  ;;  %5057 = vmatprep.subr.mxu0 %v7330_v37  ;;  %5095 = vmatprep.subr.mxu1 %v7335_v25  ;;  %v7645_v33 = vsub.f32 %v1207_v1, %v7619_v9  ;;  %v3098_v53 = vsub.f32 %v7613_v63, %v8362_v49  ;;  %v8363_v1 = vand.u32 4294901760, %v7636_v45 }
 0x202   : > { %v4515_v15 = vpop.f32.mrf.mxu1  ;;  %5058 = vmatpush3.msra.mxu0 %v7330_v37  ;;  %5096 = vmatpush3.msra.mxu1 %v7335_v25  ;;  %v7650_v37 = vsub.f32 %v1210_v38, %v7627_v27 }
 0x203   : > { %5001 = vmatmul.mubr.f32.gmra.mxu0 %v3059_v30  ;;  %5043 = vmatmul.mubr.f32.gmra.mxu1 %v7583_v47  ;;  %v3089_v30 = vand.u32 4294901760, %v3088_v40  ;;  %v3099_v40 = vand.u32 4294901760, %v3098_v53 }
 0x204   : > { %v4516_v22 = vpop.f32.mrf.mxu1  ;;  %5003 = vmatprep.mubr.f32.mxu0 %v3069_v52  ;;  %5045 = vmatprep.mubr.f32.mxu1 %v7589_v13  ;;  %v8690_v52 = vand.u32 4294901760, %v7623_v23 }
 0x205   : > { %v4517_v29 = vadd.f32 %v4516_v22, %v4515_v15  ;;  %5059 = vmatprep.subr.mxu0 %v7354_v7  ;;  %5097 = vmatprep.subr.mxu1 %v7356_v8 }
 0x206   : > { %v4432_v62 = vpop.f32.mrf.mxu0  ;;  %v3108_v22 = vsub.f32 %v7623_v23, %v8690_v52  ;;  %5060 = vmatpush3.msra.mxu0 %v7354_v7  ;;  %5098 = vmatpush3.msra.mxu1 %v7356_v8  ;;  %v3118_v52 = vsub.f32 %v7636_v45, %v8363_v1  ;;  %v3137_v7 = vand.u32 4294901760, %v7650_v37 }
 0x207   : > { %5004 = vmatmul.mubr.f32.gmra.mxu0 %v3079_v60  ;;  %5046 = vmatmul.mubr.f32.gmra.mxu1 %v7609_v19 }
 0x208   : > { %v4433_v38 = vpop.f32.mrf.mxu0  ;;  %5006 = vmatprep.mubr.f32.mxu0 %v3089_v30  ;;  %5048 = vmatprep.mubr.f32.mxu1 %v7619_v9  ;;  %v3109_v61 = vand.u32 4294901760, %v3108_v22  ;;  %v8691_v30 = vand.u32 4294901760, %v7645_v33  ;;  %v3119_v1 = vand.u32 4294901760, %v3118_v52 }
 0x209   : > { %v4434_v15 = vadd.f32 %v4433_v38, %v4432_v62  ;;  %5061 = vmatprep.subr.mxu0 %v7371_v50  ;;  %5159 = vmatprep.subr.mxu1 %v7230_v20  ;;  %v8692_v62 = vand.u32 4294901760, %v7466_v39 }
 0x20a   : > { %v4435_v49 = vpop.f32.mrf.mxu0  ;;  %v3128_v3 = vsub.f32 %v7645_v33, %v8691_v30  ;;  %5062 = vmatpush3.msra.mxu0 %v7371_v50  ;;  %v8693_v50 = vand.u32 4294901760, %v7479_v58 }
 0x20b   : > { %v7672_v60 = vadd.f32 %v4514_v44, %v4434_v15  ;;  %5007 = vmatmul.mubr.f32.gmra.mxu0 %v3099_v40  ;;  %5049 = vmatmul.mubr.f32.gmra.mxu1 %v7627_v27  ;;  %v3138_v44 = vsub.f32 %v7650_v37, %v3137_v7 }
 0x20c   : > { %v4436_v53 = vpop.f32.mrf.mxu0  ;;  %5009 = vmatprep.mubr.f32.mxu0 %v3109_v61  ;;  %5099 = vmatprep.mubr.f32.mxu1 %v8692_v62  ;;  %v3129_v15 = vand.u32 4294901760, %v3128_v3  ;;  %v8694_v61 = vand.u32 4294901760, %v7489_v46  ;;  %v8696_v3 = vand.u32 4294901760, %v7512_v4 }
 0x20d   : > { %v4437_v38 = vadd.f32 %v4436_v53, %v4435_v49  ;;  %5123 = vmatprep.subr.mxu0 %v7270_v48  ;;  %v3139_v40 = vand.u32 4294901760, %v3138_v44  ;;  %v8695_v49 = vand.u32 4294901760, %v7494_v21 }
 0x20f   : > { %v7685_v22 = vadd.f32 %v4517_v29, %v4437_v38  ;;  %5010 = vmatmul.mubr.f32.gmra.mxu0 %v3119_v1  ;;  %5100 = vmatmul.mubr.f32.vlgmr.msra.gmra.mxu1 %v8693_v50  ;;  %v8697_v29 = vand.u32 4294901760, %v7522_v14  ;;  %v8698_v1 = vand.u32 4294901760, %v7525_v18 }
 0x210   : > { %5012 = vmatprep.mubr.f32.mxu0 %v3129_v15  ;;  %5102 = vmatprep.mubr.f32.mxu1 %v8694_v61 }
 0x211   : > { %5160 = vmatpush3.msra.mxu1 %v7230_v20 }
 0x212   : > { %5161 = vmatprep.subr.mxu1 %v7252_v0 }
 0x213   : > { %5013 = vmatmul.mubr.f32.gmra.mxu0 %v3139_v40  ;;  %5103 = vmatmul.mubr.f32.gmra.mxu1 %v8695_v49 }
 0x214   : > { %5063 = vmatprep.mubr.f32.mxu0 %v7466_v39  ;;  %5105 = vmatprep.mubr.f32.mxu1 %v8696_v3 }
 0x215   : > { %5162 = vmatpush3.msra.mxu1 %v7252_v0  ;;  %v8699_v0 = vand.u32 4294901760, %v7553_v34 }
 0x216   : > { %5163 = vmatprep.subr.mxu1 %v7275_v31 }
 0x217   : > { %5064 = vmatmul.mubr.f32.vlgmr.msra.gmra.mxu0 %v7479_v58  ;;  %5106 = vmatmul.mubr.f32.gmra.mxu1 %v8697_v29  ;;  %v4518_v20 = vpop.f32.mrf.mxu1  ;;  %v8702_v58 = vand.u32 4294901760, %v7593_v54 }
 0x218   : > { %5124 = vmatpush3.msra.mxu0 %v7270_v48  ;;  %5066 = vmatprep.mubr.f32.mxu0 %v7489_v46  ;;  %v8700_v48 = vand.u32 4294901760, %v7557_v32 }
 0x219   : > { %5108 = vmatprep.mubr.f32.mxu1 %v8698_v1  ;;  %v4519_v39 = vpop.f32.mrf.mxu1  ;;  %5125 = vmatprep.subr.mxu0 %v7297_v11 }
 0x21a   : > { %v4520_v52 = vadd.f32 %v4519_v39, %v4518_v20  ;;  %5126 = vmatpush3.msra.mxu0 %v7297_v11  ;;  %5164 = vmatpush3.msra.mxu1 %v7275_v31  ;;  %v8701_v31 = vand.u32 4294901760, %v7579_v57 }
 0x21b   : > { %5067 = vmatmul.mubr.f32.gmra.mxu0 %v7494_v21  ;;  %5109 = vmatmul.mubr.f32.gmra.mxu1 %v8699_v0 }
 0x21c   : > { %5069 = vmatprep.mubr.f32.mxu0 %v7512_v4  ;;  %5111 = vmatprep.mubr.f32.mxu1 %v8700_v48  ;;  %v8704_v4 = vand.u32 4294901760, %v7623_v23 }
 0x21d   : > { %5127 = vmatprep.subr.mxu0 %v7319_v55  ;;  %5165 = vmatprep.subr.mxu1 %v7308_v28 }
 0x21e   : > { %5128 = vmatpush3.msra.mxu0 %v7319_v55  ;;  %5166 = vmatpush3.msra.mxu1 %v7308_v28  ;;  %v8703_v28 = vand.u32 4294901760, %v7613_v63 }
 0x21f   : > { %5070 = vmatmul.mubr.f32.gmra.mxu0 %v7522_v14  ;;  %5112 = vmatmul.mubr.f32.gmra.mxu1 %v8701_v31  ;;  %v4438_v11 = vpop.f32.mrf.mxu0 }
 0x220   : > { %5072 = vmatprep.mubr.f32.mxu0 %v7525_v18  ;;  %5114 = vmatprep.mubr.f32.mxu1 %v8702_v58 }
 0x221   : > { %v4439_v46 = vpop.f32.mrf.mxu0  ;;  %5129 = vmatprep.subr.mxu0 %v7349_v16  ;;  %5167 = vmatprep.subr.mxu1 %v7335_v25 }
 0x222   : > { %v4440_v21 = vadd.f32 %v4439_v46, %v4438_v11  ;;  %5130 = vmatpush3.msra.mxu0 %v7349_v16  ;;  %5168 = vmatpush3.msra.mxu1 %v7335_v25  ;;  %v8705_v25 = vand.u32 4294901760, %v7636_v45  ;;  %v8706_v16 = vmov %v8691_v30 }
 0x223   : > { %5073 = vmatmul.mubr.f32.gmra.mxu0 %v7553_v34  ;;  %5115 = vmatmul.mubr.f32.gmra.mxu1 %v8703_v28 }
 0x224   : > { %v7733_v55 = vadd.f32 %v4520_v52, %v4440_v21  ;;  %5075 = vmatprep.mubr.f32.mxu0 %v7557_v32  ;;  %5117 = vmatprep.mubr.f32.mxu1 %v8704_v4 }
 0x225   : > { %5131 = vmatprep.subr.mxu0 %v7368_v42  ;;  %5169 = vmatprep.subr.mxu1 %v7356_v8 }
 0x226   : > { %v4521_v14 = vpop.f32.mrf.mxu1  ;;  %5132 = vmatpush3.msra.mxu0 %v7368_v42  ;;  %5170 = vmatpush3.msra.mxu1 %v7356_v8 }
 0x227   : > { %5076 = vmatmul.mubr.f32.gmra.mxu0 %v7579_v57  ;;  %5118 = vmatmul.mubr.f32.gmra.mxu1 %v8705_v25 }
 0x228   : > { %5078 = vmatprep.mubr.f32.mxu0 %v7593_v54  ;;  %5120 = vmatprep.mubr.f32.mxu1 %v8706_v16  ;;  %v4522_v34 = vpop.f32.mrf.mxu1 }
 0x229   : > { %v4523_v18 = vadd.f32 %v4522_v34, %v4521_v14  ;;  %5133 = vmatprep.subr.mxu0 %v7384_v10 }
 0x22a   : > { %5134 = vmatpush3.msra.mxu0 %v7384_v10 }
 0x22b   : > { %v4524_v32 = vpop.f32.mrf.mxu1  ;;  %5079 = vmatmul.mubr.f32.gmra.mxu0 %v7613_v63  ;;  %5121 = vmatmul.mubr.f32.gmra.mxu1 %v3137_v7 }
 0x22c   : > { %5081 = vmatprep.mubr.f32.mxu0 %v7623_v23  ;;  %5171 = vmatprep.mubr.f32.mxu1 %v7449_v6 }
 0x22d   : > { %v4525_v8 = vpop.f32.mrf.mxu1 }
 0x22e   : > { %v4526_v42 = vadd.f32 %v4525_v8, %v4524_v32  ;;  %v4441_v57 = vpop.f32.mrf.mxu0 }
 0x22f   : > { %v4639_v54 = vpop.f32.mrf.mxu1  ;;  %5082 = vmatmul.mubr.f32.gmra.mxu0 %v7636_v45  ;;  %5172 = vmatmul.mubr.f32.vlgmr.msra.gmra.mxu1 %v7461_v17 }
 0x230   : > { %5084 = vmatprep.mubr.f32.mxu0 %v7645_v33  ;;  %5174 = vmatprep.mubr.f32.mxu1 %v7463_v51  ;;  %v4442_v10 = vpop.f32.mrf.mxu0 }
 0x231   : > { %v4443_v63 = vadd.f32 %v4442_v10, %v4441_v57  ;;  %v4640_v30 = vpop.f32.mrf.mxu1 }
 0x232   : > { %v4641_v7 = vadd.f32 %v4640_v30, %v4639_v54 }
 0x233   : > { %v7759_v53 = vadd.f32 %v4523_v18, %v4443_v63  ;;  %v4444_v23 = vpop.f32.mrf.mxu0  ;;  %v4642_v62 = vpop.f32.mrf.mxu1  ;;  %5085 = vmatmul.mubr.f32.gmra.mxu0 %v7650_v37  ;;  %5175 = vmatmul.mubr.f32.gmra.mxu1 %v7474_v43 }
 0x234   : > { %5135 = vmatprep.mubr.f32.mxu0 %v7449_v6  ;;  %5177 = vmatprep.mubr.f32.mxu1 %v7486_v2 }
 0x235   : > { %v4445_v45 = vpop.f32.mrf.mxu0  ;;  %v4643_v33 = vpop.f32.mrf.mxu1 }
 0x236   : > { %v4446_v38 = vadd.f32 %v4445_v45, %v4444_v23  ;;  %v4644_v44 = vadd.f32 %v4643_v33, %v4642_v62  ;;  %v8709_v45 = vld [vmem:[#allocation9_spill] sm:$0xff] }
 0x237   : > { %v4559_v15 = vpop.f32.mrf.mxu0  ;;  %v4645_v50 = vpop.f32.mrf.mxu1  ;;  %5136 = vmatmul.mubr.f32.vlgmr.msra.gmra.mxu0 %v7461_v17  ;;  %5178 = vmatmul.mubr.f32.gmra.mxu1 %v7498_v56 }
 0x238   : > { %v7767_v61 = vadd.f32 %v4526_v42, %v4446_v38  ;;  %5138 = vmatprep.mubr.f32.mxu0 %v7463_v51  ;;  %5180 = vmatprep.mubr.f32.mxu1 %v7500_v5 }
 0x239   : > { %v4560_v37 = vpop.f32.mrf.mxu0  ;;  %v4646_v6 = vpop.f32.mrf.mxu1 }
 0x23a   : > { %v4561_v40 = vadd.f32 %v4560_v37, %v4559_v15  ;;  %v4647_v49 = vadd.f32 %v4646_v6, %v4645_v50  ;;  %v8710_v6 = vld [vmem:[#allocation77_spill] sm:$0xff] }
 0x23b   : > { %v4562_v3 = vpop.f32.mrf.mxu0  ;;  %v4648_v29 = vpop.f32.mrf.mxu1  ;;  %5139 = vmatmul.mubr.f32.gmra.mxu0 %v7474_v43  ;;  %5181 = vmatmul.mubr.f32.gmra.mxu1 %v7519_v24 }
 0x23c   : > { %v2021_v17 = vadd.f32 %v4561_v40, %v7205_v26  ;;  %5141 = vmatprep.mubr.f32.mxu0 %v7486_v2  ;;  %5183 = vmatprep.mubr.f32.mxu1 %v7533_v59 }
 0x23d   : > { %v4563_v20 = vpop.f32.mrf.mxu0  ;;  %v4649_v51 = vpop.f32.mrf.mxu1 }
 0x23e   : > { %v4564_v1 = vadd.f32 %v4563_v20, %v4562_v3  ;;  %v4650_v39 = vadd.f32 %v4649_v51, %v4648_v29  ;;  %v7776_v52 = vadd.f32 %v4641_v7, %v2021_v17  ;;  %v8711_v51 = vld [vmem:[#allocation78_spill] sm:$0xff] }
 0x23f   : > { %v4565_v0 = vpop.f32.mrf.mxu0  ;;  %v4651_v48 = vpop.f32.mrf.mxu1  ;;  %5142 = vmatmul.mubr.f32.gmra.mxu0 %v7498_v56  ;;  %5184 = vmatmul.mubr.f32.gmra.mxu1 %v7549_v36 }
 0x240   : > { %v2030_v43 = vadd.f32 %v4564_v1, %v7222_v12  ;;  %5144 = vmatprep.mubr.f32.mxu0 %v7500_v5  ;;  %5186 = vmatprep.mubr.f32.mxu1 %v7564_v41 }
 0x241   : > { %v4566_v26 = vpop.f32.mrf.mxu0  ;;  %v4652_v2 = vpop.f32.mrf.mxu1 }
 0x242   : > { %v4567_v31 = vadd.f32 %v4566_v26, %v4565_v0  ;;  %v4653_v11 = vadd.f32 %v4652_v2, %v4651_v48  ;;  %v7783_v58 = vadd.f32 %v4644_v44, %v2030_v43 }
 0x243   : > { %v4568_v46 = vpop.f32.mrf.mxu0  ;;  %v4654_v21 = vpop.f32.mrf.mxu1  ;;  %5145 = vmatmul.mubr.f32.gmra.mxu0 %v7519_v24  ;;  %5187 = vmatmul.mubr.f32.gmra.mxu1 %v7583_v47  ;;  %v8707_v24 = vld [vmem:[#allocation8_spill] sm:$0xff] }
 0x244   : > { %v2039_v56 = vadd.f32 %v4567_v31, %v7241_v35  ;;  %5147 = vmatprep.mubr.f32.mxu0 %v7533_v59  ;;  %5189 = vmatprep.mubr.f32.mxu1 %v7589_v13  ;;  %v8712_v31 = vld [vmem:[#allocation12_spill] sm:$0xff] }
 0x245   : > { %v4569_v12 = vpop.f32.mrf.mxu0  ;;  %v4655_v5 = vpop.f32.mrf.mxu1 }
 0x246   : > { %v4570_v28 = vadd.f32 %v4569_v12, %v4568_v46  ;;  %v4656_v4 = vadd.f32 %v4655_v5, %v4654_v21  ;;  %v7790_v14 = vadd.f32 %v4647_v49, %v2039_v56 }
 0x247   : > { %v4571_v25 = vpop.f32.mrf.mxu0  ;;  %v4657_v16 = vpop.f32.mrf.mxu1  ;;  %5148 = vmatmul.mubr.f32.gmra.mxu0 %v7549_v36  ;;  %5190 = vmatmul.mubr.f32.gmra.mxu1 %v7609_v19  ;;  %v8708_v36 = vld [vmem:[#allocation7_spill] sm:$0xff] }
 0x248   : > { %v2048_v34 = vadd.f32 %v4570_v28, %v8707_v24  ;;  %5150 = vmatprep.mubr.f32.mxu0 %v7564_v41  ;;  %5192 = vmatprep.mubr.f32.mxu1 %v7619_v9 }
 0x249   : > { %v4572_v35 = vpop.f32.mrf.mxu0  ;;  %v4658_v59 = vpop.f32.mrf.mxu1 }
 0x24a   : > { %v4573_v18 = vadd.f32 %v4572_v35, %v4571_v25  ;;  %v4659_v32 = vadd.f32 %v4658_v59, %v4657_v16  ;;  %v7797_v8 = vadd.f32 %v4650_v39, %v2048_v34  ;;  %v8713_v25 = vld [vmem:[#allocation10_spill] sm:$0xff] }
 0x24b   : > { %v4574_v42 = vpop.f32.mrf.mxu0  ;;  %v4660_v57 = vpop.f32.mrf.mxu1  ;;  %5151 = vmatmul.mubr.f32.gmra.mxu0 %v7583_v47  ;;  %5193 = vmatmul.mubr.f32.gmra.mxu1 %v7627_v27 }
 0x24c   : > { %v2057_v54 = vadd.f32 %v4573_v18, %v8708_v36  ;;  %5153 = vmatprep.mubr.f32.mxu0 %v7589_v13 }
 0x24d   : > { %v4575_v10 = vpop.f32.mrf.mxu0  ;;  %v4661_v41 = vpop.f32.mrf.mxu1 }
 0x24e   : > { %v4576_v63 = vadd.f32 %v4575_v10, %v4574_v42  ;;  %v4662_v30 = vadd.f32 %v4661_v41, %v4660_v57  ;;  %v7803_v7 = vadd.f32 %v4653_v11, %v2057_v54  ;;  %v8714_v57 = vld [vmem:[#allocation13_spill] sm:$0xff] }
 0x24f   : > { %v4577_v23 = vpop.f32.mrf.mxu0  ;;  %v4663_v62 = vpop.f32.mrf.mxu1  ;;  %5154 = vmatmul.mubr.f32.gmra.mxu0 %v7609_v19 }
 0x250   : > { %v2066_v33 = vadd.f32 %v4576_v63, %v8709_v45  ;;  %5156 = vmatprep.mubr.f32.mxu0 %v7619_v9 }
 0x251   : > { %v4578_v47 = vpop.f32.mrf.mxu0  ;;  %v4664_v38 = vpop.f32.mrf.mxu1 }
 0x252   : > { %v4579_v44 = vadd.f32 %v4578_v47, %v4577_v23  ;;  %v4665_v15 = vadd.f32 %v4664_v38, %v4663_v62  ;;  %v7808_v50 = vadd.f32 %v4656_v4, %v2066_v33 }
 0x253   : > { %v4580_v13 = vpop.f32.mrf.mxu0  ;;  %v4666_v37 = vpop.f32.mrf.mxu1  ;;  %5157 = vmatmul.mubr.f32.gmra.mxu0 %v7627_v27 }
 0x254   : > { %v2075_v40 = vadd.f32 %v4579_v44, %v8710_v6 }
 0x255   : > { %v4581_v49 = vpop.f32.mrf.mxu0  ;;  %v4667_v3 = vpop.f32.mrf.mxu1 }
 0x256   : > { %v4582_v29 = vadd.f32 %v4581_v49, %v4580_v13  ;;  %v4668_v19 = vadd.f32 %v4667_v3, %v4666_v37  ;;  %v7812_v17 = vadd.f32 %v4659_v32, %v2075_v40 }
 0x257   : > { %v4583_v20 = vpop.f32.mrf.mxu0  ;;  %v4669_v9 = vpop.f32.mrf.mxu1 }
 0x258   : > { %v2084_v1 = vadd.f32 %v4582_v29, %v8711_v51 }
 0x259   : > { %v4584_v39 = vpop.f32.mrf.mxu0  ;;  %v4670_v0 = vpop.f32.mrf.mxu1 }
 0x25a   : > { %v4585_v48 = vadd.f32 %v4584_v39, %v4583_v20  ;;  %v4671_v43 = vadd.f32 %v4670_v0, %v4669_v9  ;;  %v7815_v26 = vadd.f32 %v4662_v30, %v2084_v1 }
 0x25b   : > { %v4586_v2 = vpop.f32.mrf.mxu0  ;;  %v4672_v27 = vpop.f32.mrf.mxu1 }
 0x25c   : > { %v2093_v11 = vadd.f32 %v4585_v48, %v8712_v31 }
 0x25d   : > { %v4587_v46 = vpop.f32.mrf.mxu0  ;;  %v4673_v21 = vpop.f32.mrf.mxu1 }
 0x25e   : > { %v4588_v56 = vadd.f32 %v4587_v46, %v4586_v2  ;;  %v4674_v12 = vadd.f32 %v4673_v21, %v4672_v27  ;;  %v7818_v5 = vadd.f32 %v4665_v15, %v2093_v11 }
 0x25f   : > { %v4589_v28 = vpop.f32.mrf.mxu0  ;;  %v4675_v4 = vpop.f32.mrf.mxu1 }
 0x260   : > { %v2102_v16 = vadd.f32 %v4588_v56, %v8713_v25 }
 0x261   : > { %v4590_v24 = vpop.f32.mrf.mxu0  ;;  %v4676_v34 = vpop.f32.mrf.mxu1 }
 0x262   : > { %v4591_v35 = vadd.f32 %v4590_v24, %v4589_v28  ;;  %v4677_v59 = vadd.f32 %v4676_v34, %v4675_v4  ;;  %v7821_v18 = vadd.f32 %v4668_v19, %v2102_v16 }
 0x263   : > { %v4592_v32 = vpop.f32.mrf.mxu0  ;;  %v4678_v42 = vpop.f32.mrf.mxu1 }
 0x264   : > { %v2111_v36 = vadd.f32 %v4591_v35, %v8714_v57 }
 0x265   : > { %v4593_v54 = vpop.f32.mrf.mxu0  ;;  %v4679_v10 = vpop.f32.mrf.mxu1 }
 0x266   : > { %v4594_v41 = vadd.f32 %v4593_v54, %v4592_v32  ;;  %v4680_v63 = vadd.f32 %v4679_v10, %v4678_v42  ;;  %v7824_v30 = vadd.f32 %v4671_v43, %v2111_v36 }
 0x267   : > { %v4595_v23 = vpop.f32.mrf.mxu0  ;;  %v4681_v62 = vpop.f32.mrf.mxu1 }
 0x268   : > { %v2120_v45 = vadd.f32 %v4594_v41, %v7672_v60 }
 0x269   : > { %v4596_v33 = vpop.f32.mrf.mxu0  ;;  %v4682_v47 = vpop.f32.mrf.mxu1 }
 0x26a   : > { %v4597_v38 = vadd.f32 %v4596_v33, %v4595_v23  ;;  %v4683_v44 = vadd.f32 %v4682_v47, %v4681_v62  ;;  %v7827_v15 = vadd.f32 %v4674_v12, %v2120_v45 }
 0x26b   : > { %v4598_v13 = vpop.f32.mrf.mxu0  ;;  %v4684_v37 = vpop.f32.mrf.mxu1 }
 0x26c   : > { %v2129_v6 = vadd.f32 %v4597_v38, %v7685_v22 }
 0x26d   : > { %v4599_v40 = vpop.f32.mrf.mxu0  ;;  %v4685_v49 = vpop.f32.mrf.mxu1 }
 0x26e   : > { %v4600_v3 = vadd.f32 %v4599_v40, %v4598_v13  ;;  %v4686_v29 = vadd.f32 %v4685_v49, %v4684_v37  ;;  %v7830_v19 = vadd.f32 %v4677_v59, %v2129_v6 }
 0x26f   : > { %v4601_v20 = vpop.f32.mrf.mxu0  ;;  %v4799_v9 = vpop.f32.mrf.mxu1 }
 0x270   : > { %v2138_v60 = vadd.f32 %v4600_v3, %v7733_v55 }
 0x271   : > { %v4602_v51 = vpop.f32.mrf.mxu0  ;;  %v4800_v1 = vpop.f32.mrf.mxu1 }
 0x272   : > { %v4603_v39 = vadd.f32 %v4602_v51, %v4601_v20  ;;  %v4801_v0 = vadd.f32 %v4800_v1, %v4799_v9  ;;  %v7833_v48 = vadd.f32 %v4680_v63, %v2138_v60 }
 0x273   : > { %v4604_v43 = vpop.f32.mrf.mxu0  ;;  %v4802_v2 = vpop.f32.mrf.mxu1 }
 0x274   : > { %v2147_v22 = vadd.f32 %v4603_v39, %v7759_v53 }
 0x275   : > { %v4605_v27 = vpop.f32.mrf.mxu0  ;;  %v4803_v31 = vpop.f32.mrf.mxu1 }
 0x276   : > { %v4606_v11 = vadd.f32 %v4605_v27, %v4604_v43  ;;  %v4804_v46 = vadd.f32 %v4803_v31, %v4802_v2  ;;  %v7836_v21 = vadd.f32 %v4683_v44, %v2147_v22 }
 0x277   : > { %v4719_v56 = vpop.f32.mrf.mxu0  ;;  %v4805_v12 = vpop.f32.mrf.mxu1 }
 0x278   : > { %v2156_v55 = vadd.f32 %v4606_v11, %v7767_v61 }
 0x279   : > { %v4720_v28 = vpop.f32.mrf.mxu0  ;;  %v4806_v4 = vpop.f32.mrf.mxu1 }
 0x27a   : > { %v4721_v25 = vadd.f32 %v4720_v28, %v4719_v56  ;;  %v4807_v16 = vadd.f32 %v4806_v4, %v4805_v12  ;;  %v7839_v24 = vadd.f32 %v4686_v29, %v2156_v55 }
 0x27b   : > { %v4722_v34 = vpop.f32.mrf.mxu0  ;;  %v4808_v35 = vpop.f32.mrf.mxu1 }
 0x27c   : > { %v2597_v53 = vadd.f32 %v4721_v25, %v7776_v52 }
 0x27d   : > { %v4723_v59 = vpop.f32.mrf.mxu0  ;;  %v4809_v32 = vpop.f32.mrf.mxu1 }
 0x27e   : > { %v4724_v42 = vadd.f32 %v4723_v59, %v4722_v34  ;;  %v4810_v57 = vadd.f32 %v4809_v32, %v4808_v35  ;;  %v7842_v36 = vadd.f32 %v4801_v0, %v2597_v53 }
 0x27f   : > { %v4725_v54 = vpop.f32.mrf.mxu0  ;;  %v4811_v10 = vpop.f32.mrf.mxu1 }
 0x280   : > { %v2604_v61 = vadd.f32 %v4724_v42, %v7783_v58 }
 0x281   : > { %v4726_v41 = vpop.f32.mrf.mxu0  ;;  %v4812_v63 = vpop.f32.mrf.mxu1 }
 0x282   : > { %v4727_v23 = vadd.f32 %v4726_v41, %v4725_v54  ;;  %v4813_v62 = vadd.f32 %v4812_v63, %v4811_v10  ;;  %v7845_v45 = vadd.f32 %v4804_v46, %v2604_v61 }
 0x283   : > { %v4728_v33 = vpop.f32.mrf.mxu0  ;;  %v4814_v47 = vpop.f32.mrf.mxu1 }
 0x284   : > { %v2611_v52 = vadd.f32 %v4727_v23, %v7790_v14 }
 0x285   : > { %v4729_v38 = vpop.f32.mrf.mxu0  ;;  %v4815_v44 = vpop.f32.mrf.mxu1 }
 0x286   : > { %v4730_v13 = vadd.f32 %v4729_v38, %v4728_v33  ;;  %v4816_v37 = vadd.f32 %v4815_v44, %v4814_v47  ;;  %v7848_v6 = vadd.f32 %v4807_v16, %v2611_v52 }
 0x287   : > { %v4731_v40 = vpop.f32.mrf.mxu0  ;;  %v4817_v49 = vpop.f32.mrf.mxu1 }
 0x288   : > { %v2618_v58 = vadd.f32 %v4730_v13, %v7797_v8 }
 0x289   : > { %v4732_v3 = vpop.f32.mrf.mxu0  ;;  %v4818_v29 = vpop.f32.mrf.mxu1 }
 0x28a   : > { %v4733_v20 = vadd.f32 %v4732_v3, %v4731_v40  ;;  %v4819_v9 = vadd.f32 %v4818_v29, %v4817_v49  ;;  %v7851_v60 = vadd.f32 %v4810_v57, %v2618_v58 }
 0x28b   : > { %v4734_v51 = vpop.f32.mrf.mxu0  ;;  %v4820_v1 = vpop.f32.mrf.mxu1 }
 0x28c   : > { %v2625_v14 = vadd.f32 %v4733_v20, %v7803_v7 }
 0x28d   : > { %v4735_v39 = vpop.f32.mrf.mxu0  ;;  %v4821_v0 = vpop.f32.mrf.mxu1 }
 0x28e   : > { %v4736_v43 = vadd.f32 %v4735_v39, %v4734_v51  ;;  %v4822_v2 = vadd.f32 %v4821_v0, %v4820_v1  ;;  %v7854_v22 = vadd.f32 %v4813_v62, %v2625_v14 }
 0x28f   : > { %v4737_v27 = vpop.f32.mrf.mxu0  ;;  %v4823_v31 = vpop.f32.mrf.mxu1 }
 0x290   : > { %v2632_v8 = vadd.f32 %v4736_v43, %v7808_v50 }
 0x291   : > { %v4738_v11 = vpop.f32.mrf.mxu0  ;;  %v4824_v46 = vpop.f32.mrf.mxu1 }
 0x292   : > { %v4739_v56 = vadd.f32 %v4738_v11, %v4737_v27  ;;  %v4825_v12 = vadd.f32 %v4824_v46, %v4823_v31  ;;  %v7857_v55 = vadd.f32 %v4816_v37, %v2632_v8 }
 0x293   : > { %v4740_v28 = vpop.f32.mrf.mxu0  ;;  %v4826_v4 = vpop.f32.mrf.mxu1 }
 0x294   : > { %v2639_v7 = vadd.f32 %v4739_v56, %v7812_v17 }
 0x295   : > { %v4741_v25 = vpop.f32.mrf.mxu0  ;;  %v4827_v16 = vpop.f32.mrf.mxu1 }
 0x296   : > { %v4742_v34 = vadd.f32 %v4741_v25, %v4740_v28  ;;  %v4828_v35 = vadd.f32 %v4827_v16, %v4826_v4  ;;  %v7860_v53 = vadd.f32 %v4819_v9, %v2639_v7 }
 0x297   : > { %v4743_v59 = vpop.f32.mrf.mxu0  ;;  %v4829_v32 = vpop.f32.mrf.mxu1 }
 0x298   : > { %v2646_v50 = vadd.f32 %v4742_v34, %v7815_v26 }
 0x299   : > { %v4744_v42 = vpop.f32.mrf.mxu0  ;;  %v4830_v57 = vpop.f32.mrf.mxu1 }
 0x29a   : > { %v4745_v54 = vadd.f32 %v4744_v42, %v4743_v59  ;;  %v4831_v10 = vadd.f32 %v4830_v57, %v4829_v32  ;;  %v7863_v61 = vadd.f32 %v4822_v2, %v2646_v50 }
 0x29b   : > { %v4746_v41 = vpop.f32.mrf.mxu0  ;;  %v4832_v63 = vpop.f32.mrf.mxu1 }
 0x29c   : > { %v2653_v17 = vadd.f32 %v4745_v54, %v7818_v5 }
 0x29d   : > { %v4747_v23 = vpop.f32.mrf.mxu0  ;;  %v4833_v62 = vpop.f32.mrf.mxu1 }
 0x29e   : > { %v4748_v33 = vadd.f32 %v4747_v23, %v4746_v41  ;;  %v4834_v47 = vadd.f32 %v4833_v62, %v4832_v63  ;;  %v7866_v52 = vadd.f32 %v4825_v12, %v2653_v17 }
 0x29f   : > { %v4749_v38 = vpop.f32.mrf.mxu0  ;;  %v4835_v44 = vpop.f32.mrf.mxu1 }
 0x2a0   : > { %v2660_v26 = vadd.f32 %v4748_v33, %v7821_v18 }
 0x2a1   : > { %v4750_v13 = vpop.f32.mrf.mxu0  ;;  %v4836_v37 = vpop.f32.mrf.mxu1 }
 0x2a2   : > { %v4751_v40 = vadd.f32 %v4750_v13, %v4749_v38  ;;  %v4837_v49 = vadd.f32 %v4836_v37, %v4835_v44  ;;  %v7869_v58 = vadd.f32 %v4828_v35, %v2660_v26 }
 0x2a3   : > { %v4752_v3 = vpop.f32.mrf.mxu0  ;;  %v4838_v29 = vpop.f32.mrf.mxu1 }
 0x2a4   : > { %v2667_v5 = vadd.f32 %v4751_v40, %v7824_v30 }
 0x2a5   : > { %v4753_v20 = vpop.f32.mrf.mxu0  ;;  %v4839_v9 = vpop.f32.mrf.mxu1 }
 0x2a6   : > { %v4754_v51 = vadd.f32 %v4753_v20, %v4752_v3  ;;  %v4840_v1 = vadd.f32 %v4839_v9, %v4838_v29  ;;  %v7872_v14 = vadd.f32 %v4831_v10, %v2667_v5 }
 0x2a7   : > { %v4755_v39 = vpop.f32.mrf.mxu0  ;;  %v4841_v0 = vpop.f32.mrf.mxu1 }
 0x2a8   : > { %v2674_v18 = vadd.f32 %v4754_v51, %v7827_v15 }
 0x2a9   : > { %v4756_v43 = vpop.f32.mrf.mxu0  ;;  %v4842_v2 = vpop.f32.mrf.mxu1 }
 0x2aa   : > { %v4757_v27 = vadd.f32 %v4756_v43, %v4755_v39  ;;  %v4843_v31 = vadd.f32 %v4842_v2, %v4841_v0  ;;  %v7875_v8 = vadd.f32 %v4834_v47, %v2674_v18 }
 0x2ab   : > { %v4758_v11 = vpop.f32.mrf.mxu0  ;;  %v4844_v46 = vpop.f32.mrf.mxu1 }
 0x2ac   : > { %v2681_v30 = vadd.f32 %v4757_v27, %v7830_v19 }
 0x2ad   : > { %v4759_v56 = vpop.f32.mrf.mxu0  ;;  %v4845_v12 = vpop.f32.mrf.mxu1 }
 0x2ae   : > { %v4760_v28 = vadd.f32 %v4759_v56, %v4758_v11  ;;  %v4846_v4 = vadd.f32 %v4845_v12, %v4844_v46  ;;  %v7878_v7 = vadd.f32 %v4837_v49, %v2681_v30 }
 0x2af   : > { %v4761_v25 = vpop.f32.mrf.mxu0  ;;  %v7880_v16 = vpop.f32.mrf.mxu1 }
 0x2b0   : > { %8715 = vst [vmem:[#allocation11_spill] sm:$0xff] %v7878_v7  ;;  %v2688_v15 = vadd.f32 %v4760_v28, %v7833_v48 }
 0x2b1   : > { %v4762_v34 = vpop.f32.mrf.mxu0  ;;  %v7883_v35 = vpop.f32.mrf.mxu1 }
 0x2b2   : > { %v4763_v59 = vadd.f32 %v4762_v34, %v4761_v25  ;;  %v7885_v32 = vadd.f32 %v4840_v1, %v2688_v15 }
 0x2b3   : > { %v4764_v50 = vpop.f32.mrf.mxu0  ;;  %v7887_v42 = vpop.f32.mrf.mxu1 }
 0x2b4   : > { %v2695_v19 = vadd.f32 %v4763_v59, %v7836_v21 }
 0x2b5   : > { %v4765_v57 = vpop.f32.mrf.mxu0  ;;  %v7890_v54 = vpop.f32.mrf.mxu1 }
 0x2b6   : > { %v4766_v10 = vadd.f32 %v4765_v57, %v4764_v50  ;;  %v7892_v41 = vadd.f32 %v4843_v31, %v2695_v19 }
 0x2b7   : > { %v4993_v63 = vpop.f32.mrf.mxu0  ;;  %v7894_v17 = vpop.f32.mrf.mxu1 }
 0x2b8   : > { %8716 = vst [vmem:[#allocation79_spill] sm:$0xff] %v7892_v41  ;;  %v2702_v48 = vadd.f32 %v4766_v10, %v7839_v24 }
 0x2b9   : > { %v2991_v23 = vpop.f32.mrf.mxu0  ;;  %v7897_v62 = vpop.f32.mrf.mxu1 }
 0x2ba   : > { %v7899_v33 = vadd.f32 %v4846_v4, %v2702_v48 }
 0x2bb   : > { %v4996_v47 = vpop.f32.mrf.mxu0  ;;  %v7901_v38 = vpop.f32.mrf.mxu1 }
 0x2bc   : > { %8717 = vst [vmem:[#allocation80_spill] sm:$0xff] %v7899_v33 }
 0x2bd   : > { %v3011_v21 = vpop.f32.mrf.mxu0  ;;  %v7903_v44 = vpop.f32.mrf.mxu1 }
 0x2bf   : > { %v4999_v26 = vpop.f32.mrf.mxu0  ;;  %v7905_v13 = vpop.f32.mrf.mxu1 }
 0x2c1   : > { %v7907_v37 = vpop.f32.mrf.mxu0  ;;  %v7909_v40 = vpop.f32.mrf.mxu1 }
 0x2c3   : > { %v7911_v49 = vpop.f32.mrf.mxu0  ;;  %v7913_v24 = vpop.f32.mrf.mxu1 }
 0x2c5   : > { %v7915_v3 = vpop.f32.mrf.mxu0  ;;  %v7917_v29 = vpop.f32.mrf.mxu1 }
 0x2c6   : > { %8718 = vst [vmem:[#allocation14_spill] sm:$0xff] %v7917_v29 }
 0x2c7   : > { %v7919_v5 = vpop.f32.mrf.mxu0  ;;  %v7921_v20 = vpop.f32.mrf.mxu1 }
 0x2c8   : > { %8719 = vst [vmem:[#allocation17_spill] sm:$0xff] %v7921_v20 }
 0x2c9   : > { %v7923_v9 = vpop.f32.mrf.mxu0  ;;  %v7925_v51 = vpop.f32.mrf.mxu1 }
 0x2ca   : > { %8720 = vst [vmem:[#allocation15_spill] sm:$0xff] %v7925_v51 }
 0x2cb   : > { %v7927_v1 = vpop.f32.mrf.mxu0  ;;  %v7929_v39 = vpop.f32.mrf.mxu1 }
 0x2cc   : > { %8721 = vst [vmem:[#allocation18_spill] sm:$0xff] %v7929_v39 }
 0x2cd   : > { %v7931_v0 = vpop.f32.mrf.mxu0  ;;  %v7933_v18 = vpop.f32.mrf.mxu1 }
 0x2ce   : > { %8722 = vst [vmem:[#allocation16_spill] sm:$0xff] %v7933_v18 }
 0x2cf   : > { %v7935_v43 = vpop.f32.mrf.mxu0  ;;  %v5101_v2 = vpop.f32.mrf.mxu1 }
 0x2d1   : > { %v7937_v27 = vpop.f32.mrf.mxu0  ;;  %v3600_v31 = vpop.f32.mrf.mxu1 }
 0x2d2   : > { %8723 = vst [vmem:[#allocation19_spill] sm:$0xff] %v7937_v27 }
 0x2d3   : > { %v7939_v11 = vpop.f32.mrf.mxu0  ;;  %v7941_v46 = vpop.f32.mrf.mxu1 }
 0x2d4   : > { %8724 = vst [vmem:[#allocation20_spill] sm:$0xff] %v7939_v11 }
 0x2d5   : > { %v7943_v30 = vpop.f32.mrf.mxu0  ;;  %v7945_v56 = vpop.f32.mrf.mxu1 }
 0x2d6   : > { %8725 = vst [vmem:[#allocation23_spill] sm:$0xff] %v7943_v30 }
 0x2d7   : > { %v5065_v12 = vpop.f32.mrf.mxu0  ;;  %v7947_v28 = vpop.f32.mrf.mxu1 }
 0x2d9   : > { %v3416_v4 = vpop.f32.mrf.mxu0  ;;  %v7949_v25 = vpop.f32.mrf.mxu1 }
 0x2db   : > { %v5068_v15 = vpop.f32.mrf.mxu0  ;;  %v7951_v34 = vpop.f32.mrf.mxu1 }
 0x2dd   : > { %v3430_v59 = vpop.f32.mrf.mxu0  ;;  %v7953_v50 = vpop.f32.mrf.mxu1 }
 0x2de   : > { %8726 = vst [vmem:[#allocation86_spill] sm:$0xff] %v7953_v50  ;;  %v3022_v50 = vadd.f32 %v4996_v47, %v7851_v60 }
 0x2df   : > { %v5071_v19 = vpop.f32.mrf.mxu0  ;;  %v7955_v57 = vpop.f32.mrf.mxu1 }
 0x2e0   : > { %8727 = vst [vmem:[#allocation21_spill] sm:$0xff] %v7955_v57  ;;  %v3261_v60 = vadd.f32 %v7887_v42, %v3022_v50 }
 0x2e1   : > { %v3444_v10 = vpop.f32.mrf.mxu0  ;;  %v7957_v48 = vpop.f32.mrf.mxu1 }
 0x2e2   : > { %8728 = vst [vmem:[#allocation24_spill] sm:$0xff] %v7957_v48  ;;  %v3002_v48 = vadd.f32 %v4993_v63, %v7845_v45 }
 0x2e3   : > { %v7959_v18 = vpop.f32.mrf.mxu0  ;;  %v7961_v39 = vpop.f32.mrf.mxu1 }
 0x2e4   : > { %8729 = vst [vmem:[#allocation22_spill] sm:$0xff] %v7961_v39 }
 0x2e5   : > { %v7963_v51 = vpop.f32.mrf.mxu0  ;;  %v7965_v30 = vpop.f32.mrf.mxu1 }
 0x2e6   : > { %8730 = vst [vmem:[#allocation25_spill] sm:$0xff] %v7965_v30  ;;  %v2992_v30 = vadd.f32 %v2991_v23, %v7842_v36  ;;  %v3042_v36 = vadd.f32 %v4999_v26, %v7857_v55 }
 0x2e7   : > { %v7967_v41 = vpop.f32.mrf.mxu0  ;;  %v7969_v20 = vpop.f32.mrf.mxu1 }
 0x2e8   : > { %8731 = vst [vmem:[#allocation88_spill] sm:$0xff] %v7969_v20  ;;  %v3243_v63 = vadd.f32 %v7883_v35, %v2992_v30  ;;  %v3273_v42 = vadd.f32 %v7894_v17, %v3042_v36 }
 0x2e9   : > { %v7971_v11 = vpop.f32.mrf.mxu0  ;;  %v7973_v33 = vpop.f32.mrf.mxu1 }
 0x2ea   : > { %8732 = vst [vmem:[#allocation92_spill] sm:$0xff] %v7971_v11  ;;  %8733 = vst [vmem:[#allocation28_spill] sm:$0xff] %v7973_v33  ;;  %v3249_v33 = vadd.f32 %v7880_v16, %v3002_v48  ;;  %v3417_v23 = vadd.f32 %v3416_v4, %v3243_v63  ;;  %v3032_v16 = vadd.f32 %v7907_v37, %v7854_v22 }
 0x2eb   : > { %v7975_v57 = vpop.f32.mrf.mxu0  ;;  %v7977_v29 = vpop.f32.mrf.mxu1  ;;  %v3052_v22 = vadd.f32 %v7915_v3, %v7860_v53 }
 0x2ec   : > { %8734 = vst [vmem:[#allocation26_spill] sm:$0xff] %v7975_v57  ;;  %8735 = vst [vmem:[#allocation29_spill] sm:$0xff] %v7977_v29  ;;  %v3012_v57 = vadd.f32 %v3011_v21, %v7848_v6  ;;  %v3424_v45 = vadd.f32 %v5065_v12, %v3249_v33  ;;  %v3062_v33 = vadd.f32 %v7911_v49, %v7863_v61 }
 0x2ed   : > { %v7980_v39 = vpop.f32.mrf.mxu0  ;;  %v7982_v27 = vpop.f32.mrf.mxu1  ;;  %v3601_v12 = vadd.f32 %v3600_v31, %v3417_v23  ;;  %v3267_v37 = vadd.f32 %v7897_v62, %v3032_v16  ;;  %v3082_v61 = vadd.f32 %v7919_v5, %v7869_v58  ;;  %v3279_v58 = vadd.f32 %v7903_v44, %v3052_v22 }
 0x2ee   : > { %8736 = vst [vmem:[#allocation27_spill] sm:$0xff] %v7980_v39  ;;  %8737 = vst [vmem:[#allocation30_spill] sm:$0xff] %v7982_v27  ;;  %v3255_v6 = vadd.f32 %v7890_v54, %v3012_v57  ;;  %v3609_v35 = vadd.f32 %v5101_v2, %v3424_v45  ;;  %v3285_v49 = vadd.f32 %v7901_v38, %v3062_v33  ;;  %v8741_v33 = vld [vmem:[#allocation11_spill] sm:$0xff] }
 0x2ef   : > { %v7985_v7 = vpop.f32.mrf.mxu0  ;;  %v5173_v20 = vpop.f32.mrf.mxu1  ;;  %v3445_v31 = vadd.f32 %v3444_v10, %v3267_v37  ;;  %v8746_v37 = vld [vmem:[#allocation80_spill] sm:$0xff] }
 0x2f0   : > { %v3431_v26 = vadd.f32 %v3430_v59, %v3255_v6 }
 0x2f1   : > { %v7989_v11 = vpop.f32.mrf.mxu0  ;;  %v3976_v29 = vpop.f32.mrf.mxu1 }
 0x2f2   : > { %8738 = vst [vmem:[#allocation33_spill] sm:$0xff] %v7989_v11  ;;  %v3438_v11 = vadd.f32 %v5068_v15, %v3261_v60  ;;  %v3452_v15 = vadd.f32 %v5071_v19, %v3273_v42  ;;  %v3617_v3 = vadd.f32 %v7945_v56, %v3431_v26  ;;  %v3297_v56 = vadd.f32 %v7905_v13, %v3082_v61  ;;  %v8743_v26 = vld [vmem:[#allocation14_spill] sm:$0xff] }
 0x2f3   : > { %v7993_v39 = vpop.f32.mrf.mxu0  ;;  %v5176_v27 = vpop.f32.mrf.mxu1  ;;  %v3122_v60 = vadd.f32 %v7935_v43, %v7885_v32 }
 0x2f4   : > { %v3625_v57 = vadd.f32 %v7941_v46, %v3438_v11  ;;  %v3466_v11 = vadd.f32 %v7959_v18, %v3285_v49  ;;  %v3641_v10 = vadd.f32 %v7947_v28, %v3452_v15  ;;  %v3633_v18 = vadd.f32 %v7949_v25, %v3445_v31  ;;  %v8748_v15 = vld [vmem:[#allocation17_spill] sm:$0xff] }
 0x2f5   : > { %v8000_v47 = vpop.f32.mrf.mxu0  ;;  %v3988_v48 = vpop.f32.mrf.mxu1  ;;  %v8749_v61 = vld [vmem:[#allocation27_spill] sm:$0xff] }
 0x2f7   : > { %v5137_v21 = vpop.f32.mrf.mxu0  ;;  %v5179_v55 = vpop.f32.mrf.mxu1 }
 0x2f8   : > { %v3816_v30 = vadd.f32 %v5137_v21, %v3609_v35  ;;  %v8742_v21 = vld [vmem:[#allocation19_spill] sm:$0xff] }
 0x2f9   : > { %v3809_v4 = vpop.f32.mrf.mxu0  ;;  %v4000_v54 = vpop.f32.mrf.mxu1 }
 0x2fa   : > { %v3983_v50 = vadd.f32 %v5173_v20, %v3816_v30  ;;  %v3810_v2 = vadd.f32 %v3809_v4, %v3601_v12  ;;  %v3072_v20 = vadd.f32 %v7923_v9, %v7866_v52  ;;  %v3459_v52 = vadd.f32 %v7963_v51, %v3279_v58  ;;  %v8744_v30 = vld [vmem:[#allocation26_spill] sm:$0xff]  ;;  %v8745_v12 = vld [vmem:[#allocation21_spill] sm:$0xff]  ;;  %v8747_v4 = vld [vmem:[#allocation20_spill] sm:$0xff] }
 0x2fb   : > { %v5140_v17 = vpop.f32.mrf.mxu0  ;;  %v5182_v59 = vpop.f32.mrf.mxu1  ;;  %v3657_v51 = vadd.f32 %v7951_v34, %v3466_v11  ;;  %v8753_v58 = vld [vmem:[#allocation15_spill] sm:$0xff] }
 0x2fc   : > { %4071 = vst [vmem:[%s8015_s30 + $0x8] sm:$0xff] %v3983_v50  ;;  %v3977_v53 = vadd.f32 %v3976_v29, %v3810_v2  ;;  %v3828_v62 = vadd.f32 %v5140_v17, %v3625_v57  ;;  %v3102_v29 = vadd.f32 %v7927_v1, %v7875_v8  ;;  %v3291_v28 = vadd.f32 %v7909_v40, %v3072_v20 }
 0x2fd   : > { %v3821_v5 = vpop.f32.mrf.mxu0  ;;  %v4012_v38 = vpop.f32.mrf.mxu1  ;;  %v3480_v8 = vadd.f32 %v7967_v41, %v3297_v56  ;;  %v8740_v41 = vld [vmem:[#allocation86_spill] sm:$0xff]  ;;  %v3321_v50 = vadd.f32 %v8748_v15, %v3122_v60 }
 0x2fe   : > { %4070 = vst [vmem:[%s8015_s30] sm:$0xff] %v3977_v53  ;;  %v3995_v46 = vadd.f32 %v5176_v27, %v3828_v62  ;;  %v3822_v19 = vadd.f32 %v3821_v5, %v3617_v3  ;;  %v3092_v27 = vadd.f32 %v7931_v0, %v7872_v14  ;;  %v3309_v25 = vadd.f32 %v7913_v24, %v3102_v29  ;;  %v8739_v14 = vld [vmem:[#allocation92_spill] sm:$0xff]  ;;  %v8752_v3 = vld [vmem:[#allocation23_spill] sm:$0xff]  ;;  %v8754_v29 = vld [vmem:[#allocation22_spill] sm:$0xff] }
 0x2ff   : > { %v5143_v45 = vpop.f32.mrf.mxu0  ;;  %v5185_v63 = vpop.f32.mrf.mxu1  ;;  %v3473_v0 = vadd.f32 %v8739_v14, %v3291_v28  ;;  %v3649_v35 = vadd.f32 %v8740_v41, %v3459_v52  ;;  %v3673_v22 = vadd.f32 %v8745_v12, %v3480_v8  ;;  %v8750_v53 = vld [vmem:[#allocation24_spill] sm:$0xff] }
 0x300   : > { %4073 = vst [vmem:[%s8015_s30 + $0x18] sm:$0xff] %v3995_v46  ;;  %v3989_v44 = vadd.f32 %v3988_v48, %v3822_v19  ;;  %v3840_v9 = vadd.f32 %v5143_v45, %v3641_v10  ;;  %v3303_v34 = vadd.f32 %v8743_v26, %v3092_v27  ;;  %v3494_v32 = vadd.f32 %v8744_v30, %v3309_v25  ;;  %v8755_v45 = vld [vmem:[#allocation18_spill] sm:$0xff]  ;;  %v8759_v25 = vld [vmem:[#allocation88_spill] sm:$0xff] }
 0x301   : > { %v3833_v36 = vpop.f32.mrf.mxu0  ;;  %v4024_v23 = vpop.f32.mrf.mxu1  ;;  %v3665_v62 = vadd.f32 %v8750_v53, %v3473_v0  ;;  %v3508_v46 = vadd.f32 %v7985_v7, %v3321_v50  ;;  %v8760_v41 = vld [vmem:[#allocation28_spill] sm:$0xff]  ;;  %v8762_v30 = vld [vmem:[#allocation30_spill] sm:$0xff] }
 0x302   : > { %4072 = vst [vmem:[%s8015_s30 + $0x10] sm:$0xff] %v3989_v44  ;;  %v4007_v13 = vadd.f32 %v5179_v55, %v3840_v9  ;;  %v3834_v1 = vadd.f32 %v3833_v36, %v3633_v18  ;;  %v3112_v55 = vadd.f32 %v8742_v21, %v8741_v33  ;;  %v3487_v49 = vadd.f32 %v8749_v61, %v3303_v34  ;;  %v8756_v9 = vld [vmem:[#allocation33_spill] sm:$0xff] }
 0x303   : > { %v5146_v16 = vpop.f32.mrf.mxu0  ;;  %v5188_v48 = vpop.f32.mrf.mxu1  ;;  %v3689_v56 = vadd.f32 %v8754_v29, %v3494_v32  ;;  %v8757_v36 = vld [vmem:[#allocation25_spill] sm:$0xff] }
 0x304   : > { %4075 = vst [vmem:[%s8015_s30 + $0x28] sm:$0xff] %v4007_v13  ;;  %v4001_v40 = vadd.f32 %v4000_v54, %v3834_v1  ;;  %v3852_v6 = vadd.f32 %v5146_v16, %v3657_v51  ;;  %v3142_v54 = vadd.f32 %v8747_v4, %v8746_v37  ;;  %v3315_v5 = vadd.f32 %v8753_v58, %v3112_v55  ;;  %v8758_v13 = vld [vmem:[#allocation16_spill] sm:$0xff]  ;;  %v8761_v21 = vld [vmem:[#allocation29_spill] sm:$0xff] }
 0x305   : > { %v3845_v42 = vpop.f32.mrf.mxu0  ;;  %v4036_v2 = vpop.f32.mrf.mxu1  ;;  %v3681_v8 = vadd.f32 %v8757_v36, %v3487_v49  ;;  %v3705_v16 = vadd.f32 %v8759_v25, %v3508_v46 }
 0x306   : > { %4074 = vst [vmem:[%s8015_s30 + $0x20] sm:$0xff] %v4001_v40  ;;  %v4019_v24 = vadd.f32 %v5182_v59, %v3852_v6  ;;  %v3846_v43 = vadd.f32 %v3845_v42, %v3649_v35  ;;  %v8751_v59 = vld [vmem:[#allocation79_spill] sm:$0xff]  ;;  %v3333_v52 = vadd.f32 %v8755_v45, %v3142_v54  ;;  %v3501_v18 = vadd.f32 %v8756_v9, %v3315_v5 }
 0x307   : > { %v5149_v57 = vpop.f32.mrf.mxu0  ;;  %v3132_v20 = vadd.f32 %v8752_v3, %v8751_v59 }
 0x308   : > { %4077 = vst [vmem:[%s8015_s30 + $0x38] sm:$0xff] %v4019_v24  ;;  %v4013_v17 = vadd.f32 %v4012_v38, %v3846_v43  ;;  %v3864_v31 = vadd.f32 %v5149_v57, %v3673_v22  ;;  %v5191_v38 = vpop.f32.mrf.mxu1  ;;  %v3697_v35 = vadd.f32 %v8760_v41, %v3501_v18 }
 0x309   : > { %v3857_v11 = vpop.f32.mrf.mxu0  ;;  %v3327_v7 = vadd.f32 %v8758_v13, %v3132_v20 }
 0x30a   : > { %4076 = vst [vmem:[%s8015_s30 + $0x30] sm:$0xff] %v4013_v17  ;;  %v4031_v19 = vadd.f32 %v5185_v63, %v3864_v31  ;;  %v3858_v10 = vadd.f32 %v3857_v11, %v3665_v62  ;;  %v3522_v63 = vadd.f32 %v7993_v39, %v3333_v52  ;;  %v4048_v14 = vpop.f32.mrf.mxu1 }
 0x30b   : > { %v5152_v44 = vpop.f32.mrf.mxu0  ;;  %v3515_v40 = vadd.f32 %v8000_v47, %v3327_v7 }
 0x30c   : > { %4079 = vst [vmem:[%s8015_s30 + $0x48] sm:$0xff] %v4031_v19  ;;  %v4025_v27 = vadd.f32 %v4024_v23, %v3858_v10  ;;  %v3876_v28 = vadd.f32 %v5152_v44, %v3689_v56  ;;  %v3721_v55 = vadd.f32 %v8761_v21, %v3522_v63  ;;  %v5194_v26 = vpop.f32.mrf.mxu1 }
 0x30d   : > { %v3869_v1 = vpop.f32.mrf.mxu0  ;;  %v3713_v32 = vadd.f32 %v8762_v30, %v3515_v40 }
 0x30e   : > { %4078 = vst [vmem:[%s8015_s30 + $0x40] sm:$0xff] %v4025_v27  ;;  %v4043_v51 = vadd.f32 %v5188_v48, %v3876_v28  ;;  %v3870_v60 = vadd.f32 %v3869_v1, %v3681_v8  ;;  %v4060_v22 = vpop.f32.mrf.mxu1 }
 0x30f   : > { %v5155_v0 = vpop.f32.mrf.mxu0 }
 0x310   : > { %4081 = vst [vmem:[%s8015_s30 + $0x58] sm:$0xff] %v4043_v51  ;;  %v4037_v23 = vadd.f32 %v4036_v2, %v3870_v60  ;;  %v3888_v6 = vadd.f32 %v5155_v0, %v3705_v16 }
 0x311   : > { %v3881_v33 = vpop.f32.mrf.mxu0 }
 0x312   : > { %4080 = vst [vmem:[%s8015_s30 + $0x50] sm:$0xff] %v4037_v23  ;;  %v4055_v39 = vadd.f32 %v5191_v38, %v3888_v6  ;;  %v3882_v48 = vadd.f32 %v3881_v33, %v3697_v35 }
 0x313   : > { %v5158_v34 = vpop.f32.mrf.mxu0 }
 0x314   : > { %4083 = vst [vmem:[%s8015_s30 + $0x68] sm:$0xff] %v4055_v39  ;;  %v4049_v47 = vadd.f32 %v4048_v14, %v3882_v48  ;;  %v3900_v42 = vadd.f32 %v5158_v34, %v3721_v55 }
 0x315   : > { %v3893_v24 = vpop.f32.mrf.mxu0 }
 0x316   : > { %4082 = vst [vmem:[%s8015_s30 + $0x60] sm:$0xff] %v4049_v47  ;;  %v4067_v43 = vadd.f32 %v5194_v26, %v3900_v42  ;;  %v3894_v12 = vadd.f32 %v3893_v24, %v3713_v32 }
 0x318   : > { %4085 = vst [vmem:[%s8015_s30 + $0x78] sm:$0xff] %v4067_v43  ;;  %v4061_v37 = vadd.f32 %v4060_v22, %v3894_v12 }
 0x31a   : > { %4084 = vst [vmem:[%s8015_s30 + $0x70] sm:$0xff] %v4061_v37 }
 0x31b   : > { %5304 = shalt.err (!%p5301_p3)
}
 0x31c   : > { %s5305_s21 = scalar_lea.hbm %s8082_s17, 2048  ;;  %s5309_s24 = scalar_lea.hbm %s8132_s2, 4096 }
 0x31d   : > { %p5306_p4 = scmp.ne.s32.totalorder %s8082_s17, %s5305_s21  ;;  %p5310_p9 = scmp.lt.s32.totalorder %s8082_s17, %s8132_s2 }
 0x31e   : > { %p5311_p10 = scmp.lt.s32.totalorder %s5309_s24, %s5305_s21 }
 0x31f   : > { %p5307_p7 = pnand %p5306_p4, %p5414_p5 }
 0x320   : > { %p5312_p11 = por %p5311_p10, %p5310_p9 }
 0x321   : > { %p5308_p8 = pneg %p5307_p7 }
 0x323   : > { %p5313_p12 = pnand %p5312_p11, %p5308_p8 }
 0x325   : > { %5316 = shalt.err (!%p5313_p12)
}
 0x326   : > { %s5359_s27 = smov 128   ;;  %s5360_s28 = smov 8  }
 0x327   : > { %5195 = dma.vmem_to_hbm [thread:$0]  (%p5414_p5), %s8084_s4, 2048, %s8082_s17, %s8090_s13, %s5359_s27, %s5359_s27, %s5360_s28  }
 0x328 PF: > { %p5201_p13 = scmp.ge.s32.totalorder %s5351_s12, 2  ;;  %s4115_s29 = sand.u32 1, %s5339_s9  }
 0x329   : > { %s4116_s30 = scalar_lea.sflag [#allocation3], %s4115_s29 }
 0x32a   : > { %p5198_p0 = pnand %p5201_p13, %p5418_p6 }
 0x32c   : > { %p5199_p1 = pneg %p5198_p0 }
 0x32e   : > { %5334 = dma.done.wait (%p5199_p1), %s4116_s30, 2048  }
 0x32f   : > { %5336 = vsyncadd (%p5199_p1), %s4116_s30, 4294965248  ;;  %p12_p2 = scmp.ge.s32.totalorder %s5401_s15, 4   ;;  %s8763_s9 = smov %s5343_s10 }
 0x330   : > { %s8764_s10 = smov %s5347_s11  ;;  %s8765_s11 = smov %s5412_s18 }
 0x331   : > { %s8766_s12 = smov %s5401_s15  ;;  %14 = sbr.rel (!%p12_p2) target bundleno = 3 (0x3), region = 63 }
 0x336   :  { %4121 = vsyncpa [#allocation3], 1 }
 0x337   :  { %4123 = vsyncpa [#allocation3 + $0x1], 1 }

</bundles_post_ra>
